<compile_context>
chip_gen: v5e
topology: v5e:2x2
jax: 0.10.0
libtpu: 0.0.40
codegen_flags: <defaults>
</compile_context>

<pallas_src>
import functools

import numpy as np
import jax
import jax.numpy as jnp
from jax.experimental import pallas as pl
from jax.experimental.pallas import tpu as pltpu

INIT_RANGE = 0.5
BN_EPS = 1e-5
LANE = 128  # pad all channel-like dims to the TPU lane width


# ----------------------------------------------------------------------------
# Fused kernel: stem (3x conv+ReLU+BN) + classifier, everything in VMEM.
# ----------------------------------------------------------------------------
def _network_kernel(x_ref, g1_ref, g23_ref,
                    w1_ref, b1_ref, w2_ref, b2_ref, w3_ref, b3_ref,
                    selc_ref, wc_ref, bc_ref, out_ref):
    f32 = jnp.float32
    bf16 = jnp.bfloat16

    def conv_relu_bn(src, g_ref, w_ref, b_ref):
        """conv (as per-tap gather-matmul + weight matmul) + bias + ReLU + BN."""
        taps = g_ref.shape[0]          # KH*KW
        rows = g_ref.shape[1]          # P = B*OH*OW
        cout = w_ref.shape[2]          # 128 (lane-padded)
        acc = jnp.zeros((rows, cout), f32)
        for t in range(taps):          # static unroll
            # in-kernel im2col: 0/1 selection matmul gathers this tap's rows
            # (zero rows where the tap reads spatial padding).
            patch = jnp.dot(g_ref[t], src,
                            preferred_element_type=f32).astype(bf16)
            acc = acc + jnp.dot(patch, w_ref[t],
                                preferred_element_type=f32)
        y = acc + b_ref[...]                       # conv bias
        y = jnp.maximum(y, 0.0)                    # ReLU (inplace in torch)
        # BatchNorm2d training-mode stats over (N,H,W) == the patch rows,
        # one-pass biased variance, all in f32.
        inv_p = 1.0 / rows
        mean = jnp.sum(y, axis=0, keepdims=True) * inv_p
        ex2 = jnp.sum(y * y, axis=0, keepdims=True) * inv_p
        var = jnp.maximum(ex2 - mean * mean, 0.0)
        y = (y - mean) * jax.lax.rsqrt(var + BN_EPS)   # gamma=1, beta=0
        return y.astype(bf16)

    x = x_ref[...]                                               # (B*H*W, Cin)
    y1 = conv_relu_bn(x, g1_ref, w1_ref, b1_ref)                 # (P, 128)
    y2 = conv_relu_bn(y1, g23_ref, w2_ref, b2_ref)               # (P, 128)
    y3 = conv_relu_bn(y2, g23_ref, w3_ref, b3_ref)               # (P, 128)

    # Classifier: weight pre-permuted so it consumes y3's (s*B+b, channel)
    # layout directly (== NCHW flatten order).  num_classes padded to 128.
    batch = out_ref.shape[0]
    acc = jnp.zeros((batch, out_ref.shape[1]), f32)
    for s in range(selc_ref.shape[0]):             # 4 spatial positions
        rows_s = jnp.dot(selc_ref[s], y3,
                         preferred_element_type=f32).astype(bf16)   # (B, 128)
        acc = acc + jnp.dot(rows_s, wc_ref[s], preferred_element_type=f32)
    out_ref[...] = acc + bc_ref[...]               # lane-dense (B, 128) store


def _full_spec(shape):
    return pl.BlockSpec(tuple(shape), lambda i, _n=len(shape): (0,) * _n)


def _fused_forward(x_flat, prep, batch):
    args = (x_flat, prep["g1"], prep["g23"],
            prep["w1"], prep["b1"], prep["w2"], prep["b2"],
            prep["w3"], prep["b3"], prep["selc"], prep["wc"], prep["bc"])
    return pl.pallas_call(
        _network_kernel,
        out_shape=jax.ShapeDtypeStruct((batch, LANE), jnp.float32),
        grid=(1,),
        in_specs=[_full_spec(a.shape) for a in args],
        out_specs=_full_spec((batch, LANE)),
        compiler_params=pltpu.CompilerParams(
            dimension_semantics=("arbitrary",)),
    )(*args)


@functools.partial(jax.jit, static_argnames=("num_classes",))
def network_forward(x_nchw, prep, *, num_classes):
    B, C, H, W = x_nchw.shape
    # layout plumbing only: NCHW -> (position, channel) rows for the kernel.
    x_flat = jnp.transpose(x_nchw, (0, 2, 3, 1)).reshape(B * H * W, C)
    logits_pad = _fused_forward(x_flat.astype(jnp.bfloat16), prep, B)
    return logits_pad[:, :num_classes]


# ----------------------------------------------------------------------------
# Constant gather / selection matrices (built once on the host).
# ----------------------------------------------------------------------------
def _build_gather_conv1(B, H, W, KH, KW, stride, pad, OH, OW):
    """g[t, p, q] = 1 iff output row p (= (oh*OW+ow)*B+b) of tap t reads
    input position q (= (b*H+h)*W+w); 0 where the tap reads zero padding."""
    P = B * OH * OW
    g = np.zeros((KH * KW, P, B * H * W), np.float32)
    for i in range(KH):
        for j in range(KW):
            t = i * KW + j
            for oh in range(OH):
                for ow in range(OW):
                    h = oh * stride - pad + i
                    w = ow * stride - pad + j
                    if 0 <= h < H and 0 <= w < W:
                        for b in range(B):
                            p = (oh * OW + ow) * B + b
                            q = (b * H + h) * W + w
                            g[t, p, q] = 1.0
    return jnp.asarray(g, jnp.bfloat16)


def _build_gather_3x3(B, OH, OW):
    """Same-geometry gather for the pad=1 stride=1 3x3 convs; previous-layer
    rows are already in (s*B+b) order."""
    P = B * OH * OW
    g = np.zeros((9, P, P), np.float32)
    for i in range(3):
        for j in range(3):
            t = i * 3 + j
            for oh in range(OH):
                for ow in range(OW):
                    h, w = oh - 1 + i, ow - 1 + j
                    if 0 <= h < OH and 0 <= w < OW:
                        for b in range(B):
                            g[t, (oh * OW + ow) * B + b, (h * OW + w) * B + b] = 1.0
    return jnp.asarray(g, jnp.bfloat16)


def _build_classifier_select(B, S):
    sel = np.zeros((S, B, S * B), np.float32)
    for s in range(S):
        for b in range(B):
            sel[s, b, s * B + b] = 1.0
    return jnp.asarray(sel, jnp.bfloat16)


# ----------------------------------------------------------------------------
# Parameters: PyTorch layout init + one-time conversion to kernel layout.
# ----------------------------------------------------------------------------
def init_params(key, init_channels, nhid, num_classes):
    ks = jax.random.split(key, 8)

    def conv_w(k, cout, cin, kh, kw):
        bound = 1.0 / float(np.sqrt(cin * kh * kw))
        return jax.random.uniform(k, (cout, cin, kh, kw), jnp.float32, -bound, bound)

    def conv_b(k, cin, kh, kw, cout):
        bound = 1.0 / float(np.sqrt(cin * kh * kw))
        return jax.random.uniform(k, (cout,), jnp.float32, -bound, bound)

    lin_bound = 1.0 / float(np.sqrt(4 * nhid))
    return {
        "w1": conv_w(ks[0], nhid, init_channels, 7, 7),   # OIHW, like PyTorch
        "b1": conv_b(ks[1], init_channels, 7, 7, nhid),
        "w2": conv_w(ks[2], nhid, nhid, 3, 3),
        "b2": conv_b(ks[3], nhid, 3, 3, nhid),
        "w3": conv_w(ks[4], nhid, nhid, 3, 3),
        "b3": conv_b(ks[5], nhid, 3, 3, nhid),
        "wc": jax.random.uniform(ks[6], (num_classes, 4 * nhid), jnp.float32,
                                 -INIT_RANGE, INIT_RANGE),
        "bc": jax.random.uniform(ks[7], (num_classes,), jnp.float32,
                                 -lin_bound, lin_bound),
    }


def _pad_last(a, target):
    pad = [(0, 0)] * (a.ndim - 1) + [(0, target - a.shape[-1])]
    return jnp.pad(a, pad)


def prepare_params(params, *, B, H, W, nhid, num_classes):
    """Convert PyTorch-layout params to lane-padded bf16 kernel layout and
    build the constant gather/selection matrices."""
    OH = (H + 2 * 3 - 7) // 2 + 1
    OW = (W + 2 * 3 - 7) // 2 + 1
    assert OH * OW == 4, "classifier Linear(4*nhid, ...) requires a 2x2 stem output"
    assert nhid <= LANE and num_classes <= LANE

    def conv_taps(w):  # (O, I, KH, KW) -> (KH*KW, I, O) matching the gather order
        o, i, kh, kw = w.shape
        return jnp.transpose(w, (2, 3, 1, 0)).reshape(kh * kw, i, o)

    w1 = _pad_last(conv_taps(params["w1"]), LANE)                      # (49, Cin, 128)
    w2 = _pad_last(jnp.pad(conv_taps(params["w2"]),
                           ((0, 0), (0, LANE - nhid), (0, 0))), LANE)  # (9, 128, 128)
    w3 = _pad_last(jnp.pad(conv_taps(params["w3"]),
                           ((0, 0), (0, LANE - nhid), (0, 0))), LANE)
    # classifier weight: wc[n, c*4 + s] -> wck[s, c, n], zero-padded to 128x128.
    wck = jnp.transpose(params["wc"].reshape(num_classes, nhid, OH, OW),
                        (2, 3, 1, 0)).reshape(OH * OW, nhid, num_classes)
    wck = _pad_last(jnp.pad(wck, ((0, 0), (0, LANE - nhid), (0, 0))), LANE)

    return {
        "g1": _build_gather_conv1(B, H, W, 7, 7, 2, 3, OH, OW),
        "g23": _build_gather_3x3(B, OH, OW),
        "selc": _build_classifier_select(B, OH * OW),
        "w1": w1.astype(jnp.bfloat16),
        "w2": w2.astype(jnp.bfloat16),
        "w3": w3.astype(jnp.bfloat16),
        "wc": wck.astype(jnp.bfloat16),
        "b1": _pad_last(params["b1"], LANE).reshape(1, LANE),
        "b2": _pad_last(params["b2"], LANE).reshape(1, LANE),
        "b3": _pad_last(params["b3"], LANE).reshape(1, LANE),
        "bc": _pad_last(params["bc"], LANE).reshape(1, LANE),
    }


# ----------------------------------------------------------------------------
# Pure-JAX f32 reference (mirrors the PyTorch module, identity cells).
# ----------------------------------------------------------------------------
def _reference_forward(x_nchw, params):
    def conv2d(x, w, b, stride, pad):
        y = jax.lax.conv_general_dilated(
            x, w, window_strides=(stride, stride),
            padding=[(pad, pad), (pad, pad)],
            dimension_numbers=("NCHW", "OIHW", "NCHW"))
        return y + b[None, :, None, None]

    def relu_bn(y):
        y = jnp.maximum(y, 0.0)
        mean = jnp.mean(y, axis=(0, 2, 3), keepdims=True)
        var = jnp.mean((y - mean) ** 2, axis=(0, 2, 3), keepdims=True)
        return (y - mean) * jax.lax.rsqrt(var + BN_EPS)

    y = relu_bn(conv2d(x_nchw, params["w1"], params["b1"], 2, 3))
    y = relu_bn(conv2d(y, params["w2"], params["b2"], 1, 1))
    y = relu_bn(conv2d(y, params["w3"], params["b3"], 1, 1))
    flat = y.reshape(y.shape[0], -1)               # NCHW flatten, = out.view(B,-1)
    return flat @ params["wc"].T + params["bc"]


if __name__ == "__main__":
    key = jax.random.PRNGKey(0)
    k_x, k_p = jax.random.split(key)

    # The classifier is Linear(4*nhid, num_classes) and the (undefined) cells
    # are identity, so the stride-2 stem must yield 2x2 spatial -> H=W=4.
    B, init_channels, H, W = 2, 4, 4, 4
    nhid, num_classes = 32, 10

    x = jax.random.normal(k_x, (B, init_channels, H, W), jnp.float32)
    params = init_params(k_p, init_channels, nhid, num_classes)
    prep = prepare_params(params, B=B, H=H, W=W, nhid=nhid, num_classes=num_classes)

    logits = network_forward(x, prep, num_classes=num_classes)
    jax.block_until_ready(logits)

    assert logits.shape == (B, num_classes), logits.shape
    assert bool(jnp.all(jnp.isfinite(logits)))

    # Cross-check against the f32 reference (kernel uses bf16 MXU operands,
    # so allow a small tolerance; layout bugs would show up as O(1) errors).
    ref = _reference_forward(x, params)
    max_err = float(jnp.max(jnp.abs(logits - ref)))
    assert max_err < 0.5, f"mismatch vs reference: max abs err = {max_err}"

    print("KERNEL_OK")
</pallas_src>

<mosaic_0001>
module attributes {stable_mosaic.version = 11 : i64} {
  func.func @_network_kernel(%arg0: i32, %arg1: memref<32x4xbf16, #tpu.memory_space<vmem>>, %arg2: memref<49x8x32xbf16, #tpu.memory_space<vmem>>, %arg3: memref<9x8x8xbf16, #tpu.memory_space<vmem>>, %arg4: memref<49x4x128xbf16, #tpu.memory_space<vmem>>, %arg5: memref<1x128xf32, #tpu.memory_space<vmem>>, %arg6: memref<9x128x128xbf16, #tpu.memory_space<vmem>>, %arg7: memref<1x128xf32, #tpu.memory_space<vmem>>, %arg8: memref<9x128x128xbf16, #tpu.memory_space<vmem>>, %arg9: memref<1x128xf32, #tpu.memory_space<vmem>>, %arg10: memref<4x2x8xbf16, #tpu.memory_space<vmem>>, %arg11: memref<4x128x128xbf16, #tpu.memory_space<vmem>>, %arg12: memref<1x128xf32, #tpu.memory_space<vmem>>, %arg13: memref<2x128xf32, #tpu.memory_space<vmem>>) attributes {dimension_semantics = [#tpu.dimension_semantics<arbitrary>], iteration_bounds = array<i64: 1>, scalar_prefetch = 0 : i64, scratch_operands = 0 : i64, tpu.core_type = #tpu.core_type<tc>, window_params = [{pipeline_mode = #tpu.pipeline_mode<synchronous>, transform_indices = @transform_0, window_bounds = array<i64: 32, 4>}, {pipeline_mode = #tpu.pipeline_mode<synchronous>, transform_indices = @transform_1, window_bounds = array<i64: 49, 8, 32>}, {pipeline_mode = #tpu.pipeline_mode<synchronous>, transform_indices = @transform_2, window_bounds = array<i64: 9, 8, 8>}, {pipeline_mode = #tpu.pipeline_mode<synchronous>, transform_indices = @transform_3, window_bounds = array<i64: 49, 4, 128>}, {pipeline_mode = #tpu.pipeline_mode<synchronous>, transform_indices = @transform_4, window_bounds = array<i64: 1, 128>}, {pipeline_mode = #tpu.pipeline_mode<synchronous>, transform_indices = @transform_5, window_bounds = array<i64: 9, 128, 128>}, {pipeline_mode = #tpu.pipeline_mode<synchronous>, transform_indices = @transform_6, window_bounds = array<i64: 1, 128>}, {pipeline_mode = #tpu.pipeline_mode<synchronous>, transform_indices = @transform_7, window_bounds = array<i64: 9, 128, 128>}, {pipeline_mode = #tpu.pipeline_mode<synchronous>, transform_indices = @transform_8, window_bounds = array<i64: 1, 128>}, {pipeline_mode = #tpu.pipeline_mode<synchronous>, transform_indices = @transform_9, window_bounds = array<i64: 4, 2, 8>}, {pipeline_mode = #tpu.pipeline_mode<synchronous>, transform_indices = @transform_10, window_bounds = array<i64: 4, 128, 128>}, {pipeline_mode = #tpu.pipeline_mode<synchronous>, transform_indices = @transform_11, window_bounds = array<i64: 1, 128>}, {pipeline_mode = #tpu.pipeline_mode<synchronous>, transform_indices = @transform_12, window_bounds = array<i64: 2, 128>}]} {
    %c0 = arith.constant 0 : index
    %c0_0 = arith.constant 0 : index
    %0 = vector.load %arg1[%c0, %c0_0] : memref<32x4xbf16, #tpu.memory_space<vmem>>, vector<32x4xbf16>
    %cst = arith.constant 0.000000e+00 : f32
    %1 = vector.broadcast %cst : f32 to vector<8x128xf32>
    %c0_1 = arith.constant 0 : index
    %c0_2 = arith.constant 0 : index
    %c0_3 = arith.constant 0 : index
    %2 = vector.load %arg2[%c0_1, %c0_2, %c0_3] : memref<49x8x32xbf16, #tpu.memory_space<vmem>>, vector<1x8x32xbf16>
    %3 = vector.shape_cast %2 : vector<1x8x32xbf16> to vector<8x32xbf16>
    %cst_4 = arith.constant dense<0.000000e+00> : vector<8x4xf32>
    %4 = tpu.matmul %3, %0, %cst_4 {dimension_numbers = #tpu.dot_dimension_numbers<[1], [0], [0], [1], [0, 0, 1, 1], [], []>} : vector<8x32xbf16>, vector<32x4xbf16>, vector<8x4xf32> -> vector<8x4xf32>
    %5 = arith.truncf %4 : vector<8x4xf32> to vector<8x4xbf16>
    %c0_5 = arith.constant 0 : index
    %c0_6 = arith.constant 0 : index
    %c0_7 = arith.constant 0 : index
    %6 = vector.load %arg4[%c0_5, %c0_6, %c0_7] : memref<49x4x128xbf16, #tpu.memory_space<vmem>>, vector<1x4x128xbf16>
    %7 = vector.shape_cast %6 : vector<1x4x128xbf16> to vector<4x128xbf16>
    %cst_8 = arith.constant dense<0.000000e+00> : vector<8x128xf32>
    %8 = tpu.matmul %5, %7, %cst_8 {dimension_numbers = #tpu.dot_dimension_numbers<[1], [0], [0], [1], [0, 0, 1, 1], [], []>} : vector<8x4xbf16>, vector<4x128xbf16>, vector<8x128xf32> -> vector<8x128xf32>
    %9 = arith.addf %1, %8 : vector<8x128xf32>
    %c1 = arith.constant 1 : index
    %c0_9 = arith.constant 0 : index
    %c0_10 = arith.constant 0 : index
    %10 = vector.load %arg2[%c1, %c0_9, %c0_10] : memref<49x8x32xbf16, #tpu.memory_space<vmem>>, vector<1x8x32xbf16>
    %11 = vector.shape_cast %10 : vector<1x8x32xbf16> to vector<8x32xbf16>
    %cst_11 = arith.constant dense<0.000000e+00> : vector<8x4xf32>
    %12 = tpu.matmul %11, %0, %cst_11 {dimension_numbers = #tpu.dot_dimension_numbers<[1], [0], [0], [1], [0, 0, 1, 1], [], []>} : vector<8x32xbf16>, vector<32x4xbf16>, vector<8x4xf32> -> vector<8x4xf32>
    %13 = arith.truncf %12 : vector<8x4xf32> to vector<8x4xbf16>
    %c1_12 = arith.constant 1 : index
    %c0_13 = arith.constant 0 : index
    %c0_14 = arith.constant 0 : index
    %14 = vector.load %arg4[%c1_12, %c0_13, %c0_14] : memref<49x4x128xbf16, #tpu.memory_space<vmem>>, vector<1x4x128xbf16>
    %15 = vector.shape_cast %14 : vector<1x4x128xbf16> to vector<4x128xbf16>
    %cst_15 = arith.constant dense<0.000000e+00> : vector<8x128xf32>
    %16 = tpu.matmul %13, %15, %cst_15 {dimension_numbers = #tpu.dot_dimension_numbers<[1], [0], [0], [1], [0, 0, 1, 1], [], []>} : vector<8x4xbf16>, vector<4x128xbf16>, vector<8x128xf32> -> vector<8x128xf32>
    %17 = arith.addf %9, %16 : vector<8x128xf32>
    %c2 = arith.constant 2 : index
    %c0_16 = arith.constant 0 : index
    %c0_17 = arith.constant 0 : index
    %18 = vector.load %arg2[%c2, %c0_16, %c0_17] : memref<49x8x32xbf16, #tpu.memory_space<vmem>>, vector<1x8x32xbf16>
    %19 = vector.shape_cast %18 : vector<1x8x32xbf16> to vector<8x32xbf16>
    %cst_18 = arith.constant dense<0.000000e+00> : vector<8x4xf32>
    %20 = tpu.matmul %19, %0, %cst_18 {dimension_numbers = #tpu.dot_dimension_numbers<[1], [0], [0], [1], [0, 0, 1, 1], [], []>} : vector<8x32xbf16>, vector<32x4xbf16>, vector<8x4xf32> -> vector<8x4xf32>
    %21 = arith.truncf %20 : vector<8x4xf32> to vector<8x4xbf16>
    %c2_19 = arith.constant 2 : index
    %c0_20 = arith.constant 0 : index
    %c0_21 = arith.constant 0 : index
    %22 = vector.load %arg4[%c2_19, %c0_20, %c0_21] : memref<49x4x128xbf16, #tpu.memory_space<vmem>>, vector<1x4x128xbf16>
    %23 = vector.shape_cast %22 : vector<1x4x128xbf16> to vector<4x128xbf16>
    %cst_22 = arith.constant dense<0.000000e+00> : vector<8x128xf32>
    %24 = tpu.matmul %21, %23, %cst_22 {dimension_numbers = #tpu.dot_dimension_numbers<[1], [0], [0], [1], [0, 0, 1, 1], [], []>} : vector<8x4xbf16>, vector<4x128xbf16>, vector<8x128xf32> -> vector<8x128xf32>
    %25 = arith.addf %17, %24 : vector<8x128xf32>
    %c3 = arith.constant 3 : index
    %c0_23 = arith.constant 0 : index
    %c0_24 = arith.constant 0 : index
    %26 = vector.load %arg2[%c3, %c0_23, %c0_24] : memref<49x8x32xbf16, #tpu.memory_space<vmem>>, vector<1x8x32xbf16>
    %27 = vector.shape_cast %26 : vector<1x8x32xbf16> to vector<8x32xbf16>
    %cst_25 = arith.constant dense<0.000000e+00> : vector<8x4xf32>
    %28 = tpu.matmul %27, %0, %cst_25 {dimension_numbers = #tpu.dot_dimension_numbers<[1], [0], [0], [1], [0, 0, 1, 1], [], []>} : vector<8x32xbf16>, vector<32x4xbf16>, vector<8x4xf32> -> vector<8x4xf32>
    %29 = arith.truncf %28 : vector<8x4xf32> to vector<8x4xbf16>
    %c3_26 = arith.constant 3 : index
    %c0_27 = arith.constant 0 : index
    %c0_28 = arith.constant 0 : index
    %30 = vector.load %arg4[%c3_26, %c0_27, %c0_28] : memref<49x4x128xbf16, #tpu.memory_space<vmem>>, vector<1x4x128xbf16>
    %31 = vector.shape_cast %30 : vector<1x4x128xbf16> to vector<4x128xbf16>
    %cst_29 = arith.constant dense<0.000000e+00> : vector<8x128xf32>
    %32 = tpu.matmul %29, %31, %cst_29 {dimension_numbers = #tpu.dot_dimension_numbers<[1], [0], [0], [1], [0, 0, 1, 1], [], []>} : vector<8x4xbf16>, vector<4x128xbf16>, vector<8x128xf32> -> vector<8x128xf32>
    %33 = arith.addf %25, %32 : vector<8x128xf32>
    %c4 = arith.constant 4 : index
    %c0_30 = arith.constant 0 : index
    %c0_31 = arith.constant 0 : index
    %34 = vector.load %arg2[%c4, %c0_30, %c0_31] : memref<49x8x32xbf16, #tpu.memory_space<vmem>>, vector<1x8x32xbf16>
    %35 = vector.shape_cast %34 : vector<1x8x32xbf16> to vector<8x32xbf16>
    %cst_32 = arith.constant dense<0.000000e+00> : vector<8x4xf32>
    %36 = tpu.matmul %35, %0, %cst_32 {dimension_numbers = #tpu.dot_dimension_numbers<[1], [0], [0], [1], [0, 0, 1, 1], [], []>} : vector<8x32xbf16>, vector<32x4xbf16>, vector<8x4xf32> -> vector<8x4xf32>
    %37 = arith.truncf %36 : vector<8x4xf32> to vector<8x4xbf16>
    %c4_33 = arith.constant 4 : index
    %c0_34 = arith.constant 0 : index
    %c0_35 = arith.constant 0 : index
    %38 = vector.load %arg4[%c4_33, %c0_34, %c0_35] : memref<49x4x128xbf16, #tpu.memory_space<vmem>>, vector<1x4x128xbf16>
    %39 = vector.shape_cast %38 : vector<1x4x128xbf16> to vector<4x128xbf16>
    %cst_36 = arith.constant dense<0.000000e+00> : vector<8x128xf32>
    %40 = tpu.matmul %37, %39, %cst_36 {dimension_numbers = #tpu.dot_dimension_numbers<[1], [0], [0], [1], [0, 0, 1, 1], [], []>} : vector<8x4xbf16>, vector<4x128xbf16>, vector<8x128xf32> -> vector<8x128xf32>
    %41 = arith.addf %33, %40 : vector<8x128xf32>
    %c5 = arith.constant 5 : index
    %c0_37 = arith.constant 0 : index
    %c0_38 = arith.constant 0 : index
    %42 = vector.load %arg2[%c5, %c0_37, %c0_38] : memref<49x8x32xbf16, #tpu.memory_space<vmem>>, vector<1x8x32xbf16>
    %43 = vector.shape_cast %42 : vector<1x8x32xbf16> to vector<8x32xbf16>
    %cst_39 = arith.constant dense<0.000000e+00> : vector<8x4xf32>
    %44 = tpu.matmul %43, %0, %cst_39 {dimension_numbers = #tpu.dot_dimension_numbers<[1], [0], [0], [1], [0, 0, 1, 1], [], []>} : vector<8x32xbf16>, vector<32x4xbf16>, vector<8x4xf32> -> vector<8x4xf32>
    %45 = arith.truncf %44 : vector<8x4xf32> to vector<8x4xbf16>
    %c5_40 = arith.constant 5 : index
    %c0_41 = arith.constant 0 : index
    %c0_42 = arith.constant 0 : index
    %46 = vector.load %arg4[%c5_40, %c0_41, %c0_42] : memref<49x4x128xbf16, #tpu.memory_space<vmem>>, vector<1x4x128xbf16>
    %47 = vector.shape_cast %46 : vector<1x4x128xbf16> to vector<4x128xbf16>
    %cst_43 = arith.constant dense<0.000000e+00> : vector<8x128xf32>
    %48 = tpu.matmul %45, %47, %cst_43 {dimension_numbers = #tpu.dot_dimension_numbers<[1], [0], [0], [1], [0, 0, 1, 1], [], []>} : vector<8x4xbf16>, vector<4x128xbf16>, vector<8x128xf32> -> vector<8x128xf32>
    %49 = arith.addf %41, %48 : vector<8x128xf32>
    %c6 = arith.constant 6 : index
    %c0_44 = arith.constant 0 : index
    %c0_45 = arith.constant 0 : index
    %50 = vector.load %arg2[%c6, %c0_44, %c0_45] : memref<49x8x32xbf16, #tpu.memory_space<vmem>>, vector<1x8x32xbf16>
    %51 = vector.shape_cast %50 : vector<1x8x32xbf16> to vector<8x32xbf16>
    %cst_46 = arith.constant dense<0.000000e+00> : vector<8x4xf32>
    %52 = tpu.matmul %51, %0, %cst_46 {dimension_numbers = #tpu.dot_dimension_numbers<[1], [0], [0], [1], [0, 0, 1, 1], [], []>} : vector<8x32xbf16>, vector<32x4xbf16>, vector<8x4xf32> -> vector<8x4xf32>
    %53 = arith.truncf %52 : vector<8x4xf32> to vector<8x4xbf16>
    %c6_47 = arith.constant 6 : index
    %c0_48 = arith.constant 0 : index
    %c0_49 = arith.constant 0 : index
    %54 = vector.load %arg4[%c6_47, %c0_48, %c0_49] : memref<49x4x128xbf16, #tpu.memory_space<vmem>>, vector<1x4x128xbf16>
    %55 = vector.shape_cast %54 : vector<1x4x128xbf16> to vector<4x128xbf16>
    %cst_50 = arith.constant dense<0.000000e+00> : vector<8x128xf32>
    %56 = tpu.matmul %53, %55, %cst_50 {dimension_numbers = #tpu.dot_dimension_numbers<[1], [0], [0], [1], [0, 0, 1, 1], [], []>} : vector<8x4xbf16>, vector<4x128xbf16>, vector<8x128xf32> -> vector<8x128xf32>
    %57 = arith.addf %49, %56 : vector<8x128xf32>
    %c7 = arith.constant 7 : index
    %c0_51 = arith.constant 0 : index
    %c0_52 = arith.constant 0 : index
    %58 = vector.load %arg2[%c7, %c0_51, %c0_52] : memref<49x8x32xbf16, #tpu.memory_space<vmem>>, vector<1x8x32xbf16>
    %59 = vector.shape_cast %58 : vector<1x8x32xbf16> to vector<8x32xbf16>
    %cst_53 = arith.constant dense<0.000000e+00> : vector<8x4xf32>
    %60 = tpu.matmul %59, %0, %cst_53 {dimension_numbers = #tpu.dot_dimension_numbers<[1], [0], [0], [1], [0, 0, 1, 1], [], []>} : vector<8x32xbf16>, vector<32x4xbf16>, vector<8x4xf32> -> vector<8x4xf32>
    %61 = arith.truncf %60 : vector<8x4xf32> to vector<8x4xbf16>
    %c7_54 = arith.constant 7 : index
    %c0_55 = arith.constant 0 : index
    %c0_56 = arith.constant 0 : index
    %62 = vector.load %arg4[%c7_54, %c0_55, %c0_56] : memref<49x4x128xbf16, #tpu.memory_space<vmem>>, vector<1x4x128xbf16>
    %63 = vector.shape_cast %62 : vector<1x4x128xbf16> to vector<4x128xbf16>
    %cst_57 = arith.constant dense<0.000000e+00> : vector<8x128xf32>
    %64 = tpu.matmul %61, %63, %cst_57 {dimension_numbers = #tpu.dot_dimension_numbers<[1], [0], [0], [1], [0, 0, 1, 1], [], []>} : vector<8x4xbf16>, vector<4x128xbf16>, vector<8x128xf32> -> vector<8x128xf32>
    %65 = arith.addf %57, %64 : vector<8x128xf32>
    %c8 = arith.constant 8 : index
    %c0_58 = arith.constant 0 : index
    %c0_59 = arith.constant 0 : index
    %66 = vector.load %arg2[%c8, %c0_58, %c0_59] : memref<49x8x32xbf16, #tpu.memory_space<vmem>>, vector<1x8x32xbf16>
    %67 = vector.shape_cast %66 : vector<1x8x32xbf16> to vector<8x32xbf16>
    %cst_60 = arith.constant dense<0.000000e+00> : vector<8x4xf32>
    %68 = tpu.matmul %67, %0, %cst_60 {dimension_numbers = #tpu.dot_dimension_numbers<[1], [0], [0], [1], [0, 0, 1, 1], [], []>} : vector<8x32xbf16>, vector<32x4xbf16>, vector<8x4xf32> -> vector<8x4xf32>
    %69 = arith.truncf %68 : vector<8x4xf32> to vector<8x4xbf16>
    %c8_61 = arith.constant 8 : index
    %c0_62 = arith.constant 0 : index
    %c0_63 = arith.constant 0 : index
    %70 = vector.load %arg4[%c8_61, %c0_62, %c0_63] : memref<49x4x128xbf16, #tpu.memory_space<vmem>>, vector<1x4x128xbf16>
    %71 = vector.shape_cast %70 : vector<1x4x128xbf16> to vector<4x128xbf16>
    %cst_64 = arith.constant dense<0.000000e+00> : vector<8x128xf32>
    %72 = tpu.matmul %69, %71, %cst_64 {dimension_numbers = #tpu.dot_dimension_numbers<[1], [0], [0], [1], [0, 0, 1, 1], [], []>} : vector<8x4xbf16>, vector<4x128xbf16>, vector<8x128xf32> -> vector<8x128xf32>
    %73 = arith.addf %65, %72 : vector<8x128xf32>
    %c9 = arith.constant 9 : index
    %c0_65 = arith.constant 0 : index
    %c0_66 = arith.constant 0 : index
    %74 = vector.load %arg2[%c9, %c0_65, %c0_66] : memref<49x8x32xbf16, #tpu.memory_space<vmem>>, vector<1x8x32xbf16>
    %75 = vector.shape_cast %74 : vector<1x8x32xbf16> to vector<8x32xbf16>
    %cst_67 = arith.constant dense<0.000000e+00> : vector<8x4xf32>
    %76 = tpu.matmul %75, %0, %cst_67 {dimension_numbers = #tpu.dot_dimension_numbers<[1], [0], [0], [1], [0, 0, 1, 1], [], []>} : vector<8x32xbf16>, vector<32x4xbf16>, vector<8x4xf32> -> vector<8x4xf32>
    %77 = arith.truncf %76 : vector<8x4xf32> to vector<8x4xbf16>
    %c9_68 = arith.constant 9 : index
    %c0_69 = arith.constant 0 : index
    %c0_70 = arith.constant 0 : index
    %78 = vector.load %arg4[%c9_68, %c0_69, %c0_70] : memref<49x4x128xbf16, #tpu.memory_space<vmem>>, vector<1x4x128xbf16>
    %79 = vector.shape_cast %78 : vector<1x4x128xbf16> to vector<4x128xbf16>
    %cst_71 = arith.constant dense<0.000000e+00> : vector<8x128xf32>
    %80 = tpu.matmul %77, %79, %cst_71 {dimension_numbers = #tpu.dot_dimension_numbers<[1], [0], [0], [1], [0, 0, 1, 1], [], []>} : vector<8x4xbf16>, vector<4x128xbf16>, vector<8x128xf32> -> vector<8x128xf32>
    %81 = arith.addf %73, %80 : vector<8x128xf32>
    %c10 = arith.constant 10 : index
    %c0_72 = arith.constant 0 : index
    %c0_73 = arith.constant 0 : index
    %82 = vector.load %arg2[%c10, %c0_72, %c0_73] : memref<49x8x32xbf16, #tpu.memory_space<vmem>>, vector<1x8x32xbf16>
    %83 = vector.shape_cast %82 : vector<1x8x32xbf16> to vector<8x32xbf16>
    %cst_74 = arith.constant dense<0.000000e+00> : vector<8x4xf32>
    %84 = tpu.matmul %83, %0, %cst_74 {dimension_numbers = #tpu.dot_dimension_numbers<[1], [0], [0], [1], [0, 0, 1, 1], [], []>} : vector<8x32xbf16>, vector<32x4xbf16>, vector<8x4xf32> -> vector<8x4xf32>
    %85 = arith.truncf %84 : vector<8x4xf32> to vector<8x4xbf16>
    %c10_75 = arith.constant 10 : index
    %c0_76 = arith.constant 0 : index
    %c0_77 = arith.constant 0 : index
    %86 = vector.load %arg4[%c10_75, %c0_76, %c0_77] : memref<49x4x128xbf16, #tpu.memory_space<vmem>>, vector<1x4x128xbf16>
    %87 = vector.shape_cast %86 : vector<1x4x128xbf16> to vector<4x128xbf16>
    %cst_78 = arith.constant dense<0.000000e+00> : vector<8x128xf32>
    %88 = tpu.matmul %85, %87, %cst_78 {dimension_numbers = #tpu.dot_dimension_numbers<[1], [0], [0], [1], [0, 0, 1, 1], [], []>} : vector<8x4xbf16>, vector<4x128xbf16>, vector<8x128xf32> -> vector<8x128xf32>
    %89 = arith.addf %81, %88 : vector<8x128xf32>
    %c11 = arith.constant 11 : index
    %c0_79 = arith.constant 0 : index
    %c0_80 = arith.constant 0 : index
    %90 = vector.load %arg2[%c11, %c0_79, %c0_80] : memref<49x8x32xbf16, #tpu.memory_space<vmem>>, vector<1x8x32xbf16>
    %91 = vector.shape_cast %90 : vector<1x8x32xbf16> to vector<8x32xbf16>
    %cst_81 = arith.constant dense<0.000000e+00> : vector<8x4xf32>
    %92 = tpu.matmul %91, %0, %cst_81 {dimension_numbers = #tpu.dot_dimension_numbers<[1], [0], [0], [1], [0, 0, 1, 1], [], []>} : vector<8x32xbf16>, vector<32x4xbf16>, vector<8x4xf32> -> vector<8x4xf32>
    %93 = arith.truncf %92 : vector<8x4xf32> to vector<8x4xbf16>
    %c11_82 = arith.constant 11 : index
    %c0_83 = arith.constant 0 : index
    %c0_84 = arith.constant 0 : index
    %94 = vector.load %arg4[%c11_82, %c0_83, %c0_84] : memref<49x4x128xbf16, #tpu.memory_space<vmem>>, vector<1x4x128xbf16>
    %95 = vector.shape_cast %94 : vector<1x4x128xbf16> to vector<4x128xbf16>
    %cst_85 = arith.constant dense<0.000000e+00> : vector<8x128xf32>
    %96 = tpu.matmul %93, %95, %cst_85 {dimension_numbers = #tpu.dot_dimension_numbers<[1], [0], [0], [1], [0, 0, 1, 1], [], []>} : vector<8x4xbf16>, vector<4x128xbf16>, vector<8x128xf32> -> vector<8x128xf32>
    %97 = arith.addf %89, %96 : vector<8x128xf32>
    %c12 = arith.constant 12 : index
    %c0_86 = arith.constant 0 : index
    %c0_87 = arith.constant 0 : index
    %98 = vector.load %arg2[%c12, %c0_86, %c0_87] : memref<49x8x32xbf16, #tpu.memory_space<vmem>>, vector<1x8x32xbf16>
    %99 = vector.shape_cast %98 : vector<1x8x32xbf16> to vector<8x32xbf16>
    %cst_88 = arith.constant dense<0.000000e+00> : vector<8x4xf32>
    %100 = tpu.matmul %99, %0, %cst_88 {dimension_numbers = #tpu.dot_dimension_numbers<[1], [0], [0], [1], [0, 0, 1, 1], [], []>} : vector<8x32xbf16>, vector<32x4xbf16>, vector<8x4xf32> -> vector<8x4xf32>
    %101 = arith.truncf %100 : vector<8x4xf32> to vector<8x4xbf16>
    %c12_89 = arith.constant 12 : index
    %c0_90 = arith.constant 0 : index
    %c0_91 = arith.constant 0 : index
    %102 = vector.load %arg4[%c12_89, %c0_90, %c0_91] : memref<49x4x128xbf16, #tpu.memory_space<vmem>>, vector<1x4x128xbf16>
    %103 = vector.shape_cast %102 : vector<1x4x128xbf16> to vector<4x128xbf16>
    %cst_92 = arith.constant dense<0.000000e+00> : vector<8x128xf32>
    %104 = tpu.matmul %101, %103, %cst_92 {dimension_numbers = #tpu.dot_dimension_numbers<[1], [0], [0], [1], [0, 0, 1, 1], [], []>} : vector<8x4xbf16>, vector<4x128xbf16>, vector<8x128xf32> -> vector<8x128xf32>
    %105 = arith.addf %97, %104 : vector<8x128xf32>
    %c13 = arith.constant 13 : index
    %c0_93 = arith.constant 0 : index
    %c0_94 = arith.constant 0 : index
    %106 = vector.load %arg2[%c13, %c0_93, %c0_94] : memref<49x8x32xbf16, #tpu.memory_space<vmem>>, vector<1x8x32xbf16>
    %107 = vector.shape_cast %106 : vector<1x8x32xbf16> to vector<8x32xbf16>
    %cst_95 = arith.constant dense<0.000000e+00> : vector<8x4xf32>
    %108 = tpu.matmul %107, %0, %cst_95 {dimension_numbers = #tpu.dot_dimension_numbers<[1], [0], [0], [1], [0, 0, 1, 1], [], []>} : vector<8x32xbf16>, vector<32x4xbf16>, vector<8x4xf32> -> vector<8x4xf32>
    %109 = arith.truncf %108 : vector<8x4xf32> to vector<8x4xbf16>
    %c13_96 = arith.constant 13 : index
    %c0_97 = arith.constant 0 : index
    %c0_98 = arith.constant 0 : index
    %110 = vector.load %arg4[%c13_96, %c0_97, %c0_98] : memref<49x4x128xbf16, #tpu.memory_space<vmem>>, vector<1x4x128xbf16>
    %111 = vector.shape_cast %110 : vector<1x4x128xbf16> to vector<4x128xbf16>
    %cst_99 = arith.constant dense<0.000000e+00> : vector<8x128xf32>
    %112 = tpu.matmul %109, %111, %cst_99 {dimension_numbers = #tpu.dot_dimension_numbers<[1], [0], [0], [1], [0, 0, 1, 1], [], []>} : vector<8x4xbf16>, vector<4x128xbf16>, vector<8x128xf32> -> vector<8x128xf32>
    %113 = arith.addf %105, %112 : vector<8x128xf32>
    %c14 = arith.constant 14 : index
    %c0_100 = arith.constant 0 : index
    %c0_101 = arith.constant 0 : index
    %114 = vector.load %arg2[%c14, %c0_100, %c0_101] : memref<49x8x32xbf16, #tpu.memory_space<vmem>>, vector<1x8x32xbf16>
    %115 = vector.shape_cast %114 : vector<1x8x32xbf16> to vector<8x32xbf16>
    %cst_102 = arith.constant dense<0.000000e+00> : vector<8x4xf32>
    %116 = tpu.matmul %115, %0, %cst_102 {dimension_numbers = #tpu.dot_dimension_numbers<[1], [0], [0], [1], [0, 0, 1, 1], [], []>} : vector<8x32xbf16>, vector<32x4xbf16>, vector<8x4xf32> -> vector<8x4xf32>
    %117 = arith.truncf %116 : vector<8x4xf32> to vector<8x4xbf16>
    %c14_103 = arith.constant 14 : index
    %c0_104 = arith.constant 0 : index
    %c0_105 = arith.constant 0 : index
    %118 = vector.load %arg4[%c14_103, %c0_104, %c0_105] : memref<49x4x128xbf16, #tpu.memory_space<vmem>>, vector<1x4x128xbf16>
    %119 = vector.shape_cast %118 : vector<1x4x128xbf16> to vector<4x128xbf16>
    %cst_106 = arith.constant dense<0.000000e+00> : vector<8x128xf32>
    %120 = tpu.matmul %117, %119, %cst_106 {dimension_numbers = #tpu.dot_dimension_numbers<[1], [0], [0], [1], [0, 0, 1, 1], [], []>} : vector<8x4xbf16>, vector<4x128xbf16>, vector<8x128xf32> -> vector<8x128xf32>
    %121 = arith.addf %113, %120 : vector<8x128xf32>
    %c15 = arith.constant 15 : index
    %c0_107 = arith.constant 0 : index
    %c0_108 = arith.constant 0 : index
    %122 = vector.load %arg2[%c15, %c0_107, %c0_108] : memref<49x8x32xbf16, #tpu.memory_space<vmem>>, vector<1x8x32xbf16>
    %123 = vector.shape_cast %122 : vector<1x8x32xbf16> to vector<8x32xbf16>
    %cst_109 = arith.constant dense<0.000000e+00> : vector<8x4xf32>
    %124 = tpu.matmul %123, %0, %cst_109 {dimension_numbers = #tpu.dot_dimension_numbers<[1], [0], [0], [1], [0, 0, 1, 1], [], []>} : vector<8x32xbf16>, vector<32x4xbf16>, vector<8x4xf32> -> vector<8x4xf32>
    %125 = arith.truncf %124 : vector<8x4xf32> to vector<8x4xbf16>
    %c15_110 = arith.constant 15 : index
    %c0_111 = arith.constant 0 : index
    %c0_112 = arith.constant 0 : index
    %126 = vector.load %arg4[%c15_110, %c0_111, %c0_112] : memref<49x4x128xbf16, #tpu.memory_space<vmem>>, vector<1x4x128xbf16>
    %127 = vector.shape_cast %126 : vector<1x4x128xbf16> to vector<4x128xbf16>
    %cst_113 = arith.constant dense<0.000000e+00> : vector<8x128xf32>
    %128 = tpu.matmul %125, %127, %cst_113 {dimension_numbers = #tpu.dot_dimension_numbers<[1], [0], [0], [1], [0, 0, 1, 1], [], []>} : vector<8x4xbf16>, vector<4x128xbf16>, vector<8x128xf32> -> vector<8x128xf32>
    %129 = arith.addf %121, %128 : vector<8x128xf32>
    %c16 = arith.constant 16 : index
    %c0_114 = arith.constant 0 : index
    %c0_115 = arith.constant 0 : index
    %130 = vector.load %arg2[%c16, %c0_114, %c0_115] : memref<49x8x32xbf16, #tpu.memory_space<vmem>>, vector<1x8x32xbf16>
    %131 = vector.shape_cast %130 : vector<1x8x32xbf16> to vector<8x32xbf16>
    %cst_116 = arith.constant dense<0.000000e+00> : vector<8x4xf32>
    %132 = tpu.matmul %131, %0, %cst_116 {dimension_numbers = #tpu.dot_dimension_numbers<[1], [0], [0], [1], [0, 0, 1, 1], [], []>} : vector<8x32xbf16>, vector<32x4xbf16>, vector<8x4xf32> -> vector<8x4xf32>
    %133 = arith.truncf %132 : vector<8x4xf32> to vector<8x4xbf16>
    %c16_117 = arith.constant 16 : index
    %c0_118 = arith.constant 0 : index
    %c0_119 = arith.constant 0 : index
    %134 = vector.load %arg4[%c16_117, %c0_118, %c0_119] : memref<49x4x128xbf16, #tpu.memory_space<vmem>>, vector<1x4x128xbf16>
    %135 = vector.shape_cast %134 : vector<1x4x128xbf16> to vector<4x128xbf16>
    %cst_120 = arith.constant dense<0.000000e+00> : vector<8x128xf32>
    %136 = tpu.matmul %133, %135, %cst_120 {dimension_numbers = #tpu.dot_dimension_numbers<[1], [0], [0], [1], [0, 0, 1, 1], [], []>} : vector<8x4xbf16>, vector<4x128xbf16>, vector<8x128xf32> -> vector<8x128xf32>
    %137 = arith.addf %129, %136 : vector<8x128xf32>
    %c17 = arith.constant 17 : index
    %c0_121 = arith.constant 0 : index
    %c0_122 = arith.constant 0 : index
    %138 = vector.load %arg2[%c17, %c0_121, %c0_122] : memref<49x8x32xbf16, #tpu.memory_space<vmem>>, vector<1x8x32xbf16>
    %139 = vector.shape_cast %138 : vector<1x8x32xbf16> to vector<8x32xbf16>
    %cst_123 = arith.constant dense<0.000000e+00> : vector<8x4xf32>
    %140 = tpu.matmul %139, %0, %cst_123 {dimension_numbers = #tpu.dot_dimension_numbers<[1], [0], [0], [1], [0, 0, 1, 1], [], []>} : vector<8x32xbf16>, vector<32x4xbf16>, vector<8x4xf32> -> vector<8x4xf32>
    %141 = arith.truncf %140 : vector<8x4xf32> to vector<8x4xbf16>
    %c17_124 = arith.constant 17 : index
    %c0_125 = arith.constant 0 : index
    %c0_126 = arith.constant 0 : index
    %142 = vector.load %arg4[%c17_124, %c0_125, %c0_126] : memref<49x4x128xbf16, #tpu.memory_space<vmem>>, vector<1x4x128xbf16>
    %143 = vector.shape_cast %142 : vector<1x4x128xbf16> to vector<4x128xbf16>
    %cst_127 = arith.constant dense<0.000000e+00> : vector<8x128xf32>
    %144 = tpu.matmul %141, %143, %cst_127 {dimension_numbers = #tpu.dot_dimension_numbers<[1], [0], [0], [1], [0, 0, 1, 1], [], []>} : vector<8x4xbf16>, vector<4x128xbf16>, vector<8x128xf32> -> vector<8x128xf32>
    %145 = arith.addf %137, %144 : vector<8x128xf32>
    %c18 = arith.constant 18 : index
    %c0_128 = arith.constant 0 : index
    %c0_129 = arith.constant 0 : index
    %146 = vector.load %arg2[%c18, %c0_128, %c0_129] : memref<49x8x32xbf16, #tpu.memory_space<vmem>>, vector<1x8x32xbf16>
    %147 = vector.shape_cast %146 : vector<1x8x32xbf16> to vector<8x32xbf16>
    %cst_130 = arith.constant dense<0.000000e+00> : vector<8x4xf32>
    %148 = tpu.matmul %147, %0, %cst_130 {dimension_numbers = #tpu.dot_dimension_numbers<[1], [0], [0], [1], [0, 0, 1, 1], [], []>} : vector<8x32xbf16>, vector<32x4xbf16>, vector<8x4xf32> -> vector<8x4xf32>
    %149 = arith.truncf %148 : vector<8x4xf32> to vector<8x4xbf16>
    %c18_131 = arith.constant 18 : index
    %c0_132 = arith.constant 0 : index
    %c0_133 = arith.constant 0 : index
    %150 = vector.load %arg4[%c18_131, %c0_132, %c0_133] : memref<49x4x128xbf16, #tpu.memory_space<vmem>>, vector<1x4x128xbf16>
    %151 = vector.shape_cast %150 : vector<1x4x128xbf16> to vector<4x128xbf16>
    %cst_134 = arith.constant dense<0.000000e+00> : vector<8x128xf32>
    %152 = tpu.matmul %149, %151, %cst_134 {dimension_numbers = #tpu.dot_dimension_numbers<[1], [0], [0], [1], [0, 0, 1, 1], [], []>} : vector<8x4xbf16>, vector<4x128xbf16>, vector<8x128xf32> -> vector<8x128xf32>
    %153 = arith.addf %145, %152 : vector<8x128xf32>
    %c19 = arith.constant 19 : index
    %c0_135 = arith.constant 0 : index
    %c0_136 = arith.constant 0 : index
    %154 = vector.load %arg2[%c19, %c0_135, %c0_136] : memref<49x8x32xbf16, #tpu.memory_space<vmem>>, vector<1x8x32xbf16>
    %155 = vector.shape_cast %154 : vector<1x8x32xbf16> to vector<8x32xbf16>
    %cst_137 = arith.constant dense<0.000000e+00> : vector<8x4xf32>
    %156 = tpu.matmul %155, %0, %cst_137 {dimension_numbers = #tpu.dot_dimension_numbers<[1], [0], [0], [1], [0, 0, 1, 1], [], []>} : vector<8x32xbf16>, vector<32x4xbf16>, vector<8x4xf32> -> vector<8x4xf32>
    %157 = arith.truncf %156 : vector<8x4xf32> to vector<8x4xbf16>
    %c19_138 = arith.constant 19 : index
    %c0_139 = arith.constant 0 : index
    %c0_140 = arith.constant 0 : index
    %158 = vector.load %arg4[%c19_138, %c0_139, %c0_140] : memref<49x4x128xbf16, #tpu.memory_space<vmem>>, vector<1x4x128xbf16>
    %159 = vector.shape_cast %158 : vector<1x4x128xbf16> to vector<4x128xbf16>
    %cst_141 = arith.constant dense<0.000000e+00> : vector<8x128xf32>
    %160 = tpu.matmul %157, %159, %cst_141 {dimension_numbers = #tpu.dot_dimension_numbers<[1], [0], [0], [1], [0, 0, 1, 1], [], []>} : vector<8x4xbf16>, vector<4x128xbf16>, vector<8x128xf32> -> vector<8x128xf32>
    %161 = arith.addf %153, %160 : vector<8x128xf32>
    %c20 = arith.constant 20 : index
    %c0_142 = arith.constant 0 : index
    %c0_143 = arith.constant 0 : index
    %162 = vector.load %arg2[%c20, %c0_142, %c0_143] : memref<49x8x32xbf16, #tpu.memory_space<vmem>>, vector<1x8x32xbf16>
    %163 = vector.shape_cast %162 : vector<1x8x32xbf16> to vector<8x32xbf16>
    %cst_144 = arith.constant dense<0.000000e+00> : vector<8x4xf32>
    %164 = tpu.matmul %163, %0, %cst_144 {dimension_numbers = #tpu.dot_dimension_numbers<[1], [0], [0], [1], [0, 0, 1, 1], [], []>} : vector<8x32xbf16>, vector<32x4xbf16>, vector<8x4xf32> -> vector<8x4xf32>
    %165 = arith.truncf %164 : vector<8x4xf32> to vector<8x4xbf16>
    %c20_145 = arith.constant 20 : index
    %c0_146 = arith.constant 0 : index
    %c0_147 = arith.constant 0 : index
    %166 = vector.load %arg4[%c20_145, %c0_146, %c0_147] : memref<49x4x128xbf16, #tpu.memory_space<vmem>>, vector<1x4x128xbf16>
    %167 = vector.shape_cast %166 : vector<1x4x128xbf16> to vector<4x128xbf16>
    %cst_148 = arith.constant dense<0.000000e+00> : vector<8x128xf32>
    %168 = tpu.matmul %165, %167, %cst_148 {dimension_numbers = #tpu.dot_dimension_numbers<[1], [0], [0], [1], [0, 0, 1, 1], [], []>} : vector<8x4xbf16>, vector<4x128xbf16>, vector<8x128xf32> -> vector<8x128xf32>
    %169 = arith.addf %161, %168 : vector<8x128xf32>
    %c21 = arith.constant 21 : index
    %c0_149 = arith.constant 0 : index
    %c0_150 = arith.constant 0 : index
    %170 = vector.load %arg2[%c21, %c0_149, %c0_150] : memref<49x8x32xbf16, #tpu.memory_space<vmem>>, vector<1x8x32xbf16>
    %171 = vector.shape_cast %170 : vector<1x8x32xbf16> to vector<8x32xbf16>
    %cst_151 = arith.constant dense<0.000000e+00> : vector<8x4xf32>
    %172 = tpu.matmul %171, %0, %cst_151 {dimension_numbers = #tpu.dot_dimension_numbers<[1], [0], [0], [1], [0, 0, 1, 1], [], []>} : vector<8x32xbf16>, vector<32x4xbf16>, vector<8x4xf32> -> vector<8x4xf32>
    %173 = arith.truncf %172 : vector<8x4xf32> to vector<8x4xbf16>
    %c21_152 = arith.constant 21 : index
    %c0_153 = arith.constant 0 : index
    %c0_154 = arith.constant 0 : index
    %174 = vector.load %arg4[%c21_152, %c0_153, %c0_154] : memref<49x4x128xbf16, #tpu.memory_space<vmem>>, vector<1x4x128xbf16>
    %175 = vector.shape_cast %174 : vector<1x4x128xbf16> to vector<4x128xbf16>
    %cst_155 = arith.constant dense<0.000000e+00> : vector<8x128xf32>
    %176 = tpu.matmul %173, %175, %cst_155 {dimension_numbers = #tpu.dot_dimension_numbers<[1], [0], [0], [1], [0, 0, 1, 1], [], []>} : vector<8x4xbf16>, vector<4x128xbf16>, vector<8x128xf32> -> vector<8x128xf32>
    %177 = arith.addf %169, %176 : vector<8x128xf32>
    %c22 = arith.constant 22 : index
    %c0_156 = arith.constant 0 : index
    %c0_157 = arith.constant 0 : index
    %178 = vector.load %arg2[%c22, %c0_156, %c0_157] : memref<49x8x32xbf16, #tpu.memory_space<vmem>>, vector<1x8x32xbf16>
    %179 = vector.shape_cast %178 : vector<1x8x32xbf16> to vector<8x32xbf16>
    %cst_158 = arith.constant dense<0.000000e+00> : vector<8x4xf32>
    %180 = tpu.matmul %179, %0, %cst_158 {dimension_numbers = #tpu.dot_dimension_numbers<[1], [0], [0], [1], [0, 0, 1, 1], [], []>} : vector<8x32xbf16>, vector<32x4xbf16>, vector<8x4xf32> -> vector<8x4xf32>
    %181 = arith.truncf %180 : vector<8x4xf32> to vector<8x4xbf16>
    %c22_159 = arith.constant 22 : index
    %c0_160 = arith.constant 0 : index
    %c0_161 = arith.constant 0 : index
    %182 = vector.load %arg4[%c22_159, %c0_160, %c0_161] : memref<49x4x128xbf16, #tpu.memory_space<vmem>>, vector<1x4x128xbf16>
    %183 = vector.shape_cast %182 : vector<1x4x128xbf16> to vector<4x128xbf16>
    %cst_162 = arith.constant dense<0.000000e+00> : vector<8x128xf32>
    %184 = tpu.matmul %181, %183, %cst_162 {dimension_numbers = #tpu.dot_dimension_numbers<[1], [0], [0], [1], [0, 0, 1, 1], [], []>} : vector<8x4xbf16>, vector<4x128xbf16>, vector<8x128xf32> -> vector<8x128xf32>
    %185 = arith.addf %177, %184 : vector<8x128xf32>
    %c23 = arith.constant 23 : index
    %c0_163 = arith.constant 0 : index
    %c0_164 = arith.constant 0 : index
    %186 = vector.load %arg2[%c23, %c0_163, %c0_164] : memref<49x8x32xbf16, #tpu.memory_space<vmem>>, vector<1x8x32xbf16>
    %187 = vector.shape_cast %186 : vector<1x8x32xbf16> to vector<8x32xbf16>
    %cst_165 = arith.constant dense<0.000000e+00> : vector<8x4xf32>
    %188 = tpu.matmul %187, %0, %cst_165 {dimension_numbers = #tpu.dot_dimension_numbers<[1], [0], [0], [1], [0, 0, 1, 1], [], []>} : vector<8x32xbf16>, vector<32x4xbf16>, vector<8x4xf32> -> vector<8x4xf32>
    %189 = arith.truncf %188 : vector<8x4xf32> to vector<8x4xbf16>
    %c23_166 = arith.constant 23 : index
    %c0_167 = arith.constant 0 : index
    %c0_168 = arith.constant 0 : index
    %190 = vector.load %arg4[%c23_166, %c0_167, %c0_168] : memref<49x4x128xbf16, #tpu.memory_space<vmem>>, vector<1x4x128xbf16>
    %191 = vector.shape_cast %190 : vector<1x4x128xbf16> to vector<4x128xbf16>
    %cst_169 = arith.constant dense<0.000000e+00> : vector<8x128xf32>
    %192 = tpu.matmul %189, %191, %cst_169 {dimension_numbers = #tpu.dot_dimension_numbers<[1], [0], [0], [1], [0, 0, 1, 1], [], []>} : vector<8x4xbf16>, vector<4x128xbf16>, vector<8x128xf32> -> vector<8x128xf32>
    %193 = arith.addf %185, %192 : vector<8x128xf32>
    %c24 = arith.constant 24 : index
    %c0_170 = arith.constant 0 : index
    %c0_171 = arith.constant 0 : index
    %194 = vector.load %arg2[%c24, %c0_170, %c0_171] : memref<49x8x32xbf16, #tpu.memory_space<vmem>>, vector<1x8x32xbf16>
    %195 = vector.shape_cast %194 : vector<1x8x32xbf16> to vector<8x32xbf16>
    %cst_172 = arith.constant dense<0.000000e+00> : vector<8x4xf32>
    %196 = tpu.matmul %195, %0, %cst_172 {dimension_numbers = #tpu.dot_dimension_numbers<[1], [0], [0], [1], [0, 0, 1, 1], [], []>} : vector<8x32xbf16>, vector<32x4xbf16>, vector<8x4xf32> -> vector<8x4xf32>
    %197 = arith.truncf %196 : vector<8x4xf32> to vector<8x4xbf16>
    %c24_173 = arith.constant 24 : index
    %c0_174 = arith.constant 0 : index
    %c0_175 = arith.constant 0 : index
    %198 = vector.load %arg4[%c24_173, %c0_174, %c0_175] : memref<49x4x128xbf16, #tpu.memory_space<vmem>>, vector<1x4x128xbf16>
    %199 = vector.shape_cast %198 : vector<1x4x128xbf16> to vector<4x128xbf16>
    %cst_176 = arith.constant dense<0.000000e+00> : vector<8x128xf32>
    %200 = tpu.matmul %197, %199, %cst_176 {dimension_numbers = #tpu.dot_dimension_numbers<[1], [0], [0], [1], [0, 0, 1, 1], [], []>} : vector<8x4xbf16>, vector<4x128xbf16>, vector<8x128xf32> -> vector<8x128xf32>
    %201 = arith.addf %193, %200 : vector<8x128xf32>
    %c25 = arith.constant 25 : index
    %c0_177 = arith.constant 0 : index
    %c0_178 = arith.constant 0 : index
    %202 = vector.load %arg2[%c25, %c0_177, %c0_178] : memref<49x8x32xbf16, #tpu.memory_space<vmem>>, vector<1x8x32xbf16>
    %203 = vector.shape_cast %202 : vector<1x8x32xbf16> to vector<8x32xbf16>
    %cst_179 = arith.constant dense<0.000000e+00> : vector<8x4xf32>
    %204 = tpu.matmul %203, %0, %cst_179 {dimension_numbers = #tpu.dot_dimension_numbers<[1], [0], [0], [1], [0, 0, 1, 1], [], []>} : vector<8x32xbf16>, vector<32x4xbf16>, vector<8x4xf32> -> vector<8x4xf32>
    %205 = arith.truncf %204 : vector<8x4xf32> to vector<8x4xbf16>
    %c25_180 = arith.constant 25 : index
    %c0_181 = arith.constant 0 : index
    %c0_182 = arith.constant 0 : index
    %206 = vector.load %arg4[%c25_180, %c0_181, %c0_182] : memref<49x4x128xbf16, #tpu.memory_space<vmem>>, vector<1x4x128xbf16>
    %207 = vector.shape_cast %206 : vector<1x4x128xbf16> to vector<4x128xbf16>
    %cst_183 = arith.constant dense<0.000000e+00> : vector<8x128xf32>
    %208 = tpu.matmul %205, %207, %cst_183 {dimension_numbers = #tpu.dot_dimension_numbers<[1], [0], [0], [1], [0, 0, 1, 1], [], []>} : vector<8x4xbf16>, vector<4x128xbf16>, vector<8x128xf32> -> vector<8x128xf32>
    %209 = arith.addf %201, %208 : vector<8x128xf32>
    %c26 = arith.constant 26 : index
    %c0_184 = arith.constant 0 : index
    %c0_185 = arith.constant 0 : index
    %210 = vector.load %arg2[%c26, %c0_184, %c0_185] : memref<49x8x32xbf16, #tpu.memory_space<vmem>>, vector<1x8x32xbf16>
    %211 = vector.shape_cast %210 : vector<1x8x32xbf16> to vector<8x32xbf16>
    %cst_186 = arith.constant dense<0.000000e+00> : vector<8x4xf32>
    %212 = tpu.matmul %211, %0, %cst_186 {dimension_numbers = #tpu.dot_dimension_numbers<[1], [0], [0], [1], [0, 0, 1, 1], [], []>} : vector<8x32xbf16>, vector<32x4xbf16>, vector<8x4xf32> -> vector<8x4xf32>
    %213 = arith.truncf %212 : vector<8x4xf32> to vector<8x4xbf16>
    %c26_187 = arith.constant 26 : index
    %c0_188 = arith.constant 0 : index
    %c0_189 = arith.constant 0 : index
    %214 = vector.load %arg4[%c26_187, %c0_188, %c0_189] : memref<49x4x128xbf16, #tpu.memory_space<vmem>>, vector<1x4x128xbf16>
    %215 = vector.shape_cast %214 : vector<1x4x128xbf16> to vector<4x128xbf16>
    %cst_190 = arith.constant dense<0.000000e+00> : vector<8x128xf32>
    %216 = tpu.matmul %213, %215, %cst_190 {dimension_numbers = #tpu.dot_dimension_numbers<[1], [0], [0], [1], [0, 0, 1, 1], [], []>} : vector<8x4xbf16>, vector<4x128xbf16>, vector<8x128xf32> -> vector<8x128xf32>
    %217 = arith.addf %209, %216 : vector<8x128xf32>
    %c27 = arith.constant 27 : index
    %c0_191 = arith.constant 0 : index
    %c0_192 = arith.constant 0 : index
    %218 = vector.load %arg2[%c27, %c0_191, %c0_192] : memref<49x8x32xbf16, #tpu.memory_space<vmem>>, vector<1x8x32xbf16>
    %219 = vector.shape_cast %218 : vector<1x8x32xbf16> to vector<8x32xbf16>
    %cst_193 = arith.constant dense<0.000000e+00> : vector<8x4xf32>
    %220 = tpu.matmul %219, %0, %cst_193 {dimension_numbers = #tpu.dot_dimension_numbers<[1], [0], [0], [1], [0, 0, 1, 1], [], []>} : vector<8x32xbf16>, vector<32x4xbf16>, vector<8x4xf32> -> vector<8x4xf32>
    %221 = arith.truncf %220 : vector<8x4xf32> to vector<8x4xbf16>
    %c27_194 = arith.constant 27 : index
    %c0_195 = arith.constant 0 : index
    %c0_196 = arith.constant 0 : index
    %222 = vector.load %arg4[%c27_194, %c0_195, %c0_196] : memref<49x4x128xbf16, #tpu.memory_space<vmem>>, vector<1x4x128xbf16>
    %223 = vector.shape_cast %222 : vector<1x4x128xbf16> to vector<4x128xbf16>
    %cst_197 = arith.constant dense<0.000000e+00> : vector<8x128xf32>
    %224 = tpu.matmul %221, %223, %cst_197 {dimension_numbers = #tpu.dot_dimension_numbers<[1], [0], [0], [1], [0, 0, 1, 1], [], []>} : vector<8x4xbf16>, vector<4x128xbf16>, vector<8x128xf32> -> vector<8x128xf32>
    %225 = arith.addf %217, %224 : vector<8x128xf32>
    %c28 = arith.constant 28 : index
    %c0_198 = arith.constant 0 : index
    %c0_199 = arith.constant 0 : index
    %226 = vector.load %arg2[%c28, %c0_198, %c0_199] : memref<49x8x32xbf16, #tpu.memory_space<vmem>>, vector<1x8x32xbf16>
    %227 = vector.shape_cast %226 : vector<1x8x32xbf16> to vector<8x32xbf16>
    %cst_200 = arith.constant dense<0.000000e+00> : vector<8x4xf32>
    %228 = tpu.matmul %227, %0, %cst_200 {dimension_numbers = #tpu.dot_dimension_numbers<[1], [0], [0], [1], [0, 0, 1, 1], [], []>} : vector<8x32xbf16>, vector<32x4xbf16>, vector<8x4xf32> -> vector<8x4xf32>
    %229 = arith.truncf %228 : vector<8x4xf32> to vector<8x4xbf16>
    %c28_201 = arith.constant 28 : index
    %c0_202 = arith.constant 0 : index
    %c0_203 = arith.constant 0 : index
    %230 = vector.load %arg4[%c28_201, %c0_202, %c0_203] : memref<49x4x128xbf16, #tpu.memory_space<vmem>>, vector<1x4x128xbf16>
    %231 = vector.shape_cast %230 : vector<1x4x128xbf16> to vector<4x128xbf16>
    %cst_204 = arith.constant dense<0.000000e+00> : vector<8x128xf32>
    %232 = tpu.matmul %229, %231, %cst_204 {dimension_numbers = #tpu.dot_dimension_numbers<[1], [0], [0], [1], [0, 0, 1, 1], [], []>} : vector<8x4xbf16>, vector<4x128xbf16>, vector<8x128xf32> -> vector<8x128xf32>
    %233 = arith.addf %225, %232 : vector<8x128xf32>
    %c29 = arith.constant 29 : index
    %c0_205 = arith.constant 0 : index
    %c0_206 = arith.constant 0 : index
    %234 = vector.load %arg2[%c29, %c0_205, %c0_206] : memref<49x8x32xbf16, #tpu.memory_space<vmem>>, vector<1x8x32xbf16>
    %235 = vector.shape_cast %234 : vector<1x8x32xbf16> to vector<8x32xbf16>
    %cst_207 = arith.constant dense<0.000000e+00> : vector<8x4xf32>
    %236 = tpu.matmul %235, %0, %cst_207 {dimension_numbers = #tpu.dot_dimension_numbers<[1], [0], [0], [1], [0, 0, 1, 1], [], []>} : vector<8x32xbf16>, vector<32x4xbf16>, vector<8x4xf32> -> vector<8x4xf32>
    %237 = arith.truncf %236 : vector<8x4xf32> to vector<8x4xbf16>
    %c29_208 = arith.constant 29 : index
    %c0_209 = arith.constant 0 : index
    %c0_210 = arith.constant 0 : index
    %238 = vector.load %arg4[%c29_208, %c0_209, %c0_210] : memref<49x4x128xbf16, #tpu.memory_space<vmem>>, vector<1x4x128xbf16>
    %239 = vector.shape_cast %238 : vector<1x4x128xbf16> to vector<4x128xbf16>
    %cst_211 = arith.constant dense<0.000000e+00> : vector<8x128xf32>
    %240 = tpu.matmul %237, %239, %cst_211 {dimension_numbers = #tpu.dot_dimension_numbers<[1], [0], [0], [1], [0, 0, 1, 1], [], []>} : vector<8x4xbf16>, vector<4x128xbf16>, vector<8x128xf32> -> vector<8x128xf32>
    %241 = arith.addf %233, %240 : vector<8x128xf32>
    %c30 = arith.constant 30 : index
    %c0_212 = arith.constant 0 : index
    %c0_213 = arith.constant 0 : index
    %242 = vector.load %arg2[%c30, %c0_212, %c0_213] : memref<49x8x32xbf16, #tpu.memory_space<vmem>>, vector<1x8x32xbf16>
    %243 = vector.shape_cast %242 : vector<1x8x32xbf16> to vector<8x32xbf16>
    %cst_214 = arith.constant dense<0.000000e+00> : vector<8x4xf32>
    %244 = tpu.matmul %243, %0, %cst_214 {dimension_numbers = #tpu.dot_dimension_numbers<[1], [0], [0], [1], [0, 0, 1, 1], [], []>} : vector<8x32xbf16>, vector<32x4xbf16>, vector<8x4xf32> -> vector<8x4xf32>
    %245 = arith.truncf %244 : vector<8x4xf32> to vector<8x4xbf16>
    %c30_215 = arith.constant 30 : index
    %c0_216 = arith.constant 0 : index
    %c0_217 = arith.constant 0 : index
    %246 = vector.load %arg4[%c30_215, %c0_216, %c0_217] : memref<49x4x128xbf16, #tpu.memory_space<vmem>>, vector<1x4x128xbf16>
    %247 = vector.shape_cast %246 : vector<1x4x128xbf16> to vector<4x128xbf16>
    %cst_218 = arith.constant dense<0.000000e+00> : vector<8x128xf32>
    %248 = tpu.matmul %245, %247, %cst_218 {dimension_numbers = #tpu.dot_dimension_numbers<[1], [0], [0], [1], [0, 0, 1, 1], [], []>} : vector<8x4xbf16>, vector<4x128xbf16>, vector<8x128xf32> -> vector<8x128xf32>
    %249 = arith.addf %241, %248 : vector<8x128xf32>
    %c31 = arith.constant 31 : index
    %c0_219 = arith.constant 0 : index
    %c0_220 = arith.constant 0 : index
    %250 = vector.load %arg2[%c31, %c0_219, %c0_220] : memref<49x8x32xbf16, #tpu.memory_space<vmem>>, vector<1x8x32xbf16>
    %251 = vector.shape_cast %250 : vector<1x8x32xbf16> to vector<8x32xbf16>
    %cst_221 = arith.constant dense<0.000000e+00> : vector<8x4xf32>
    %252 = tpu.matmul %251, %0, %cst_221 {dimension_numbers = #tpu.dot_dimension_numbers<[1], [0], [0], [1], [0, 0, 1, 1], [], []>} : vector<8x32xbf16>, vector<32x4xbf16>, vector<8x4xf32> -> vector<8x4xf32>
    %253 = arith.truncf %252 : vector<8x4xf32> to vector<8x4xbf16>
    %c31_222 = arith.constant 31 : index
    %c0_223 = arith.constant 0 : index
    %c0_224 = arith.constant 0 : index
    %254 = vector.load %arg4[%c31_222, %c0_223, %c0_224] : memref<49x4x128xbf16, #tpu.memory_space<vmem>>, vector<1x4x128xbf16>
    %255 = vector.shape_cast %254 : vector<1x4x128xbf16> to vector<4x128xbf16>
    %cst_225 = arith.constant dense<0.000000e+00> : vector<8x128xf32>
    %256 = tpu.matmul %253, %255, %cst_225 {dimension_numbers = #tpu.dot_dimension_numbers<[1], [0], [0], [1], [0, 0, 1, 1], [], []>} : vector<8x4xbf16>, vector<4x128xbf16>, vector<8x128xf32> -> vector<8x128xf32>
    %257 = arith.addf %249, %256 : vector<8x128xf32>
    %c32 = arith.constant 32 : index
    %c0_226 = arith.constant 0 : index
    %c0_227 = arith.constant 0 : index
    %258 = vector.load %arg2[%c32, %c0_226, %c0_227] : memref<49x8x32xbf16, #tpu.memory_space<vmem>>, vector<1x8x32xbf16>
    %259 = vector.shape_cast %258 : vector<1x8x32xbf16> to vector<8x32xbf16>
    %cst_228 = arith.constant dense<0.000000e+00> : vector<8x4xf32>
    %260 = tpu.matmul %259, %0, %cst_228 {dimension_numbers = #tpu.dot_dimension_numbers<[1], [0], [0], [1], [0, 0, 1, 1], [], []>} : vector<8x32xbf16>, vector<32x4xbf16>, vector<8x4xf32> -> vector<8x4xf32>
    %261 = arith.truncf %260 : vector<8x4xf32> to vector<8x4xbf16>
    %c32_229 = arith.constant 32 : index
    %c0_230 = arith.constant 0 : index
    %c0_231 = arith.constant 0 : index
    %262 = vector.load %arg4[%c32_229, %c0_230, %c0_231] : memref<49x4x128xbf16, #tpu.memory_space<vmem>>, vector<1x4x128xbf16>
    %263 = vector.shape_cast %262 : vector<1x4x128xbf16> to vector<4x128xbf16>
    %cst_232 = arith.constant dense<0.000000e+00> : vector<8x128xf32>
    %264 = tpu.matmul %261, %263, %cst_232 {dimension_numbers = #tpu.dot_dimension_numbers<[1], [0], [0], [1], [0, 0, 1, 1], [], []>} : vector<8x4xbf16>, vector<4x128xbf16>, vector<8x128xf32> -> vector<8x128xf32>
    %265 = arith.addf %257, %264 : vector<8x128xf32>
    %c33 = arith.constant 33 : index
    %c0_233 = arith.constant 0 : index
    %c0_234 = arith.constant 0 : index
    %266 = vector.load %arg2[%c33, %c0_233, %c0_234] : memref<49x8x32xbf16, #tpu.memory_space<vmem>>, vector<1x8x32xbf16>
    %267 = vector.shape_cast %266 : vector<1x8x32xbf16> to vector<8x32xbf16>
    %cst_235 = arith.constant dense<0.000000e+00> : vector<8x4xf32>
    %268 = tpu.matmul %267, %0, %cst_235 {dimension_numbers = #tpu.dot_dimension_numbers<[1], [0], [0], [1], [0, 0, 1, 1], [], []>} : vector<8x32xbf16>, vector<32x4xbf16>, vector<8x4xf32> -> vector<8x4xf32>
    %269 = arith.truncf %268 : vector<8x4xf32> to vector<8x4xbf16>
    %c33_236 = arith.constant 33 : index
    %c0_237 = arith.constant 0 : index
    %c0_238 = arith.constant 0 : index
    %270 = vector.load %arg4[%c33_236, %c0_237, %c0_238] : memref<49x4x128xbf16, #tpu.memory_space<vmem>>, vector<1x4x128xbf16>
    %271 = vector.shape_cast %270 : vector<1x4x128xbf16> to vector<4x128xbf16>
    %cst_239 = arith.constant dense<0.000000e+00> : vector<8x128xf32>
    %272 = tpu.matmul %269, %271, %cst_239 {dimension_numbers = #tpu.dot_dimension_numbers<[1], [0], [0], [1], [0, 0, 1, 1], [], []>} : vector<8x4xbf16>, vector<4x128xbf16>, vector<8x128xf32> -> vector<8x128xf32>
    %273 = arith.addf %265, %272 : vector<8x128xf32>
    %c34 = arith.constant 34 : index
    %c0_240 = arith.constant 0 : index
    %c0_241 = arith.constant 0 : index
    %274 = vector.load %arg2[%c34, %c0_240, %c0_241] : memref<49x8x32xbf16, #tpu.memory_space<vmem>>, vector<1x8x32xbf16>
    %275 = vector.shape_cast %274 : vector<1x8x32xbf16> to vector<8x32xbf16>
    %cst_242 = arith.constant dense<0.000000e+00> : vector<8x4xf32>
    %276 = tpu.matmul %275, %0, %cst_242 {dimension_numbers = #tpu.dot_dimension_numbers<[1], [0], [0], [1], [0, 0, 1, 1], [], []>} : vector<8x32xbf16>, vector<32x4xbf16>, vector<8x4xf32> -> vector<8x4xf32>
    %277 = arith.truncf %276 : vector<8x4xf32> to vector<8x4xbf16>
    %c34_243 = arith.constant 34 : index
    %c0_244 = arith.constant 0 : index
    %c0_245 = arith.constant 0 : index
    %278 = vector.load %arg4[%c34_243, %c0_244, %c0_245] : memref<49x4x128xbf16, #tpu.memory_space<vmem>>, vector<1x4x128xbf16>
    %279 = vector.shape_cast %278 : vector<1x4x128xbf16> to vector<4x128xbf16>
    %cst_246 = arith.constant dense<0.000000e+00> : vector<8x128xf32>
    %280 = tpu.matmul %277, %279, %cst_246 {dimension_numbers = #tpu.dot_dimension_numbers<[1], [0], [0], [1], [0, 0, 1, 1], [], []>} : vector<8x4xbf16>, vector<4x128xbf16>, vector<8x128xf32> -> vector<8x128xf32>
    %281 = arith.addf %273, %280 : vector<8x128xf32>
    %c35 = arith.constant 35 : index
    %c0_247 = arith.constant 0 : index
    %c0_248 = arith.constant 0 : index
    %282 = vector.load %arg2[%c35, %c0_247, %c0_248] : memref<49x8x32xbf16, #tpu.memory_space<vmem>>, vector<1x8x32xbf16>
    %283 = vector.shape_cast %282 : vector<1x8x32xbf16> to vector<8x32xbf16>
    %cst_249 = arith.constant dense<0.000000e+00> : vector<8x4xf32>
    %284 = tpu.matmul %283, %0, %cst_249 {dimension_numbers = #tpu.dot_dimension_numbers<[1], [0], [0], [1], [0, 0, 1, 1], [], []>} : vector<8x32xbf16>, vector<32x4xbf16>, vector<8x4xf32> -> vector<8x4xf32>
    %285 = arith.truncf %284 : vector<8x4xf32> to vector<8x4xbf16>
    %c35_250 = arith.constant 35 : index
    %c0_251 = arith.constant 0 : index
    %c0_252 = arith.constant 0 : index
    %286 = vector.load %arg4[%c35_250, %c0_251, %c0_252] : memref<49x4x128xbf16, #tpu.memory_space<vmem>>, vector<1x4x128xbf16>
    %287 = vector.shape_cast %286 : vector<1x4x128xbf16> to vector<4x128xbf16>
    %cst_253 = arith.constant dense<0.000000e+00> : vector<8x128xf32>
    %288 = tpu.matmul %285, %287, %cst_253 {dimension_numbers = #tpu.dot_dimension_numbers<[1], [0], [0], [1], [0, 0, 1, 1], [], []>} : vector<8x4xbf16>, vector<4x128xbf16>, vector<8x128xf32> -> vector<8x128xf32>
    %289 = arith.addf %281, %288 : vector<8x128xf32>
    %c36 = arith.constant 36 : index
    %c0_254 = arith.constant 0 : index
    %c0_255 = arith.constant 0 : index
    %290 = vector.load %arg2[%c36, %c0_254, %c0_255] : memref<49x8x32xbf16, #tpu.memory_space<vmem>>, vector<1x8x32xbf16>
    %291 = vector.shape_cast %290 : vector<1x8x32xbf16> to vector<8x32xbf16>
    %cst_256 = arith.constant dense<0.000000e+00> : vector<8x4xf32>
    %292 = tpu.matmul %291, %0, %cst_256 {dimension_numbers = #tpu.dot_dimension_numbers<[1], [0], [0], [1], [0, 0, 1, 1], [], []>} : vector<8x32xbf16>, vector<32x4xbf16>, vector<8x4xf32> -> vector<8x4xf32>
    %293 = arith.truncf %292 : vector<8x4xf32> to vector<8x4xbf16>
    %c36_257 = arith.constant 36 : index
    %c0_258 = arith.constant 0 : index
    %c0_259 = arith.constant 0 : index
    %294 = vector.load %arg4[%c36_257, %c0_258, %c0_259] : memref<49x4x128xbf16, #tpu.memory_space<vmem>>, vector<1x4x128xbf16>
    %295 = vector.shape_cast %294 : vector<1x4x128xbf16> to vector<4x128xbf16>
    %cst_260 = arith.constant dense<0.000000e+00> : vector<8x128xf32>
    %296 = tpu.matmul %293, %295, %cst_260 {dimension_numbers = #tpu.dot_dimension_numbers<[1], [0], [0], [1], [0, 0, 1, 1], [], []>} : vector<8x4xbf16>, vector<4x128xbf16>, vector<8x128xf32> -> vector<8x128xf32>
    %297 = arith.addf %289, %296 : vector<8x128xf32>
    %c37 = arith.constant 37 : index
    %c0_261 = arith.constant 0 : index
    %c0_262 = arith.constant 0 : index
    %298 = vector.load %arg2[%c37, %c0_261, %c0_262] : memref<49x8x32xbf16, #tpu.memory_space<vmem>>, vector<1x8x32xbf16>
    %299 = vector.shape_cast %298 : vector<1x8x32xbf16> to vector<8x32xbf16>
    %cst_263 = arith.constant dense<0.000000e+00> : vector<8x4xf32>
    %300 = tpu.matmul %299, %0, %cst_263 {dimension_numbers = #tpu.dot_dimension_numbers<[1], [0], [0], [1], [0, 0, 1, 1], [], []>} : vector<8x32xbf16>, vector<32x4xbf16>, vector<8x4xf32> -> vector<8x4xf32>
    %301 = arith.truncf %300 : vector<8x4xf32> to vector<8x4xbf16>
    %c37_264 = arith.constant 37 : index
    %c0_265 = arith.constant 0 : index
    %c0_266 = arith.constant 0 : index
    %302 = vector.load %arg4[%c37_264, %c0_265, %c0_266] : memref<49x4x128xbf16, #tpu.memory_space<vmem>>, vector<1x4x128xbf16>
    %303 = vector.shape_cast %302 : vector<1x4x128xbf16> to vector<4x128xbf16>
    %cst_267 = arith.constant dense<0.000000e+00> : vector<8x128xf32>
    %304 = tpu.matmul %301, %303, %cst_267 {dimension_numbers = #tpu.dot_dimension_numbers<[1], [0], [0], [1], [0, 0, 1, 1], [], []>} : vector<8x4xbf16>, vector<4x128xbf16>, vector<8x128xf32> -> vector<8x128xf32>
    %305 = arith.addf %297, %304 : vector<8x128xf32>
    %c38 = arith.constant 38 : index
    %c0_268 = arith.constant 0 : index
    %c0_269 = arith.constant 0 : index
    %306 = vector.load %arg2[%c38, %c0_268, %c0_269] : memref<49x8x32xbf16, #tpu.memory_space<vmem>>, vector<1x8x32xbf16>
    %307 = vector.shape_cast %306 : vector<1x8x32xbf16> to vector<8x32xbf16>
    %cst_270 = arith.constant dense<0.000000e+00> : vector<8x4xf32>
    %308 = tpu.matmul %307, %0, %cst_270 {dimension_numbers = #tpu.dot_dimension_numbers<[1], [0], [0], [1], [0, 0, 1, 1], [], []>} : vector<8x32xbf16>, vector<32x4xbf16>, vector<8x4xf32> -> vector<8x4xf32>
    %309 = arith.truncf %308 : vector<8x4xf32> to vector<8x4xbf16>
    %c38_271 = arith.constant 38 : index
    %c0_272 = arith.constant 0 : index
    %c0_273 = arith.constant 0 : index
    %310 = vector.load %arg4[%c38_271, %c0_272, %c0_273] : memref<49x4x128xbf16, #tpu.memory_space<vmem>>, vector<1x4x128xbf16>
    %311 = vector.shape_cast %310 : vector<1x4x128xbf16> to vector<4x128xbf16>
    %cst_274 = arith.constant dense<0.000000e+00> : vector<8x128xf32>
    %312 = tpu.matmul %309, %311, %cst_274 {dimension_numbers = #tpu.dot_dimension_numbers<[1], [0], [0], [1], [0, 0, 1, 1], [], []>} : vector<8x4xbf16>, vector<4x128xbf16>, vector<8x128xf32> -> vector<8x128xf32>
    %313 = arith.addf %305, %312 : vector<8x128xf32>
    %c39 = arith.constant 39 : index
    %c0_275 = arith.constant 0 : index
    %c0_276 = arith.constant 0 : index
    %314 = vector.load %arg2[%c39, %c0_275, %c0_276] : memref<49x8x32xbf16, #tpu.memory_space<vmem>>, vector<1x8x32xbf16>
    %315 = vector.shape_cast %314 : vector<1x8x32xbf16> to vector<8x32xbf16>
    %cst_277 = arith.constant dense<0.000000e+00> : vector<8x4xf32>
    %316 = tpu.matmul %315, %0, %cst_277 {dimension_numbers = #tpu.dot_dimension_numbers<[1], [0], [0], [1], [0, 0, 1, 1], [], []>} : vector<8x32xbf16>, vector<32x4xbf16>, vector<8x4xf32> -> vector<8x4xf32>
    %317 = arith.truncf %316 : vector<8x4xf32> to vector<8x4xbf16>
    %c39_278 = arith.constant 39 : index
    %c0_279 = arith.constant 0 : index
    %c0_280 = arith.constant 0 : index
    %318 = vector.load %arg4[%c39_278, %c0_279, %c0_280] : memref<49x4x128xbf16, #tpu.memory_space<vmem>>, vector<1x4x128xbf16>
    %319 = vector.shape_cast %318 : vector<1x4x128xbf16> to vector<4x128xbf16>
    %cst_281 = arith.constant dense<0.000000e+00> : vector<8x128xf32>
    %320 = tpu.matmul %317, %319, %cst_281 {dimension_numbers = #tpu.dot_dimension_numbers<[1], [0], [0], [1], [0, 0, 1, 1], [], []>} : vector<8x4xbf16>, vector<4x128xbf16>, vector<8x128xf32> -> vector<8x128xf32>
    %321 = arith.addf %313, %320 : vector<8x128xf32>
    %c40 = arith.constant 40 : index
    %c0_282 = arith.constant 0 : index
    %c0_283 = arith.constant 0 : index
    %322 = vector.load %arg2[%c40, %c0_282, %c0_283] : memref<49x8x32xbf16, #tpu.memory_space<vmem>>, vector<1x8x32xbf16>
    %323 = vector.shape_cast %322 : vector<1x8x32xbf16> to vector<8x32xbf16>
    %cst_284 = arith.constant dense<0.000000e+00> : vector<8x4xf32>
    %324 = tpu.matmul %323, %0, %cst_284 {dimension_numbers = #tpu.dot_dimension_numbers<[1], [0], [0], [1], [0, 0, 1, 1], [], []>} : vector<8x32xbf16>, vector<32x4xbf16>, vector<8x4xf32> -> vector<8x4xf32>
    %325 = arith.truncf %324 : vector<8x4xf32> to vector<8x4xbf16>
    %c40_285 = arith.constant 40 : index
    %c0_286 = arith.constant 0 : index
    %c0_287 = arith.constant 0 : index
    %326 = vector.load %arg4[%c40_285, %c0_286, %c0_287] : memref<49x4x128xbf16, #tpu.memory_space<vmem>>, vector<1x4x128xbf16>
    %327 = vector.shape_cast %326 : vector<1x4x128xbf16> to vector<4x128xbf16>
    %cst_288 = arith.constant dense<0.000000e+00> : vector<8x128xf32>
    %328 = tpu.matmul %325, %327, %cst_288 {dimension_numbers = #tpu.dot_dimension_numbers<[1], [0], [0], [1], [0, 0, 1, 1], [], []>} : vector<8x4xbf16>, vector<4x128xbf16>, vector<8x128xf32> -> vector<8x128xf32>
    %329 = arith.addf %321, %328 : vector<8x128xf32>
    %c41 = arith.constant 41 : index
    %c0_289 = arith.constant 0 : index
    %c0_290 = arith.constant 0 : index
    %330 = vector.load %arg2[%c41, %c0_289, %c0_290] : memref<49x8x32xbf16, #tpu.memory_space<vmem>>, vector<1x8x32xbf16>
    %331 = vector.shape_cast %330 : vector<1x8x32xbf16> to vector<8x32xbf16>
    %cst_291 = arith.constant dense<0.000000e+00> : vector<8x4xf32>
    %332 = tpu.matmul %331, %0, %cst_291 {dimension_numbers = #tpu.dot_dimension_numbers<[1], [0], [0], [1], [0, 0, 1, 1], [], []>} : vector<8x32xbf16>, vector<32x4xbf16>, vector<8x4xf32> -> vector<8x4xf32>
    %333 = arith.truncf %332 : vector<8x4xf32> to vector<8x4xbf16>
    %c41_292 = arith.constant 41 : index
    %c0_293 = arith.constant 0 : index
    %c0_294 = arith.constant 0 : index
    %334 = vector.load %arg4[%c41_292, %c0_293, %c0_294] : memref<49x4x128xbf16, #tpu.memory_space<vmem>>, vector<1x4x128xbf16>
    %335 = vector.shape_cast %334 : vector<1x4x128xbf16> to vector<4x128xbf16>
    %cst_295 = arith.constant dense<0.000000e+00> : vector<8x128xf32>
    %336 = tpu.matmul %333, %335, %cst_295 {dimension_numbers = #tpu.dot_dimension_numbers<[1], [0], [0], [1], [0, 0, 1, 1], [], []>} : vector<8x4xbf16>, vector<4x128xbf16>, vector<8x128xf32> -> vector<8x128xf32>
    %337 = arith.addf %329, %336 : vector<8x128xf32>
    %c42 = arith.constant 42 : index
    %c0_296 = arith.constant 0 : index
    %c0_297 = arith.constant 0 : index
    %338 = vector.load %arg2[%c42, %c0_296, %c0_297] : memref<49x8x32xbf16, #tpu.memory_space<vmem>>, vector<1x8x32xbf16>
    %339 = vector.shape_cast %338 : vector<1x8x32xbf16> to vector<8x32xbf16>
    %cst_298 = arith.constant dense<0.000000e+00> : vector<8x4xf32>
    %340 = tpu.matmul %339, %0, %cst_298 {dimension_numbers = #tpu.dot_dimension_numbers<[1], [0], [0], [1], [0, 0, 1, 1], [], []>} : vector<8x32xbf16>, vector<32x4xbf16>, vector<8x4xf32> -> vector<8x4xf32>
    %341 = arith.truncf %340 : vector<8x4xf32> to vector<8x4xbf16>
    %c42_299 = arith.constant 42 : index
    %c0_300 = arith.constant 0 : index
    %c0_301 = arith.constant 0 : index
    %342 = vector.load %arg4[%c42_299, %c0_300, %c0_301] : memref<49x4x128xbf16, #tpu.memory_space<vmem>>, vector<1x4x128xbf16>
    %343 = vector.shape_cast %342 : vector<1x4x128xbf16> to vector<4x128xbf16>
    %cst_302 = arith.constant dense<0.000000e+00> : vector<8x128xf32>
    %344 = tpu.matmul %341, %343, %cst_302 {dimension_numbers = #tpu.dot_dimension_numbers<[1], [0], [0], [1], [0, 0, 1, 1], [], []>} : vector<8x4xbf16>, vector<4x128xbf16>, vector<8x128xf32> -> vector<8x128xf32>
    %345 = arith.addf %337, %344 : vector<8x128xf32>
    %c43 = arith.constant 43 : index
    %c0_303 = arith.constant 0 : index
    %c0_304 = arith.constant 0 : index
    %346 = vector.load %arg2[%c43, %c0_303, %c0_304] : memref<49x8x32xbf16, #tpu.memory_space<vmem>>, vector<1x8x32xbf16>
    %347 = vector.shape_cast %346 : vector<1x8x32xbf16> to vector<8x32xbf16>
    %cst_305 = arith.constant dense<0.000000e+00> : vector<8x4xf32>
    %348 = tpu.matmul %347, %0, %cst_305 {dimension_numbers = #tpu.dot_dimension_numbers<[1], [0], [0], [1], [0, 0, 1, 1], [], []>} : vector<8x32xbf16>, vector<32x4xbf16>, vector<8x4xf32> -> vector<8x4xf32>
    %349 = arith.truncf %348 : vector<8x4xf32> to vector<8x4xbf16>
    %c43_306 = arith.constant 43 : index
    %c0_307 = arith.constant 0 : index
    %c0_308 = arith.constant 0 : index
    %350 = vector.load %arg4[%c43_306, %c0_307, %c0_308] : memref<49x4x128xbf16, #tpu.memory_space<vmem>>, vector<1x4x128xbf16>
    %351 = vector.shape_cast %350 : vector<1x4x128xbf16> to vector<4x128xbf16>
    %cst_309 = arith.constant dense<0.000000e+00> : vector<8x128xf32>
    %352 = tpu.matmul %349, %351, %cst_309 {dimension_numbers = #tpu.dot_dimension_numbers<[1], [0], [0], [1], [0, 0, 1, 1], [], []>} : vector<8x4xbf16>, vector<4x128xbf16>, vector<8x128xf32> -> vector<8x128xf32>
    %353 = arith.addf %345, %352 : vector<8x128xf32>
    %c44 = arith.constant 44 : index
    %c0_310 = arith.constant 0 : index
    %c0_311 = arith.constant 0 : index
    %354 = vector.load %arg2[%c44, %c0_310, %c0_311] : memref<49x8x32xbf16, #tpu.memory_space<vmem>>, vector<1x8x32xbf16>
    %355 = vector.shape_cast %354 : vector<1x8x32xbf16> to vector<8x32xbf16>
    %cst_312 = arith.constant dense<0.000000e+00> : vector<8x4xf32>
    %356 = tpu.matmul %355, %0, %cst_312 {dimension_numbers = #tpu.dot_dimension_numbers<[1], [0], [0], [1], [0, 0, 1, 1], [], []>} : vector<8x32xbf16>, vector<32x4xbf16>, vector<8x4xf32> -> vector<8x4xf32>
    %357 = arith.truncf %356 : vector<8x4xf32> to vector<8x4xbf16>
    %c44_313 = arith.constant 44 : index
    %c0_314 = arith.constant 0 : index
    %c0_315 = arith.constant 0 : index
    %358 = vector.load %arg4[%c44_313, %c0_314, %c0_315] : memref<49x4x128xbf16, #tpu.memory_space<vmem>>, vector<1x4x128xbf16>
    %359 = vector.shape_cast %358 : vector<1x4x128xbf16> to vector<4x128xbf16>
    %cst_316 = arith.constant dense<0.000000e+00> : vector<8x128xf32>
    %360 = tpu.matmul %357, %359, %cst_316 {dimension_numbers = #tpu.dot_dimension_numbers<[1], [0], [0], [1], [0, 0, 1, 1], [], []>} : vector<8x4xbf16>, vector<4x128xbf16>, vector<8x128xf32> -> vector<8x128xf32>
    %361 = arith.addf %353, %360 : vector<8x128xf32>
    %c45 = arith.constant 45 : index
    %c0_317 = arith.constant 0 : index
    %c0_318 = arith.constant 0 : index
    %362 = vector.load %arg2[%c45, %c0_317, %c0_318] : memref<49x8x32xbf16, #tpu.memory_space<vmem>>, vector<1x8x32xbf16>
    %363 = vector.shape_cast %362 : vector<1x8x32xbf16> to vector<8x32xbf16>
    %cst_319 = arith.constant dense<0.000000e+00> : vector<8x4xf32>
    %364 = tpu.matmul %363, %0, %cst_319 {dimension_numbers = #tpu.dot_dimension_numbers<[1], [0], [0], [1], [0, 0, 1, 1], [], []>} : vector<8x32xbf16>, vector<32x4xbf16>, vector<8x4xf32> -> vector<8x4xf32>
    %365 = arith.truncf %364 : vector<8x4xf32> to vector<8x4xbf16>
    %c45_320 = arith.constant 45 : index
    %c0_321 = arith.constant 0 : index
    %c0_322 = arith.constant 0 : index
    %366 = vector.load %arg4[%c45_320, %c0_321, %c0_322] : memref<49x4x128xbf16, #tpu.memory_space<vmem>>, vector<1x4x128xbf16>
    %367 = vector.shape_cast %366 : vector<1x4x128xbf16> to vector<4x128xbf16>
    %cst_323 = arith.constant dense<0.000000e+00> : vector<8x128xf32>
    %368 = tpu.matmul %365, %367, %cst_323 {dimension_numbers = #tpu.dot_dimension_numbers<[1], [0], [0], [1], [0, 0, 1, 1], [], []>} : vector<8x4xbf16>, vector<4x128xbf16>, vector<8x128xf32> -> vector<8x128xf32>
    %369 = arith.addf %361, %368 : vector<8x128xf32>
    %c46 = arith.constant 46 : index
    %c0_324 = arith.constant 0 : index
    %c0_325 = arith.constant 0 : index
    %370 = vector.load %arg2[%c46, %c0_324, %c0_325] : memref<49x8x32xbf16, #tpu.memory_space<vmem>>, vector<1x8x32xbf16>
    %371 = vector.shape_cast %370 : vector<1x8x32xbf16> to vector<8x32xbf16>
    %cst_326 = arith.constant dense<0.000000e+00> : vector<8x4xf32>
    %372 = tpu.matmul %371, %0, %cst_326 {dimension_numbers = #tpu.dot_dimension_numbers<[1], [0], [0], [1], [0, 0, 1, 1], [], []>} : vector<8x32xbf16>, vector<32x4xbf16>, vector<8x4xf32> -> vector<8x4xf32>
    %373 = arith.truncf %372 : vector<8x4xf32> to vector<8x4xbf16>
    %c46_327 = arith.constant 46 : index
    %c0_328 = arith.constant 0 : index
    %c0_329 = arith.constant 0 : index
    %374 = vector.load %arg4[%c46_327, %c0_328, %c0_329] : memref<49x4x128xbf16, #tpu.memory_space<vmem>>, vector<1x4x128xbf16>
    %375 = vector.shape_cast %374 : vector<1x4x128xbf16> to vector<4x128xbf16>
    %cst_330 = arith.constant dense<0.000000e+00> : vector<8x128xf32>
    %376 = tpu.matmul %373, %375, %cst_330 {dimension_numbers = #tpu.dot_dimension_numbers<[1], [0], [0], [1], [0, 0, 1, 1], [], []>} : vector<8x4xbf16>, vector<4x128xbf16>, vector<8x128xf32> -> vector<8x128xf32>
    %377 = arith.addf %369, %376 : vector<8x128xf32>
    %c47 = arith.constant 47 : index
    %c0_331 = arith.constant 0 : index
    %c0_332 = arith.constant 0 : index
    %378 = vector.load %arg2[%c47, %c0_331, %c0_332] : memref<49x8x32xbf16, #tpu.memory_space<vmem>>, vector<1x8x32xbf16>
    %379 = vector.shape_cast %378 : vector<1x8x32xbf16> to vector<8x32xbf16>
    %cst_333 = arith.constant dense<0.000000e+00> : vector<8x4xf32>
    %380 = tpu.matmul %379, %0, %cst_333 {dimension_numbers = #tpu.dot_dimension_numbers<[1], [0], [0], [1], [0, 0, 1, 1], [], []>} : vector<8x32xbf16>, vector<32x4xbf16>, vector<8x4xf32> -> vector<8x4xf32>
    %381 = arith.truncf %380 : vector<8x4xf32> to vector<8x4xbf16>
    %c47_334 = arith.constant 47 : index
    %c0_335 = arith.constant 0 : index
    %c0_336 = arith.constant 0 : index
    %382 = vector.load %arg4[%c47_334, %c0_335, %c0_336] : memref<49x4x128xbf16, #tpu.memory_space<vmem>>, vector<1x4x128xbf16>
    %383 = vector.shape_cast %382 : vector<1x4x128xbf16> to vector<4x128xbf16>
    %cst_337 = arith.constant dense<0.000000e+00> : vector<8x128xf32>
    %384 = tpu.matmul %381, %383, %cst_337 {dimension_numbers = #tpu.dot_dimension_numbers<[1], [0], [0], [1], [0, 0, 1, 1], [], []>} : vector<8x4xbf16>, vector<4x128xbf16>, vector<8x128xf32> -> vector<8x128xf32>
    %385 = arith.addf %377, %384 : vector<8x128xf32>
    %c48 = arith.constant 48 : index
    %c0_338 = arith.constant 0 : index
    %c0_339 = arith.constant 0 : index
    %386 = vector.load %arg2[%c48, %c0_338, %c0_339] : memref<49x8x32xbf16, #tpu.memory_space<vmem>>, vector<1x8x32xbf16>
    %387 = vector.shape_cast %386 : vector<1x8x32xbf16> to vector<8x32xbf16>
    %cst_340 = arith.constant dense<0.000000e+00> : vector<8x4xf32>
    %388 = tpu.matmul %387, %0, %cst_340 {dimension_numbers = #tpu.dot_dimension_numbers<[1], [0], [0], [1], [0, 0, 1, 1], [], []>} : vector<8x32xbf16>, vector<32x4xbf16>, vector<8x4xf32> -> vector<8x4xf32>
    %389 = arith.truncf %388 : vector<8x4xf32> to vector<8x4xbf16>
    %c48_341 = arith.constant 48 : index
    %c0_342 = arith.constant 0 : index
    %c0_343 = arith.constant 0 : index
    %390 = vector.load %arg4[%c48_341, %c0_342, %c0_343] : memref<49x4x128xbf16, #tpu.memory_space<vmem>>, vector<1x4x128xbf16>
    %391 = vector.shape_cast %390 : vector<1x4x128xbf16> to vector<4x128xbf16>
    %cst_344 = arith.constant dense<0.000000e+00> : vector<8x128xf32>
    %392 = tpu.matmul %389, %391, %cst_344 {dimension_numbers = #tpu.dot_dimension_numbers<[1], [0], [0], [1], [0, 0, 1, 1], [], []>} : vector<8x4xbf16>, vector<4x128xbf16>, vector<8x128xf32> -> vector<8x128xf32>
    %393 = arith.addf %385, %392 : vector<8x128xf32>
    %c0_345 = arith.constant 0 : index
    %c0_346 = arith.constant 0 : index
    %394 = vector.load %arg5[%c0_345, %c0_346] : memref<1x128xf32, #tpu.memory_space<vmem>>, vector<1x128xf32>
    %395 = vector.broadcast %394 : vector<1x128xf32> to vector<8x128xf32>
    %396 = arith.addf %393, %395 : vector<8x128xf32>
    %cst_347 = arith.constant 0.000000e+00 : f32
    %397 = vector.broadcast %cst_347 : f32 to vector<8x128xf32>
    %398 = arith.maximumf %396, %397 : vector<8x128xf32>
    %cst_348 = arith.constant dense<0.000000e+00> : vector<128xf32>
    %399 = vector.multi_reduction <add>, %398, %cst_348 [0] : vector<8x128xf32> to vector<128xf32>
    %400 = vector.shape_cast %399 : vector<128xf32> to vector<1x128xf32>
    %cst_349 = arith.constant 1.250000e-01 : f32
    %401 = vector.broadcast %cst_349 : f32 to vector<1x128xf32>
    %402 = arith.mulf %400, %401 : vector<1x128xf32>
    %403 = arith.mulf %398, %398 : vector<8x128xf32>
    %cst_350 = arith.constant dense<0.000000e+00> : vector<128xf32>
    %404 = vector.multi_reduction <add>, %403, %cst_350 [0] : vector<8x128xf32> to vector<128xf32>
    %405 = vector.shape_cast %404 : vector<128xf32> to vector<1x128xf32>
    %cst_351 = arith.constant 1.250000e-01 : f32
    %406 = vector.broadcast %cst_351 : f32 to vector<1x128xf32>
    %407 = arith.mulf %405, %406 : vector<1x128xf32>
    %408 = arith.mulf %402, %402 : vector<1x128xf32>
    %409 = arith.subf %407, %408 : vector<1x128xf32>
    %cst_352 = arith.constant 0.000000e+00 : f32
    %410 = vector.broadcast %cst_352 : f32 to vector<1x128xf32>
    %411 = arith.maximumf %409, %410 : vector<1x128xf32>
    %412 = vector.broadcast %402 : vector<1x128xf32> to vector<8x128xf32>
    %413 = arith.subf %398, %412 : vector<8x128xf32>
    %cst_353 = arith.constant 9.99999974E-6 : f32
    %414 = vector.broadcast %cst_353 : f32 to vector<1x128xf32>
    %415 = arith.addf %411, %414 : vector<1x128xf32>
    %416 = math.rsqrt %415 : vector<1x128xf32>
    %417 = vector.broadcast %416 : vector<1x128xf32> to vector<8x128xf32>
    %418 = arith.mulf %413, %417 : vector<8x128xf32>
    %419 = arith.truncf %418 : vector<8x128xf32> to vector<8x128xbf16>
    %cst_354 = arith.constant 0.000000e+00 : f32
    %420 = vector.broadcast %cst_354 : f32 to vector<8x128xf32>
    %c0_355 = arith.constant 0 : index
    %c0_356 = arith.constant 0 : index
    %c0_357 = arith.constant 0 : index
    %421 = vector.load %arg3[%c0_355, %c0_356, %c0_357] : memref<9x8x8xbf16, #tpu.memory_space<vmem>>, vector<1x8x8xbf16>
    %422 = vector.shape_cast %421 : vector<1x8x8xbf16> to vector<8x8xbf16>
    %cst_358 = arith.constant dense<0.000000e+00> : vector<8x128xf32>
    %423 = tpu.matmul %422, %419, %cst_358 {dimension_numbers = #tpu.dot_dimension_numbers<[1], [0], [0], [1], [0, 0, 1, 1], [], []>} : vector<8x8xbf16>, vector<8x128xbf16>, vector<8x128xf32> -> vector<8x128xf32>
    %424 = arith.truncf %423 : vector<8x128xf32> to vector<8x128xbf16>
    %c0_359 = arith.constant 0 : index
    %c0_360 = arith.constant 0 : index
    %c0_361 = arith.constant 0 : index
    %425 = vector.load %arg6[%c0_359, %c0_360, %c0_361] : memref<9x128x128xbf16, #tpu.memory_space<vmem>>, vector<1x128x128xbf16>
    %426 = vector.shape_cast %425 : vector<1x128x128xbf16> to vector<128x128xbf16>
    %cst_362 = arith.constant dense<0.000000e+00> : vector<8x128xf32>
    %427 = tpu.matmul %424, %426, %cst_362 {dimension_numbers = #tpu.dot_dimension_numbers<[1], [0], [0], [1], [0, 0, 1, 1], [], []>} : vector<8x128xbf16>, vector<128x128xbf16>, vector<8x128xf32> -> vector<8x128xf32>
    %428 = arith.addf %420, %427 : vector<8x128xf32>
    %c1_363 = arith.constant 1 : index
    %c0_364 = arith.constant 0 : index
    %c0_365 = arith.constant 0 : index
    %429 = vector.load %arg3[%c1_363, %c0_364, %c0_365] : memref<9x8x8xbf16, #tpu.memory_space<vmem>>, vector<1x8x8xbf16>
    %430 = vector.shape_cast %429 : vector<1x8x8xbf16> to vector<8x8xbf16>
    %cst_366 = arith.constant dense<0.000000e+00> : vector<8x128xf32>
    %431 = tpu.matmul %430, %419, %cst_366 {dimension_numbers = #tpu.dot_dimension_numbers<[1], [0], [0], [1], [0, 0, 1, 1], [], []>} : vector<8x8xbf16>, vector<8x128xbf16>, vector<8x128xf32> -> vector<8x128xf32>
    %432 = arith.truncf %431 : vector<8x128xf32> to vector<8x128xbf16>
    %c1_367 = arith.constant 1 : index
    %c0_368 = arith.constant 0 : index
    %c0_369 = arith.constant 0 : index
    %433 = vector.load %arg6[%c1_367, %c0_368, %c0_369] : memref<9x128x128xbf16, #tpu.memory_space<vmem>>, vector<1x128x128xbf16>
    %434 = vector.shape_cast %433 : vector<1x128x128xbf16> to vector<128x128xbf16>
    %cst_370 = arith.constant dense<0.000000e+00> : vector<8x128xf32>
    %435 = tpu.matmul %432, %434, %cst_370 {dimension_numbers = #tpu.dot_dimension_numbers<[1], [0], [0], [1], [0, 0, 1, 1], [], []>} : vector<8x128xbf16>, vector<128x128xbf16>, vector<8x128xf32> -> vector<8x128xf32>
    %436 = arith.addf %428, %435 : vector<8x128xf32>
    %c2_371 = arith.constant 2 : index
    %c0_372 = arith.constant 0 : index
    %c0_373 = arith.constant 0 : index
    %437 = vector.load %arg3[%c2_371, %c0_372, %c0_373] : memref<9x8x8xbf16, #tpu.memory_space<vmem>>, vector<1x8x8xbf16>
    %438 = vector.shape_cast %437 : vector<1x8x8xbf16> to vector<8x8xbf16>
    %cst_374 = arith.constant dense<0.000000e+00> : vector<8x128xf32>
    %439 = tpu.matmul %438, %419, %cst_374 {dimension_numbers = #tpu.dot_dimension_numbers<[1], [0], [0], [1], [0, 0, 1, 1], [], []>} : vector<8x8xbf16>, vector<8x128xbf16>, vector<8x128xf32> -> vector<8x128xf32>
    %440 = arith.truncf %439 : vector<8x128xf32> to vector<8x128xbf16>
    %c2_375 = arith.constant 2 : index
    %c0_376 = arith.constant 0 : index
    %c0_377 = arith.constant 0 : index
    %441 = vector.load %arg6[%c2_375, %c0_376, %c0_377] : memref<9x128x128xbf16, #tpu.memory_space<vmem>>, vector<1x128x128xbf16>
    %442 = vector.shape_cast %441 : vector<1x128x128xbf16> to vector<128x128xbf16>
    %cst_378 = arith.constant dense<0.000000e+00> : vector<8x128xf32>
    %443 = tpu.matmul %440, %442, %cst_378 {dimension_numbers = #tpu.dot_dimension_numbers<[1], [0], [0], [1], [0, 0, 1, 1], [], []>} : vector<8x128xbf16>, vector<128x128xbf16>, vector<8x128xf32> -> vector<8x128xf32>
    %444 = arith.addf %436, %443 : vector<8x128xf32>
    %c3_379 = arith.constant 3 : index
    %c0_380 = arith.constant 0 : index
    %c0_381 = arith.constant 0 : index
    %445 = vector.load %arg3[%c3_379, %c0_380, %c0_381] : memref<9x8x8xbf16, #tpu.memory_space<vmem>>, vector<1x8x8xbf16>
    %446 = vector.shape_cast %445 : vector<1x8x8xbf16> to vector<8x8xbf16>
    %cst_382 = arith.constant dense<0.000000e+00> : vector<8x128xf32>
    %447 = tpu.matmul %446, %419, %cst_382 {dimension_numbers = #tpu.dot_dimension_numbers<[1], [0], [0], [1], [0, 0, 1, 1], [], []>} : vector<8x8xbf16>, vector<8x128xbf16>, vector<8x128xf32> -> vector<8x128xf32>
    %448 = arith.truncf %447 : vector<8x128xf32> to vector<8x128xbf16>
    %c3_383 = arith.constant 3 : index
    %c0_384 = arith.constant 0 : index
    %c0_385 = arith.constant 0 : index
    %449 = vector.load %arg6[%c3_383, %c0_384, %c0_385] : memref<9x128x128xbf16, #tpu.memory_space<vmem>>, vector<1x128x128xbf16>
    %450 = vector.shape_cast %449 : vector<1x128x128xbf16> to vector<128x128xbf16>
    %cst_386 = arith.constant dense<0.000000e+00> : vector<8x128xf32>
    %451 = tpu.matmul %448, %450, %cst_386 {dimension_numbers = #tpu.dot_dimension_numbers<[1], [0], [0], [1], [0, 0, 1, 1], [], []>} : vector<8x128xbf16>, vector<128x128xbf16>, vector<8x128xf32> -> vector<8x128xf32>
    %452 = arith.addf %444, %451 : vector<8x128xf32>
    %c4_387 = arith.constant 4 : index
    %c0_388 = arith.constant 0 : index
    %c0_389 = arith.constant 0 : index
    %453 = vector.load %arg3[%c4_387, %c0_388, %c0_389] : memref<9x8x8xbf16, #tpu.memory_space<vmem>>, vector<1x8x8xbf16>
    %454 = vector.shape_cast %453 : vector<1x8x8xbf16> to vector<8x8xbf16>
    %cst_390 = arith.constant dense<0.000000e+00> : vector<8x128xf32>
    %455 = tpu.matmul %454, %419, %cst_390 {dimension_numbers = #tpu.dot_dimension_numbers<[1], [0], [0], [1], [0, 0, 1, 1], [], []>} : vector<8x8xbf16>, vector<8x128xbf16>, vector<8x128xf32> -> vector<8x128xf32>
    %456 = arith.truncf %455 : vector<8x128xf32> to vector<8x128xbf16>
    %c4_391 = arith.constant 4 : index
    %c0_392 = arith.constant 0 : index
    %c0_393 = arith.constant 0 : index
    %457 = vector.load %arg6[%c4_391, %c0_392, %c0_393] : memref<9x128x128xbf16, #tpu.memory_space<vmem>>, vector<1x128x128xbf16>
    %458 = vector.shape_cast %457 : vector<1x128x128xbf16> to vector<128x128xbf16>
    %cst_394 = arith.constant dense<0.000000e+00> : vector<8x128xf32>
    %459 = tpu.matmul %456, %458, %cst_394 {dimension_numbers = #tpu.dot_dimension_numbers<[1], [0], [0], [1], [0, 0, 1, 1], [], []>} : vector<8x128xbf16>, vector<128x128xbf16>, vector<8x128xf32> -> vector<8x128xf32>
    %460 = arith.addf %452, %459 : vector<8x128xf32>
    %c5_395 = arith.constant 5 : index
    %c0_396 = arith.constant 0 : index
    %c0_397 = arith.constant 0 : index
    %461 = vector.load %arg3[%c5_395, %c0_396, %c0_397] : memref<9x8x8xbf16, #tpu.memory_space<vmem>>, vector<1x8x8xbf16>
    %462 = vector.shape_cast %461 : vector<1x8x8xbf16> to vector<8x8xbf16>
    %cst_398 = arith.constant dense<0.000000e+00> : vector<8x128xf32>
    %463 = tpu.matmul %462, %419, %cst_398 {dimension_numbers = #tpu.dot_dimension_numbers<[1], [0], [0], [1], [0, 0, 1, 1], [], []>} : vector<8x8xbf16>, vector<8x128xbf16>, vector<8x128xf32> -> vector<8x128xf32>
    %464 = arith.truncf %463 : vector<8x128xf32> to vector<8x128xbf16>
    %c5_399 = arith.constant 5 : index
    %c0_400 = arith.constant 0 : index
    %c0_401 = arith.constant 0 : index
    %465 = vector.load %arg6[%c5_399, %c0_400, %c0_401] : memref<9x128x128xbf16, #tpu.memory_space<vmem>>, vector<1x128x128xbf16>
    %466 = vector.shape_cast %465 : vector<1x128x128xbf16> to vector<128x128xbf16>
    %cst_402 = arith.constant dense<0.000000e+00> : vector<8x128xf32>
    %467 = tpu.matmul %464, %466, %cst_402 {dimension_numbers = #tpu.dot_dimension_numbers<[1], [0], [0], [1], [0, 0, 1, 1], [], []>} : vector<8x128xbf16>, vector<128x128xbf16>, vector<8x128xf32> -> vector<8x128xf32>
    %468 = arith.addf %460, %467 : vector<8x128xf32>
    %c6_403 = arith.constant 6 : index
    %c0_404 = arith.constant 0 : index
    %c0_405 = arith.constant 0 : index
    %469 = vector.load %arg3[%c6_403, %c0_404, %c0_405] : memref<9x8x8xbf16, #tpu.memory_space<vmem>>, vector<1x8x8xbf16>
    %470 = vector.shape_cast %469 : vector<1x8x8xbf16> to vector<8x8xbf16>
    %cst_406 = arith.constant dense<0.000000e+00> : vector<8x128xf32>
    %471 = tpu.matmul %470, %419, %cst_406 {dimension_numbers = #tpu.dot_dimension_numbers<[1], [0], [0], [1], [0, 0, 1, 1], [], []>} : vector<8x8xbf16>, vector<8x128xbf16>, vector<8x128xf32> -> vector<8x128xf32>
    %472 = arith.truncf %471 : vector<8x128xf32> to vector<8x128xbf16>
    %c6_407 = arith.constant 6 : index
    %c0_408 = arith.constant 0 : index
    %c0_409 = arith.constant 0 : index
    %473 = vector.load %arg6[%c6_407, %c0_408, %c0_409] : memref<9x128x128xbf16, #tpu.memory_space<vmem>>, vector<1x128x128xbf16>
    %474 = vector.shape_cast %473 : vector<1x128x128xbf16> to vector<128x128xbf16>
    %cst_410 = arith.constant dense<0.000000e+00> : vector<8x128xf32>
    %475 = tpu.matmul %472, %474, %cst_410 {dimension_numbers = #tpu.dot_dimension_numbers<[1], [0], [0], [1], [0, 0, 1, 1], [], []>} : vector<8x128xbf16>, vector<128x128xbf16>, vector<8x128xf32> -> vector<8x128xf32>
    %476 = arith.addf %468, %475 : vector<8x128xf32>
    %c7_411 = arith.constant 7 : index
    %c0_412 = arith.constant 0 : index
    %c0_413 = arith.constant 0 : index
    %477 = vector.load %arg3[%c7_411, %c0_412, %c0_413] : memref<9x8x8xbf16, #tpu.memory_space<vmem>>, vector<1x8x8xbf16>
    %478 = vector.shape_cast %477 : vector<1x8x8xbf16> to vector<8x8xbf16>
    %cst_414 = arith.constant dense<0.000000e+00> : vector<8x128xf32>
    %479 = tpu.matmul %478, %419, %cst_414 {dimension_numbers = #tpu.dot_dimension_numbers<[1], [0], [0], [1], [0, 0, 1, 1], [], []>} : vector<8x8xbf16>, vector<8x128xbf16>, vector<8x128xf32> -> vector<8x128xf32>
    %480 = arith.truncf %479 : vector<8x128xf32> to vector<8x128xbf16>
    %c7_415 = arith.constant 7 : index
    %c0_416 = arith.constant 0 : index
    %c0_417 = arith.constant 0 : index
    %481 = vector.load %arg6[%c7_415, %c0_416, %c0_417] : memref<9x128x128xbf16, #tpu.memory_space<vmem>>, vector<1x128x128xbf16>
    %482 = vector.shape_cast %481 : vector<1x128x128xbf16> to vector<128x128xbf16>
    %cst_418 = arith.constant dense<0.000000e+00> : vector<8x128xf32>
    %483 = tpu.matmul %480, %482, %cst_418 {dimension_numbers = #tpu.dot_dimension_numbers<[1], [0], [0], [1], [0, 0, 1, 1], [], []>} : vector<8x128xbf16>, vector<128x128xbf16>, vector<8x128xf32> -> vector<8x128xf32>
    %484 = arith.addf %476, %483 : vector<8x128xf32>
    %c8_419 = arith.constant 8 : index
    %c0_420 = arith.constant 0 : index
    %c0_421 = arith.constant 0 : index
    %485 = vector.load %arg3[%c8_419, %c0_420, %c0_421] : memref<9x8x8xbf16, #tpu.memory_space<vmem>>, vector<1x8x8xbf16>
    %486 = vector.shape_cast %485 : vector<1x8x8xbf16> to vector<8x8xbf16>
    %cst_422 = arith.constant dense<0.000000e+00> : vector<8x128xf32>
    %487 = tpu.matmul %486, %419, %cst_422 {dimension_numbers = #tpu.dot_dimension_numbers<[1], [0], [0], [1], [0, 0, 1, 1], [], []>} : vector<8x8xbf16>, vector<8x128xbf16>, vector<8x128xf32> -> vector<8x128xf32>
    %488 = arith.truncf %487 : vector<8x128xf32> to vector<8x128xbf16>
    %c8_423 = arith.constant 8 : index
    %c0_424 = arith.constant 0 : index
    %c0_425 = arith.constant 0 : index
    %489 = vector.load %arg6[%c8_423, %c0_424, %c0_425] : memref<9x128x128xbf16, #tpu.memory_space<vmem>>, vector<1x128x128xbf16>
    %490 = vector.shape_cast %489 : vector<1x128x128xbf16> to vector<128x128xbf16>
    %cst_426 = arith.constant dense<0.000000e+00> : vector<8x128xf32>
    %491 = tpu.matmul %488, %490, %cst_426 {dimension_numbers = #tpu.dot_dimension_numbers<[1], [0], [0], [1], [0, 0, 1, 1], [], []>} : vector<8x128xbf16>, vector<128x128xbf16>, vector<8x128xf32> -> vector<8x128xf32>
    %492 = arith.addf %484, %491 : vector<8x128xf32>
    %c0_427 = arith.constant 0 : index
    %c0_428 = arith.constant 0 : index
    %493 = vector.load %arg7[%c0_427, %c0_428] : memref<1x128xf32, #tpu.memory_space<vmem>>, vector<1x128xf32>
    %494 = vector.broadcast %493 : vector<1x128xf32> to vector<8x128xf32>
    %495 = arith.addf %492, %494 : vector<8x128xf32>
    %cst_429 = arith.constant 0.000000e+00 : f32
    %496 = vector.broadcast %cst_429 : f32 to vector<8x128xf32>
    %497 = arith.maximumf %495, %496 : vector<8x128xf32>
    %cst_430 = arith.constant dense<0.000000e+00> : vector<128xf32>
    %498 = vector.multi_reduction <add>, %497, %cst_430 [0] : vector<8x128xf32> to vector<128xf32>
    %499 = vector.shape_cast %498 : vector<128xf32> to vector<1x128xf32>
    %cst_431 = arith.constant 1.250000e-01 : f32
    %500 = vector.broadcast %cst_431 : f32 to vector<1x128xf32>
    %501 = arith.mulf %499, %500 : vector<1x128xf32>
    %502 = arith.mulf %497, %497 : vector<8x128xf32>
    %cst_432 = arith.constant dense<0.000000e+00> : vector<128xf32>
    %503 = vector.multi_reduction <add>, %502, %cst_432 [0] : vector<8x128xf32> to vector<128xf32>
    %504 = vector.shape_cast %503 : vector<128xf32> to vector<1x128xf32>
    %cst_433 = arith.constant 1.250000e-01 : f32
    %505 = vector.broadcast %cst_433 : f32 to vector<1x128xf32>
    %506 = arith.mulf %504, %505 : vector<1x128xf32>
    %507 = arith.mulf %501, %501 : vector<1x128xf32>
    %508 = arith.subf %506, %507 : vector<1x128xf32>
    %cst_434 = arith.constant 0.000000e+00 : f32
    %509 = vector.broadcast %cst_434 : f32 to vector<1x128xf32>
    %510 = arith.maximumf %508, %509 : vector<1x128xf32>
    %511 = vector.broadcast %501 : vector<1x128xf32> to vector<8x128xf32>
    %512 = arith.subf %497, %511 : vector<8x128xf32>
    %cst_435 = arith.constant 9.99999974E-6 : f32
    %513 = vector.broadcast %cst_435 : f32 to vector<1x128xf32>
    %514 = arith.addf %510, %513 : vector<1x128xf32>
    %515 = math.rsqrt %514 : vector<1x128xf32>
    %516 = vector.broadcast %515 : vector<1x128xf32> to vector<8x128xf32>
    %517 = arith.mulf %512, %516 : vector<8x128xf32>
    %518 = arith.truncf %517 : vector<8x128xf32> to vector<8x128xbf16>
    %cst_436 = arith.constant 0.000000e+00 : f32
    %519 = vector.broadcast %cst_436 : f32 to vector<8x128xf32>
    %c0_437 = arith.constant 0 : index
    %c0_438 = arith.constant 0 : index
    %c0_439 = arith.constant 0 : index
    %520 = vector.load %arg3[%c0_437, %c0_438, %c0_439] : memref<9x8x8xbf16, #tpu.memory_space<vmem>>, vector<1x8x8xbf16>
    %521 = vector.shape_cast %520 : vector<1x8x8xbf16> to vector<8x8xbf16>
    %cst_440 = arith.constant dense<0.000000e+00> : vector<8x128xf32>
    %522 = tpu.matmul %521, %518, %cst_440 {dimension_numbers = #tpu.dot_dimension_numbers<[1], [0], [0], [1], [0, 0, 1, 1], [], []>} : vector<8x8xbf16>, vector<8x128xbf16>, vector<8x128xf32> -> vector<8x128xf32>
    %523 = arith.truncf %522 : vector<8x128xf32> to vector<8x128xbf16>
    %c0_441 = arith.constant 0 : index
    %c0_442 = arith.constant 0 : index
    %c0_443 = arith.constant 0 : index
    %524 = vector.load %arg8[%c0_441, %c0_442, %c0_443] : memref<9x128x128xbf16, #tpu.memory_space<vmem>>, vector<1x128x128xbf16>
    %525 = vector.shape_cast %524 : vector<1x128x128xbf16> to vector<128x128xbf16>
    %cst_444 = arith.constant dense<0.000000e+00> : vector<8x128xf32>
    %526 = tpu.matmul %523, %525, %cst_444 {dimension_numbers = #tpu.dot_dimension_numbers<[1], [0], [0], [1], [0, 0, 1, 1], [], []>} : vector<8x128xbf16>, vector<128x128xbf16>, vector<8x128xf32> -> vector<8x128xf32>
    %527 = arith.addf %519, %526 : vector<8x128xf32>
    %c1_445 = arith.constant 1 : index
    %c0_446 = arith.constant 0 : index
    %c0_447 = arith.constant 0 : index
    %528 = vector.load %arg3[%c1_445, %c0_446, %c0_447] : memref<9x8x8xbf16, #tpu.memory_space<vmem>>, vector<1x8x8xbf16>
    %529 = vector.shape_cast %528 : vector<1x8x8xbf16> to vector<8x8xbf16>
    %cst_448 = arith.constant dense<0.000000e+00> : vector<8x128xf32>
    %530 = tpu.matmul %529, %518, %cst_448 {dimension_numbers = #tpu.dot_dimension_numbers<[1], [0], [0], [1], [0, 0, 1, 1], [], []>} : vector<8x8xbf16>, vector<8x128xbf16>, vector<8x128xf32> -> vector<8x128xf32>
    %531 = arith.truncf %530 : vector<8x128xf32> to vector<8x128xbf16>
    %c1_449 = arith.constant 1 : index
    %c0_450 = arith.constant 0 : index
    %c0_451 = arith.constant 0 : index
    %532 = vector.load %arg8[%c1_449, %c0_450, %c0_451] : memref<9x128x128xbf16, #tpu.memory_space<vmem>>, vector<1x128x128xbf16>
    %533 = vector.shape_cast %532 : vector<1x128x128xbf16> to vector<128x128xbf16>
    %cst_452 = arith.constant dense<0.000000e+00> : vector<8x128xf32>
    %534 = tpu.matmul %531, %533, %cst_452 {dimension_numbers = #tpu.dot_dimension_numbers<[1], [0], [0], [1], [0, 0, 1, 1], [], []>} : vector<8x128xbf16>, vector<128x128xbf16>, vector<8x128xf32> -> vector<8x128xf32>
    %535 = arith.addf %527, %534 : vector<8x128xf32>
    %c2_453 = arith.constant 2 : index
    %c0_454 = arith.constant 0 : index
    %c0_455 = arith.constant 0 : index
    %536 = vector.load %arg3[%c2_453, %c0_454, %c0_455] : memref<9x8x8xbf16, #tpu.memory_space<vmem>>, vector<1x8x8xbf16>
    %537 = vector.shape_cast %536 : vector<1x8x8xbf16> to vector<8x8xbf16>
    %cst_456 = arith.constant dense<0.000000e+00> : vector<8x128xf32>
    %538 = tpu.matmul %537, %518, %cst_456 {dimension_numbers = #tpu.dot_dimension_numbers<[1], [0], [0], [1], [0, 0, 1, 1], [], []>} : vector<8x8xbf16>, vector<8x128xbf16>, vector<8x128xf32> -> vector<8x128xf32>
    %539 = arith.truncf %538 : vector<8x128xf32> to vector<8x128xbf16>
    %c2_457 = arith.constant 2 : index
    %c0_458 = arith.constant 0 : index
    %c0_459 = arith.constant 0 : index
    %540 = vector.load %arg8[%c2_457, %c0_458, %c0_459] : memref<9x128x128xbf16, #tpu.memory_space<vmem>>, vector<1x128x128xbf16>
    %541 = vector.shape_cast %540 : vector<1x128x128xbf16> to vector<128x128xbf16>
    %cst_460 = arith.constant dense<0.000000e+00> : vector<8x128xf32>
    %542 = tpu.matmul %539, %541, %cst_460 {dimension_numbers = #tpu.dot_dimension_numbers<[1], [0], [0], [1], [0, 0, 1, 1], [], []>} : vector<8x128xbf16>, vector<128x128xbf16>, vector<8x128xf32> -> vector<8x128xf32>
    %543 = arith.addf %535, %542 : vector<8x128xf32>
    %c3_461 = arith.constant 3 : index
    %c0_462 = arith.constant 0 : index
    %c0_463 = arith.constant 0 : index
    %544 = vector.load %arg3[%c3_461, %c0_462, %c0_463] : memref<9x8x8xbf16, #tpu.memory_space<vmem>>, vector<1x8x8xbf16>
    %545 = vector.shape_cast %544 : vector<1x8x8xbf16> to vector<8x8xbf16>
    %cst_464 = arith.constant dense<0.000000e+00> : vector<8x128xf32>
    %546 = tpu.matmul %545, %518, %cst_464 {dimension_numbers = #tpu.dot_dimension_numbers<[1], [0], [0], [1], [0, 0, 1, 1], [], []>} : vector<8x8xbf16>, vector<8x128xbf16>, vector<8x128xf32> -> vector<8x128xf32>
    %547 = arith.truncf %546 : vector<8x128xf32> to vector<8x128xbf16>
    %c3_465 = arith.constant 3 : index
    %c0_466 = arith.constant 0 : index
    %c0_467 = arith.constant 0 : index
    %548 = vector.load %arg8[%c3_465, %c0_466, %c0_467] : memref<9x128x128xbf16, #tpu.memory_space<vmem>>, vector<1x128x128xbf16>
    %549 = vector.shape_cast %548 : vector<1x128x128xbf16> to vector<128x128xbf16>
    %cst_468 = arith.constant dense<0.000000e+00> : vector<8x128xf32>
    %550 = tpu.matmul %547, %549, %cst_468 {dimension_numbers = #tpu.dot_dimension_numbers<[1], [0], [0], [1], [0, 0, 1, 1], [], []>} : vector<8x128xbf16>, vector<128x128xbf16>, vector<8x128xf32> -> vector<8x128xf32>
    %551 = arith.addf %543, %550 : vector<8x128xf32>
    %c4_469 = arith.constant 4 : index
    %c0_470 = arith.constant 0 : index
    %c0_471 = arith.constant 0 : index
    %552 = vector.load %arg3[%c4_469, %c0_470, %c0_471] : memref<9x8x8xbf16, #tpu.memory_space<vmem>>, vector<1x8x8xbf16>
    %553 = vector.shape_cast %552 : vector<1x8x8xbf16> to vector<8x8xbf16>
    %cst_472 = arith.constant dense<0.000000e+00> : vector<8x128xf32>
    %554 = tpu.matmul %553, %518, %cst_472 {dimension_numbers = #tpu.dot_dimension_numbers<[1], [0], [0], [1], [0, 0, 1, 1], [], []>} : vector<8x8xbf16>, vector<8x128xbf16>, vector<8x128xf32> -> vector<8x128xf32>
    %555 = arith.truncf %554 : vector<8x128xf32> to vector<8x128xbf16>
    %c4_473 = arith.constant 4 : index
    %c0_474 = arith.constant 0 : index
    %c0_475 = arith.constant 0 : index
    %556 = vector.load %arg8[%c4_473, %c0_474, %c0_475] : memref<9x128x128xbf16, #tpu.memory_space<vmem>>, vector<1x128x128xbf16>
    %557 = vector.shape_cast %556 : vector<1x128x128xbf16> to vector<128x128xbf16>
    %cst_476 = arith.constant dense<0.000000e+00> : vector<8x128xf32>
    %558 = tpu.matmul %555, %557, %cst_476 {dimension_numbers = #tpu.dot_dimension_numbers<[1], [0], [0], [1], [0, 0, 1, 1], [], []>} : vector<8x128xbf16>, vector<128x128xbf16>, vector<8x128xf32> -> vector<8x128xf32>
    %559 = arith.addf %551, %558 : vector<8x128xf32>
    %c5_477 = arith.constant 5 : index
    %c0_478 = arith.constant 0 : index
    %c0_479 = arith.constant 0 : index
    %560 = vector.load %arg3[%c5_477, %c0_478, %c0_479] : memref<9x8x8xbf16, #tpu.memory_space<vmem>>, vector<1x8x8xbf16>
    %561 = vector.shape_cast %560 : vector<1x8x8xbf16> to vector<8x8xbf16>
    %cst_480 = arith.constant dense<0.000000e+00> : vector<8x128xf32>
    %562 = tpu.matmul %561, %518, %cst_480 {dimension_numbers = #tpu.dot_dimension_numbers<[1], [0], [0], [1], [0, 0, 1, 1], [], []>} : vector<8x8xbf16>, vector<8x128xbf16>, vector<8x128xf32> -> vector<8x128xf32>
    %563 = arith.truncf %562 : vector<8x128xf32> to vector<8x128xbf16>
    %c5_481 = arith.constant 5 : index
    %c0_482 = arith.constant 0 : index
    %c0_483 = arith.constant 0 : index
    %564 = vector.load %arg8[%c5_481, %c0_482, %c0_483] : memref<9x128x128xbf16, #tpu.memory_space<vmem>>, vector<1x128x128xbf16>
    %565 = vector.shape_cast %564 : vector<1x128x128xbf16> to vector<128x128xbf16>
    %cst_484 = arith.constant dense<0.000000e+00> : vector<8x128xf32>
    %566 = tpu.matmul %563, %565, %cst_484 {dimension_numbers = #tpu.dot_dimension_numbers<[1], [0], [0], [1], [0, 0, 1, 1], [], []>} : vector<8x128xbf16>, vector<128x128xbf16>, vector<8x128xf32> -> vector<8x128xf32>
    %567 = arith.addf %559, %566 : vector<8x128xf32>
    %c6_485 = arith.constant 6 : index
    %c0_486 = arith.constant 0 : index
    %c0_487 = arith.constant 0 : index
    %568 = vector.load %arg3[%c6_485, %c0_486, %c0_487] : memref<9x8x8xbf16, #tpu.memory_space<vmem>>, vector<1x8x8xbf16>
    %569 = vector.shape_cast %568 : vector<1x8x8xbf16> to vector<8x8xbf16>
    %cst_488 = arith.constant dense<0.000000e+00> : vector<8x128xf32>
    %570 = tpu.matmul %569, %518, %cst_488 {dimension_numbers = #tpu.dot_dimension_numbers<[1], [0], [0], [1], [0, 0, 1, 1], [], []>} : vector<8x8xbf16>, vector<8x128xbf16>, vector<8x128xf32> -> vector<8x128xf32>
    %571 = arith.truncf %570 : vector<8x128xf32> to vector<8x128xbf16>
    %c6_489 = arith.constant 6 : index
    %c0_490 = arith.constant 0 : index
    %c0_491 = arith.constant 0 : index
    %572 = vector.load %arg8[%c6_489, %c0_490, %c0_491] : memref<9x128x128xbf16, #tpu.memory_space<vmem>>, vector<1x128x128xbf16>
    %573 = vector.shape_cast %572 : vector<1x128x128xbf16> to vector<128x128xbf16>
    %cst_492 = arith.constant dense<0.000000e+00> : vector<8x128xf32>
    %574 = tpu.matmul %571, %573, %cst_492 {dimension_numbers = #tpu.dot_dimension_numbers<[1], [0], [0], [1], [0, 0, 1, 1], [], []>} : vector<8x128xbf16>, vector<128x128xbf16>, vector<8x128xf32> -> vector<8x128xf32>
    %575 = arith.addf %567, %574 : vector<8x128xf32>
    %c7_493 = arith.constant 7 : index
    %c0_494 = arith.constant 0 : index
    %c0_495 = arith.constant 0 : index
    %576 = vector.load %arg3[%c7_493, %c0_494, %c0_495] : memref<9x8x8xbf16, #tpu.memory_space<vmem>>, vector<1x8x8xbf16>
    %577 = vector.shape_cast %576 : vector<1x8x8xbf16> to vector<8x8xbf16>
    %cst_496 = arith.constant dense<0.000000e+00> : vector<8x128xf32>
    %578 = tpu.matmul %577, %518, %cst_496 {dimension_numbers = #tpu.dot_dimension_numbers<[1], [0], [0], [1], [0, 0, 1, 1], [], []>} : vector<8x8xbf16>, vector<8x128xbf16>, vector<8x128xf32> -> vector<8x128xf32>
    %579 = arith.truncf %578 : vector<8x128xf32> to vector<8x128xbf16>
    %c7_497 = arith.constant 7 : index
    %c0_498 = arith.constant 0 : index
    %c0_499 = arith.constant 0 : index
    %580 = vector.load %arg8[%c7_497, %c0_498, %c0_499] : memref<9x128x128xbf16, #tpu.memory_space<vmem>>, vector<1x128x128xbf16>
    %581 = vector.shape_cast %580 : vector<1x128x128xbf16> to vector<128x128xbf16>
    %cst_500 = arith.constant dense<0.000000e+00> : vector<8x128xf32>
    %582 = tpu.matmul %579, %581, %cst_500 {dimension_numbers = #tpu.dot_dimension_numbers<[1], [0], [0], [1], [0, 0, 1, 1], [], []>} : vector<8x128xbf16>, vector<128x128xbf16>, vector<8x128xf32> -> vector<8x128xf32>
    %583 = arith.addf %575, %582 : vector<8x128xf32>
    %c8_501 = arith.constant 8 : index
    %c0_502 = arith.constant 0 : index
    %c0_503 = arith.constant 0 : index
    %584 = vector.load %arg3[%c8_501, %c0_502, %c0_503] : memref<9x8x8xbf16, #tpu.memory_space<vmem>>, vector<1x8x8xbf16>
    %585 = vector.shape_cast %584 : vector<1x8x8xbf16> to vector<8x8xbf16>
    %cst_504 = arith.constant dense<0.000000e+00> : vector<8x128xf32>
    %586 = tpu.matmul %585, %518, %cst_504 {dimension_numbers = #tpu.dot_dimension_numbers<[1], [0], [0], [1], [0, 0, 1, 1], [], []>} : vector<8x8xbf16>, vector<8x128xbf16>, vector<8x128xf32> -> vector<8x128xf32>
    %587 = arith.truncf %586 : vector<8x128xf32> to vector<8x128xbf16>
    %c8_505 = arith.constant 8 : index
    %c0_506 = arith.constant 0 : index
    %c0_507 = arith.constant 0 : index
    %588 = vector.load %arg8[%c8_505, %c0_506, %c0_507] : memref<9x128x128xbf16, #tpu.memory_space<vmem>>, vector<1x128x128xbf16>
    %589 = vector.shape_cast %588 : vector<1x128x128xbf16> to vector<128x128xbf16>
    %cst_508 = arith.constant dense<0.000000e+00> : vector<8x128xf32>
    %590 = tpu.matmul %587, %589, %cst_508 {dimension_numbers = #tpu.dot_dimension_numbers<[1], [0], [0], [1], [0, 0, 1, 1], [], []>} : vector<8x128xbf16>, vector<128x128xbf16>, vector<8x128xf32> -> vector<8x128xf32>
    %591 = arith.addf %583, %590 : vector<8x128xf32>
    %c0_509 = arith.constant 0 : index
    %c0_510 = arith.constant 0 : index
    %592 = vector.load %arg9[%c0_509, %c0_510] : memref<1x128xf32, #tpu.memory_space<vmem>>, vector<1x128xf32>
    %593 = vector.broadcast %592 : vector<1x128xf32> to vector<8x128xf32>
    %594 = arith.addf %591, %593 : vector<8x128xf32>
    %cst_511 = arith.constant 0.000000e+00 : f32
    %595 = vector.broadcast %cst_511 : f32 to vector<8x128xf32>
    %596 = arith.maximumf %594, %595 : vector<8x128xf32>
    %cst_512 = arith.constant dense<0.000000e+00> : vector<128xf32>
    %597 = vector.multi_reduction <add>, %596, %cst_512 [0] : vector<8x128xf32> to vector<128xf32>
    %598 = vector.shape_cast %597 : vector<128xf32> to vector<1x128xf32>
    %cst_513 = arith.constant 1.250000e-01 : f32
    %599 = vector.broadcast %cst_513 : f32 to vector<1x128xf32>
    %600 = arith.mulf %598, %599 : vector<1x128xf32>
    %601 = arith.mulf %596, %596 : vector<8x128xf32>
    %cst_514 = arith.constant dense<0.000000e+00> : vector<128xf32>
    %602 = vector.multi_reduction <add>, %601, %cst_514 [0] : vector<8x128xf32> to vector<128xf32>
    %603 = vector.shape_cast %602 : vector<128xf32> to vector<1x128xf32>
    %cst_515 = arith.constant 1.250000e-01 : f32
    %604 = vector.broadcast %cst_515 : f32 to vector<1x128xf32>
    %605 = arith.mulf %603, %604 : vector<1x128xf32>
    %606 = arith.mulf %600, %600 : vector<1x128xf32>
    %607 = arith.subf %605, %606 : vector<1x128xf32>
    %cst_516 = arith.constant 0.000000e+00 : f32
    %608 = vector.broadcast %cst_516 : f32 to vector<1x128xf32>
    %609 = arith.maximumf %607, %608 : vector<1x128xf32>
    %610 = vector.broadcast %600 : vector<1x128xf32> to vector<8x128xf32>
    %611 = arith.subf %596, %610 : vector<8x128xf32>
    %cst_517 = arith.constant 9.99999974E-6 : f32
    %612 = vector.broadcast %cst_517 : f32 to vector<1x128xf32>
    %613 = arith.addf %609, %612 : vector<1x128xf32>
    %614 = math.rsqrt %613 : vector<1x128xf32>
    %615 = vector.broadcast %614 : vector<1x128xf32> to vector<8x128xf32>
    %616 = arith.mulf %611, %615 : vector<8x128xf32>
    %617 = arith.truncf %616 : vector<8x128xf32> to vector<8x128xbf16>
    %cst_518 = arith.constant 0.000000e+00 : f32
    %618 = vector.broadcast %cst_518 : f32 to vector<2x128xf32>
    %c0_519 = arith.constant 0 : index
    %c0_520 = arith.constant 0 : index
    %c0_521 = arith.constant 0 : index
    %619 = vector.load %arg10[%c0_519, %c0_520, %c0_521] : memref<4x2x8xbf16, #tpu.memory_space<vmem>>, vector<1x2x8xbf16>
    %620 = vector.shape_cast %619 : vector<1x2x8xbf16> to vector<2x8xbf16>
    %cst_522 = arith.constant dense<0.000000e+00> : vector<2x128xf32>
    %621 = tpu.matmul %620, %617, %cst_522 {dimension_numbers = #tpu.dot_dimension_numbers<[1], [0], [0], [1], [0, 0, 1, 1], [], []>} : vector<2x8xbf16>, vector<8x128xbf16>, vector<2x128xf32> -> vector<2x128xf32>
    %622 = arith.truncf %621 : vector<2x128xf32> to vector<2x128xbf16>
    %c0_523 = arith.constant 0 : index
    %c0_524 = arith.constant 0 : index
    %c0_525 = arith.constant 0 : index
    %623 = vector.load %arg11[%c0_523, %c0_524, %c0_525] : memref<4x128x128xbf16, #tpu.memory_space<vmem>>, vector<1x128x128xbf16>
    %624 = vector.shape_cast %623 : vector<1x128x128xbf16> to vector<128x128xbf16>
    %cst_526 = arith.constant dense<0.000000e+00> : vector<2x128xf32>
    %625 = tpu.matmul %622, %624, %cst_526 {dimension_numbers = #tpu.dot_dimension_numbers<[1], [0], [0], [1], [0, 0, 1, 1], [], []>} : vector<2x128xbf16>, vector<128x128xbf16>, vector<2x128xf32> -> vector<2x128xf32>
    %626 = arith.addf %618, %625 : vector<2x128xf32>
    %c1_527 = arith.constant 1 : index
    %c0_528 = arith.constant 0 : index
    %c0_529 = arith.constant 0 : index
    %627 = vector.load %arg10[%c1_527, %c0_528, %c0_529] : memref<4x2x8xbf16, #tpu.memory_space<vmem>>, vector<1x2x8xbf16>
    %628 = vector.shape_cast %627 : vector<1x2x8xbf16> to vector<2x8xbf16>
    %cst_530 = arith.constant dense<0.000000e+00> : vector<2x128xf32>
    %629 = tpu.matmul %628, %617, %cst_530 {dimension_numbers = #tpu.dot_dimension_numbers<[1], [0], [0], [1], [0, 0, 1, 1], [], []>} : vector<2x8xbf16>, vector<8x128xbf16>, vector<2x128xf32> -> vector<2x128xf32>
    %630 = arith.truncf %629 : vector<2x128xf32> to vector<2x128xbf16>
    %c1_531 = arith.constant 1 : index
    %c0_532 = arith.constant 0 : index
    %c0_533 = arith.constant 0 : index
    %631 = vector.load %arg11[%c1_531, %c0_532, %c0_533] : memref<4x128x128xbf16, #tpu.memory_space<vmem>>, vector<1x128x128xbf16>
    %632 = vector.shape_cast %631 : vector<1x128x128xbf16> to vector<128x128xbf16>
    %cst_534 = arith.constant dense<0.000000e+00> : vector<2x128xf32>
    %633 = tpu.matmul %630, %632, %cst_534 {dimension_numbers = #tpu.dot_dimension_numbers<[1], [0], [0], [1], [0, 0, 1, 1], [], []>} : vector<2x128xbf16>, vector<128x128xbf16>, vector<2x128xf32> -> vector<2x128xf32>
    %634 = arith.addf %626, %633 : vector<2x128xf32>
    %c2_535 = arith.constant 2 : index
    %c0_536 = arith.constant 0 : index
    %c0_537 = arith.constant 0 : index
    %635 = vector.load %arg10[%c2_535, %c0_536, %c0_537] : memref<4x2x8xbf16, #tpu.memory_space<vmem>>, vector<1x2x8xbf16>
    %636 = vector.shape_cast %635 : vector<1x2x8xbf16> to vector<2x8xbf16>
    %cst_538 = arith.constant dense<0.000000e+00> : vector<2x128xf32>
    %637 = tpu.matmul %636, %617, %cst_538 {dimension_numbers = #tpu.dot_dimension_numbers<[1], [0], [0], [1], [0, 0, 1, 1], [], []>} : vector<2x8xbf16>, vector<8x128xbf16>, vector<2x128xf32> -> vector<2x128xf32>
    %638 = arith.truncf %637 : vector<2x128xf32> to vector<2x128xbf16>
    %c2_539 = arith.constant 2 : index
    %c0_540 = arith.constant 0 : index
    %c0_541 = arith.constant 0 : index
    %639 = vector.load %arg11[%c2_539, %c0_540, %c0_541] : memref<4x128x128xbf16, #tpu.memory_space<vmem>>, vector<1x128x128xbf16>
    %640 = vector.shape_cast %639 : vector<1x128x128xbf16> to vector<128x128xbf16>
    %cst_542 = arith.constant dense<0.000000e+00> : vector<2x128xf32>
    %641 = tpu.matmul %638, %640, %cst_542 {dimension_numbers = #tpu.dot_dimension_numbers<[1], [0], [0], [1], [0, 0, 1, 1], [], []>} : vector<2x128xbf16>, vector<128x128xbf16>, vector<2x128xf32> -> vector<2x128xf32>
    %642 = arith.addf %634, %641 : vector<2x128xf32>
    %c3_543 = arith.constant 3 : index
    %c0_544 = arith.constant 0 : index
    %c0_545 = arith.constant 0 : index
    %643 = vector.load %arg10[%c3_543, %c0_544, %c0_545] : memref<4x2x8xbf16, #tpu.memory_space<vmem>>, vector<1x2x8xbf16>
    %644 = vector.shape_cast %643 : vector<1x2x8xbf16> to vector<2x8xbf16>
    %cst_546 = arith.constant dense<0.000000e+00> : vector<2x128xf32>
    %645 = tpu.matmul %644, %617, %cst_546 {dimension_numbers = #tpu.dot_dimension_numbers<[1], [0], [0], [1], [0, 0, 1, 1], [], []>} : vector<2x8xbf16>, vector<8x128xbf16>, vector<2x128xf32> -> vector<2x128xf32>
    %646 = arith.truncf %645 : vector<2x128xf32> to vector<2x128xbf16>
    %c3_547 = arith.constant 3 : index
    %c0_548 = arith.constant 0 : index
    %c0_549 = arith.constant 0 : index
    %647 = vector.load %arg11[%c3_547, %c0_548, %c0_549] : memref<4x128x128xbf16, #tpu.memory_space<vmem>>, vector<1x128x128xbf16>
    %648 = vector.shape_cast %647 : vector<1x128x128xbf16> to vector<128x128xbf16>
    %cst_550 = arith.constant dense<0.000000e+00> : vector<2x128xf32>
    %649 = tpu.matmul %646, %648, %cst_550 {dimension_numbers = #tpu.dot_dimension_numbers<[1], [0], [0], [1], [0, 0, 1, 1], [], []>} : vector<2x128xbf16>, vector<128x128xbf16>, vector<2x128xf32> -> vector<2x128xf32>
    %650 = arith.addf %642, %649 : vector<2x128xf32>
    %c0_551 = arith.constant 0 : index
    %c0_552 = arith.constant 0 : index
    %651 = vector.load %arg12[%c0_551, %c0_552] : memref<1x128xf32, #tpu.memory_space<vmem>>, vector<1x128xf32>
    %652 = vector.broadcast %651 : vector<1x128xf32> to vector<2x128xf32>
    %653 = arith.addf %650, %652 : vector<2x128xf32>
    %c0_553 = arith.constant 0 : index
    %c0_554 = arith.constant 0 : index
    %654 = vector.load %arg13[%c0_553, %c0_554] : memref<2x128xf32, #tpu.memory_space<vmem>>, vector<2x128xf32>
    tpu.vector_store %arg13[%c0_553, %c0_554], %653 {strides = array<i32>} : memref<2x128xf32, #tpu.memory_space<vmem>>, vector<2x128xf32>,
    return
  }
  func.func @transform_0(%arg0: i32) -> (i32, i32) {
    %c0_i32 = arith.constant 0 : i32
    %c0_i32_0 = arith.constant 0 : i32
    %c0_i32_1 = arith.constant 0 : i32
    return %c0_i32, %c0_i32_0 : i32, i32
  }
  func.func @transform_1(%arg0: i32) -> (i32, i32, i32) {
    %c0_i32 = arith.constant 0 : i32
    %c0_i32_0 = arith.constant 0 : i32
    %c0_i32_1 = arith.constant 0 : i32
    %c0_i32_2 = arith.constant 0 : i32
    return %c0_i32, %c0_i32_0, %c0_i32_1 : i32, i32, i32
  }
  func.func @transform_2(%arg0: i32) -> (i32, i32, i32) {
    %c0_i32 = arith.constant 0 : i32
    %c0_i32_0 = arith.constant 0 : i32
    %c0_i32_1 = arith.constant 0 : i32
    %c0_i32_2 = arith.constant 0 : i32
    return %c0_i32, %c0_i32_0, %c0_i32_1 : i32, i32, i32
  }
  func.func @transform_3(%arg0: i32) -> (i32, i32, i32) {
    %c0_i32 = arith.constant 0 : i32
    %c0_i32_0 = arith.constant 0 : i32
    %c0_i32_1 = arith.constant 0 : i32
    %c0_i32_2 = arith.constant 0 : i32
    return %c0_i32, %c0_i32_0, %c0_i32_1 : i32, i32, i32
  }
  func.func @transform_4(%arg0: i32) -> (i32, i32) {
    %c0_i32 = arith.constant 0 : i32
    %c0_i32_0 = arith.constant 0 : i32
    %c0_i32_1 = arith.constant 0 : i32
    return %c0_i32, %c0_i32_0 : i32, i32
  }
  func.func @transform_5(%arg0: i32) -> (i32, i32, i32) {
    %c0_i32 = arith.constant 0 : i32
    %c0_i32_0 = arith.constant 0 : i32
    %c0_i32_1 = arith.constant 0 : i32
    %c0_i32_2 = arith.constant 0 : i32
    return %c0_i32, %c0_i32_0, %c0_i32_1 : i32, i32, i32
  }
  func.func @transform_6(%arg0: i32) -> (i32, i32) {
    %c0_i32 = arith.constant 0 : i32
    %c0_i32_0 = arith.constant 0 : i32
    %c0_i32_1 = arith.constant 0 : i32
    return %c0_i32, %c0_i32_0 : i32, i32
  }
  func.func @transform_7(%arg0: i32) -> (i32, i32, i32) {
    %c0_i32 = arith.constant 0 : i32
    %c0_i32_0 = arith.constant 0 : i32
    %c0_i32_1 = arith.constant 0 : i32
    %c0_i32_2 = arith.constant 0 : i32
    return %c0_i32, %c0_i32_0, %c0_i32_1 : i32, i32, i32
  }
  func.func @transform_8(%arg0: i32) -> (i32, i32) {
    %c0_i32 = arith.constant 0 : i32
    %c0_i32_0 = arith.constant 0 : i32
    %c0_i32_1 = arith.constant 0 : i32
    return %c0_i32, %c0_i32_0 : i32, i32
  }
  func.func @transform_9(%arg0: i32) -> (i32, i32, i32) {
    %c0_i32 = arith.constant 0 : i32
    %c0_i32_0 = arith.constant 0 : i32
    %c0_i32_1 = arith.constant 0 : i32
    %c0_i32_2 = arith.constant 0 : i32
    return %c0_i32, %c0_i32_0, %c0_i32_1 : i32, i32, i32
  }
  func.func @transform_10(%arg0: i32) -> (i32, i32, i32) {
    %c0_i32 = arith.constant 0 : i32
    %c0_i32_0 = arith.constant 0 : i32
    %c0_i32_1 = arith.constant 0 : i32
    %c0_i32_2 = arith.constant 0 : i32
    return %c0_i32, %c0_i32_0, %c0_i32_1 : i32, i32, i32
  }
  func.func @transform_11(%arg0: i32) -> (i32, i32) {
    %c0_i32 = arith.constant 0 : i32
    %c0_i32_0 = arith.constant 0 : i32
    %c0_i32_1 = arith.constant 0 : i32
    return %c0_i32, %c0_i32_0 : i32, i32
  }
  func.func @transform_12(%arg0: i32) -> (i32, i32) {
    %c0_i32 = arith.constant 0 : i32
    %c0_i32_0 = arith.constant 0 : i32
    %c0_i32_1 = arith.constant 0 : i32
    return %c0_i32, %c0_i32_0 : i32, i32
  }
}

</mosaic_0001>

<bundles_post_ra>
// kernel: network_forward.1
= control target key start
LH: loop header
LB: loop body
LE: loop exit
PB: predicated region body
PF: predicated region fallthrough
CT: control target
= control target key end

     0   :  { %17 = vsyncpa [#allocation3], 0  ;;  %s6320_s0 = inlined_call_operand.vmem [shape: bf16[32,4], index: 0, kind: input, shape index: {}]   ;;  %s6321_s1 = inlined_call_operand.vmem [shape: bf16[49,8,32], index: 1, kind: input, shape index: {}]   ;;  %s6322_s2 = inlined_call_operand.vmem [shape: bf16[9,8,8], index: 2, kind: input, shape index: {}]   ;;  %s6323_s3 = inlined_call_operand.hbm [shape: bf16[49,4,128], index: 3, kind: input, shape index: {}]   ;;  %s6324_s4 = inlined_call_operand.vmem [shape: f32[1,128], index: 4, kind: input, shape index: {}]   ;;  %s6325_s5 = inlined_call_operand.hbm [shape: bf16[9,128,128], index: 5, kind: input, shape index: {}]   ;;  %s6326_s6 = inlined_call_operand.vmem [shape: f32[1,128], index: 6, kind: input, shape index: {}]   ;;  %s6327_s7 = inlined_call_operand.hbm [shape: bf16[9,128,128], index: 7, kind: input, shape index: {}]   ;;  %s6328_s8 = inlined_call_operand.vmem [shape: f32[1,128], index: 8, kind: input, shape index: {}]   ;;  %s6329_s9 = inlined_call_operand.vmem [shape: bf16[4,2,8], index: 9, kind: input, shape index: {}]   ;;  %s6330_s10 = inlined_call_operand.vmem [shape: bf16[4,128,128], index: 10, kind: input, shape index: {}]   ;;  %s6331_s11 = inlined_call_operand.vmem [shape: f32[1,128], index: 11, kind: input, shape index: {}]   ;;  %s6332_s12 = inlined_call_operand.hbm [shape: f32[2,128], index: 12, kind: output, shape index: {}]  }
   0x1   :  { %18 = vsyncpa [#allocation6], 0  ;;  %s45_s23 = sshll.u32 %s6325_s5, 4  ;;  %s46_s23 = int_to_ptr.hbm [resolvable:$true] %s45_s23 }
   0x2   :  { %19 = vsyncpa [#allocation4], 0  ;;  %s5600_s24 = smov [#allocation5]   ;;  %s30_s28 = sshll.u32 %s6323_s3, 4  ;;  %s31_s28 = int_to_ptr.hbm [resolvable:$true] %s30_s28 }
   0x3   :  { %s47_s25 = sshll.u32 %s5600_s24, 4  ;;  %s5601_s29 = smov 64   ;;  %s48_s25 = int_to_ptr.vmem [resolvable:$true] %s47_s25 }
   0x4   :  { %s5602_s30 = smov 4   ;;  %s5603_s13 = smov [#allocation2]  }
   0x5   :  { %53 = dma.hbm_to_vmem [thread:$0]  %s46_s23, 9216, %s48_s25, [#allocation6], %s5601_s29, %s5601_s29, %s5602_s30  }
   0x6   :  { %s32_s14 = sshll.u32 %s5603_s13, 4  ;;  %s5604_s15 = smov 32   ;;  %s33_s14 = int_to_ptr.vmem [resolvable:$true] %s32_s14 }
   0x7   :  { %s5605_s16 = smov 2   ;;  %s60_s18 = sshll.u32 %s6327_s7, 4  ;;  %s61_s18 = int_to_ptr.hbm [resolvable:$true] %s60_s18 }
   0x8   :  { %38 = dma.hbm_to_vmem [thread:$0]  %s31_s28, 1568, %s33_s14, [#allocation3], %s5604_s15, %s5604_s15, %s5605_s16  }
   0x9   :  { %s5606_s19 = smov [#allocation7]  }
   0xa   :  { %s62_s20 = sshll.u32 %s5606_s19, 4  ;;  %s63_s20 = int_to_ptr.vmem [resolvable:$true] %s62_s20 }
   0xb   :  { %68 = dma.hbm_to_vmem [thread:$0]  %s61_s18, 9216, %s63_s20, [#allocation6], %s5601_s29, %s5601_s29, %s5602_s30  }
   0xc   :  { %5594 = dma.done.wait [#allocation3], 1568  }
   0xd   :  { %5595 = vsyncadd [#allocation3], 4294965728 }
   0xe   :  { %5596 = dma.done.wait [#allocation6], 18432  }
   0xf   :  { %5597 = vsyncadd [#allocation6], 4294948864  ;;  %v5685_v0 = vld [vmem:[%s6320_s0 + $0x8] sm:$0xff]  ;;  %v5691_v1 = vld [vmem:[%s6320_s0] sm:$0xff]  ;;  %vm107_vm0 = vcmask 261120   ;;  %vm151_vm1 = vcmask 1041408  }
  0x10   :  { %117 = vmatpush.bf16.msra.mxu1 %v5685_v0  ;;  %239 = vmatpush.bf16.msra.mxu0 %v5685_v0  ;;  %v94_v2 = vld [vmem:[%s6321_s1] sm:$0xf]  ;;  %v4372_v3 = vld [vmem:[%s6321_s1 + $0x4] sm:$0xf]  ;;  %vm147_vm2 = vcmask 31744   ;;  %vm2157_vm6 = vcmask 1043456  }
  0x11   :  { %v125_v4 = vld [vmem:[#allocation2] sm:$0x3]  ;;  %v146_v6 = vld [vmem:[#allocation2 + $0x2] sm:$0x3]  ;;  %v4379_v10 = vld [vmem:[%s6321_s1 + $0xc] sm:$0xf] }
  0x12   :  { %v172_v5 = vsel %vm151_vm1, %v125_v4, 0  ;;  %v153_v7 = vsel %vm151_vm1, %v146_v6, 0  ;;  %v4385_v14 = vld [vmem:[%s6321_s1 + $0x14] sm:$0xf]  ;;  %v4376_v16 = vld [vmem:[%s6321_s1 + $0x8] sm:$0xf] }
  0x13   :  { %181 = vmatpush.bf16.msra.mxu3 %v172_v5  ;;  %162 = vmatpush.bf16.msra.mxu2 %v153_v7  ;;  %v4391_v17 = vld [vmem:[%s6321_s1 + $0x1c] sm:$0xf]  ;;  %v4382_v18 = vld [vmem:[%s6321_s1 + $0x10] sm:$0xf]  ;;  %v4397_v19 = vld [vmem:[%s6321_s1 + $0x24] sm:$0xf] }
  0x14   :  { %118 = vmatpush.bf16.msra.mxu1 %v5691_v1  ;;  %240 = vmatpush.bf16.msra.mxu0 %v5691_v1  ;;  %v4388_v20 = vld [vmem:[%s6321_s1 + $0x18] sm:$0xf]  ;;  %v4403_v21 = vld [vmem:[%s6321_s1 + $0x2c] sm:$0xf]  ;;  %v4394_v22 = vld [vmem:[%s6321_s1 + $0x20] sm:$0xf] }
  0x15   :  { %v4409_v23 = vld [vmem:[%s6321_s1 + $0x34] sm:$0xf]  ;;  %v4400_v24 = vld [vmem:[%s6321_s1 + $0x28] sm:$0xf]  ;;  %v4415_v25 = vld [vmem:[%s6321_s1 + $0x3c] sm:$0xf] }
  0x16   :  { %v4406_v26 = vld [vmem:[%s6321_s1 + $0x30] sm:$0xf]  ;;  %v4421_v27 = vld [vmem:[%s6321_s1 + $0x44] sm:$0xf]  ;;  %v4412_v28 = vld [vmem:[%s6321_s1 + $0x38] sm:$0xf] }
  0x17   :  { %4371 = vmatmul.msk.bf16.vlgmr.msra.gmra.mxu1 %vm107_vm0, %v94_v2  ;;  %198 = vmatpush.bf16.msrb.mxu2 %v5685_v0  ;;  %v207_v29 = vld [vmem:[#allocation2 + $0x4] sm:$0x3]  ;;  %v248_v32 = vld [vmem:[#allocation2 + $0x6] sm:$0x3]  ;;  %v4427_v36 = vld [vmem:[%s6321_s1 + $0x4c] sm:$0xf] }
  0x18   :  { %137 = vmatpush.bf16.msrb.mxu1 %v5685_v0  ;;  %321 = vmatpush.bf16.msrb.mxu0 %v5685_v0  ;;  %v212_v30 = vsel %vm151_vm1, %v207_v29, 0  ;;  %v253_v33 = vsel %vm151_vm1, %v248_v32, 0  ;;  %v4418_v38 = vld [vmem:[%s6321_s1 + $0x40] sm:$0xf]  ;;  %v289_v39 = vld [vmem:[#allocation2 + $0x8] sm:$0x3] }
  0x19   :  { %4380 = vmatmul.msk.bf16.vlgmr.msra.gmra.mxu0 %vm107_vm0, %v4379_v10  ;;  %221 = vmatpush.bf16.msrb.mxu3 %v212_v30  ;;  %v294_v40 = vsel %vm151_vm1, %v289_v39, 0  ;;  %v330_v44 = vld [vmem:[#allocation2 + $0xa] sm:$0x3]  ;;  %v4433_v48 = vld [vmem:[%s6321_s1 + $0x54] sm:$0xf]  ;;  %vm2153_vm7 = vcmask 64512  }
  0x1a   :  { %v335_v45 = vsel %vm151_vm1, %v330_v44, 0  ;;  %v4424_v50 = vld [vmem:[%s6321_s1 + $0x48] sm:$0xf]  ;;  %v371_v51 = vld [vmem:[#allocation2 + $0xc] sm:$0x3]  ;;  %s5607_s7 = smov [#allocation8]  }
  0x1b   :  { %199 = vmatpush.bf16.msrb.mxu2 %v5691_v1  ;;  %v376_v55 = vsel %vm151_vm1, %v371_v51, 0  ;;  %v412_v56 = vld [vmem:[#allocation2 + $0xe] sm:$0x3]  ;;  %v4439_v60 = vld [vmem:[%s6321_s1 + $0x5c] sm:$0xf]  ;;  %s4350_s24 = sshll.u32 %s5607_s7, 4  ;;  %s4351_s24 = int_to_ptr.vmem [resolvable:$true] %s4350_s24 }
  0x1c   :  { %138 = vmatpush.bf16.msrb.mxu1 %v5691_v1  ;;  %322 = vmatpush.bf16.msrb.mxu0 %v5691_v1  ;;  %v417_v57 = vsel %vm151_vm1, %v412_v56, 0  ;;  %v4430_v62 = vld [vmem:[%s6321_s1 + $0x50] sm:$0xf]  ;;  %v4445_v10 = vld [vmem:[%s6321_s1 + $0x64] sm:$0xf]  ;;  %s4352_s26 = sshll.u32 %s6332_s12, 4  ;;  %s4353_s26 = int_to_ptr.hbm [resolvable:$true] %s4352_s26 }
  0x1d   :  { %v453_v63 = vld [vmem:[#allocation2 + $0x10] sm:$0x3]  ;;  %v494_v6 = vld [vmem:[#allocation2 + $0x12] sm:$0x3]  ;;  %v658_v30 = vld [vmem:[#allocation2 + $0x1a] sm:$0x3] }
  0x1e   :  { %v458_v5 = vsel %vm151_vm1, %v453_v63, 0  ;;  %v499_v7 = vsel %vm151_vm1, %v494_v6, 0 }
  0x20   :  { %403 = vmatpush.bf16.msra.mxu0 %v5685_v0  ;;  %262 = vmatpush.bf16.msra.mxu1 %v253_v33 }
  0x24   :  { %404 = vmatpush.bf16.msra.mxu0 %v5691_v1 }
  0x27   :  { %4373 = vmatmul.msk.bf16.vlgmr.msrb.gmra.mxu1 %vm107_vm0, %v4372_v3 }
  0x28   :  { %344 = vmatpush.bf16.msrb.mxu1 %v335_v45 }
  0x29   :  { %4386 = vmatmul.msk.bf16.vlgmr.msrb.gmra.mxu0 %vm107_vm0, %v4385_v14 }
  0x2a   :  { %485 = vmatpush.bf16.msrb.mxu0 %v5685_v0 }
  0x2e   :  { %486 = vmatpush.bf16.msrb.mxu0 %v5691_v1 }
  0x39   :  { %4392 = vmatmul.msk.bf16.vlgmr.msra.gmra.mxu0 %vm107_vm0, %v4391_v17 }
  0x3a   :  { %567 = vmatpush.bf16.msra.mxu0 %v5685_v0 }
  0x3e   :  { %568 = vmatpush.bf16.msra.mxu0 %v5691_v1 }
  0x49   :  { %4398 = vmatmul.msk.bf16.vlgmr.msrb.gmra.mxu0 %vm107_vm0, %v4397_v19 }
  0x4a   :  { %649 = vmatpush.bf16.msrb.mxu0 %v5685_v0 }
  0x4e   :  { %650 = vmatpush.bf16.msrb.mxu0 %v5691_v1 }
  0x59   :  { %4404 = vmatmul.msk.bf16.vlgmr.msra.gmra.mxu0 %vm107_vm0, %v4403_v21 }
  0x5a   :  { %731 = vmatpush.bf16.msra.mxu0 %v5685_v0 }
  0x5e   :  { %732 = vmatpush.bf16.msra.mxu0 %v5691_v1 }
  0x69   :  { %4410 = vmatmul.msk.bf16.vlgmr.msrb.gmra.mxu0 %vm107_vm0, %v4409_v23 }
  0x6a   :  { %813 = vmatpush.bf16.msrb.mxu0 %v5685_v0 }
  0x6e   :  { %814 = vmatpush.bf16.msrb.mxu0 %v5691_v1 }
  0x79   :  { %4416 = vmatmul.msk.bf16.vlgmr.msra.gmra.mxu0 %vm107_vm0, %v4415_v25  ;;  %v617_v25 = vld [vmem:[#allocation2 + $0x18] sm:$0x3] }
  0x7a   :  { %895 = vmatpush.bf16.msra.mxu0 %v5685_v0  ;;  %v622_v29 = vsel %vm151_vm1, %v617_v25, 0  ;;  %v4472_v25 = vld [vmem:[%s6321_s1 + $0x88] sm:$0xf] }
  0x7e   :  { %896 = vmatpush.bf16.msra.mxu0 %v5691_v1 }
  0x89   :  { %4422 = vmatmul.msk.bf16.vlgmr.msrb.gmra.mxu0 %vm107_vm0, %v4421_v27 }
  0x8a   :  { %977 = vmatpush.bf16.msrb.mxu0 %v5685_v0 }
  0x8e   :  { %978 = vmatpush.bf16.msrb.mxu0 %v5691_v1 }
  0x94   :  { %v120_v8 = vpop.f32.mrf.mxu1 }
  0x95   :  { %v124_v9 = vpack.c.bf16 %v120_v8, %v120_v8 }
  0x96   :  { %v242_v35 = vpop.f32.mrf.mxu0 }
  0x97   :  { %4375 = vmatmul.msk.bf16.vlgmr.msra.gmra.mxu3 %vm147_vm2, %v124_v9  ;;  %v246_v37 = vpack.c.bf16 %v242_v35, %v242_v35 }
  0x98   :  { %303 = vmatpush.bf16.msra.mxu3 %v294_v40 }
  0x99   :  { %4428 = vmatmul.msk.bf16.vlgmr.msra.gmra.mxu0 %vm107_vm0, %v4427_v36  ;;  %4381 = vmatmul.msk.bf16.vlgmr.msra.gmra.mxu1 %vm147_vm2, %v246_v37  ;;  %v4448_v36 = vld [vmem:[%s6321_s1 + $0x68] sm:$0xf]  ;;  %v699_v37 = vld [vmem:[#allocation2 + $0x1c] sm:$0x3] }
  0x9a   :  { %1059 = vmatpush.bf16.msra.mxu0 %v5685_v0  ;;  %426 = vmatpush.bf16.msra.mxu1 %v417_v57 }
  0x9c   :  { %v122_v11 = vpop.f32.mrf.mxu1 }
  0x9e   :  { %1060 = vmatpush.bf16.msra.mxu0 %v5691_v1  ;;  %v244_v42 = vpop.f32.mrf.mxu0 }
  0x9f   :  { %v740_v42 = vld [vmem:[#allocation2 + $0x1e] sm:$0x3] }
  0xa0   :  { %v745_v44 = vsel %vm151_vm1, %v740_v42, 0  ;;  %v4478_v42 = vld [vmem:[%s6321_s1 + $0x90] sm:$0xf] }
  0xa4   :  { %v140_v12 = vpop.f32.mrf.mxu1 }
  0xa5   :  { %v144_v13 = vpack.c.bf16 %v140_v12, %v140_v12  ;;  %v4436_v12 = vld [vmem:[%s6321_s1 + $0x58] sm:$0xf] }
  0xa6   :  { %v324_v47 = vpop.f32.mrf.mxu0 }
  0xa7   :  { %4374 = vmatmul.msk.bf16.vlgmr.msra.gmra.mxu2 %vm147_vm2, %v144_v13  ;;  %v328_v49 = vpack.c.bf16 %v324_v47, %v324_v47  ;;  %v535_v13 = vld [vmem:[#allocation2 + $0x14] sm:$0x3]  ;;  %v4463_v47 = vld [vmem:[%s6321_s1 + $0x7c] sm:$0xf] }
  0xa8   :  { %280 = vmatpush.bf16.msra.mxu2 %v5685_v0  ;;  %v540_v17 = vsel %vm151_vm1, %v535_v13, 0  ;;  %v945_v13 = vld [vmem:[#allocation2 + $0x28] sm:$0x3] }
  0xa9   :  { %4434 = vmatmul.msk.bf16.vlgmr.msrb.gmra.mxu0 %vm107_vm0, %v4433_v48  ;;  %4387 = vmatmul.msk.bf16.vlgmr.msrb.gmra.mxu1 %vm147_vm2, %v328_v49  ;;  %v4454_v49 = vld [vmem:[%s6321_s1 + $0x70] sm:$0xf] }
  0xaa   :  { %1141 = vmatpush.bf16.msrb.mxu0 %v5685_v0  ;;  %508 = vmatpush.bf16.msrb.mxu1 %v499_v7 }
  0xac   :  { %v142_v15 = vpop.f32.mrf.mxu1  ;;  %281 = vmatpush.bf16.msra.mxu2 %v5691_v1 }
  0xae   :  { %1142 = vmatpush.bf16.msrb.mxu0 %v5691_v1  ;;  %v326_v53 = vpop.f32.mrf.mxu0 }
  0xb6   :  { %v406_v59 = vpop.f32.mrf.mxu0 }
  0xb7   :  { %4377 = vmatmul.msk.bf16.vlgmr.msrb.gmra.mxu2 %vm107_vm0, %v4376_v16  ;;  %v410_v61 = vpack.c.bf16 %v406_v59, %v406_v59  ;;  %v4469_v59 = vld [vmem:[%s6321_s1 + $0x84] sm:$0xf] }
  0xb8   :  { %362 = vmatpush.bf16.msrb.mxu2 %v5685_v0 }
  0xb9   :  { %4440 = vmatmul.msk.bf16.vlgmr.msra.gmra.mxu0 %vm107_vm0, %v4439_v60  ;;  %4393 = vmatmul.msk.bf16.vlgmr.msra.gmra.mxu1 %vm147_vm2, %v410_v61  ;;  %v4460_v61 = vld [vmem:[%s6321_s1 + $0x78] sm:$0xf] }
  0xba   :  { %1223 = vmatpush.bf16.msra.mxu0 %v5685_v0 }
  0xbc   :  { %363 = vmatpush.bf16.msrb.mxu2 %v5691_v1 }
  0xbe   :  { %1224 = vmatpush.bf16.msra.mxu0 %v5691_v1  ;;  %v408_v3 = vpop.f32.mrf.mxu0 }
  0xc6   :  { %v488_v9 = vpop.f32.mrf.mxu0 }
  0xc7   :  { %4383 = vmatmul.msk.bf16.vlgmr.msra.gmra.mxu2 %vm107_vm0, %v4382_v18  ;;  %v492_v11 = vpack.c.bf16 %v488_v9, %v488_v9  ;;  %v576_v18 = vld [vmem:[#allocation2 + $0x16] sm:$0x3] }
  0xc8   :  { %444 = vmatpush.bf16.msra.mxu2 %v5685_v0  ;;  %v581_v19 = vsel %vm151_vm1, %v576_v18, 0  ;;  %v950_v18 = vsel %vm151_vm1, %v945_v13, 0 }
  0xc9   :  { %4446 = vmatmul.msk.bf16.vlgmr.msrb.gmra.mxu0 %vm107_vm0, %v4445_v10  ;;  %4399 = vmatmul.msk.bf16.vlgmr.msrb.gmra.mxu1 %vm147_vm2, %v492_v11  ;;  %v4475_v10 = vld [vmem:[%s6321_s1 + $0x8c] sm:$0xf]  ;;  %v4466_v11 = vld [vmem:[%s6321_s1 + $0x80] sm:$0xf] }
  0xca   :  { %1305 = vmatpush.bf16.msrb.mxu0 %v5685_v0  ;;  %590 = vmatpush.bf16.msra.mxu1 %v581_v19  ;;  %v986_v19 = vld [vmem:[#allocation2 + $0x2a] sm:$0x3] }
  0xcc   :  { %445 = vmatpush.bf16.msra.mxu2 %v5691_v1 }
  0xce   :  { %1306 = vmatpush.bf16.msrb.mxu0 %v5691_v1  ;;  %v490_v15 = vpop.f32.mrf.mxu0 }
  0xd6   :  { %v570_v21 = vpop.f32.mrf.mxu0 }
  0xd7   :  { %4389 = vmatmul.msk.bf16.vlgmr.msrb.gmra.mxu2 %vm107_vm0, %v4388_v20  ;;  %v574_v23 = vpack.c.bf16 %v570_v21, %v570_v21 }
  0xd8   :  { %526 = vmatpush.bf16.msrb.mxu2 %v5685_v0 }
  0xd9   :  { %4405 = vmatmul.msk.bf16.vlgmr.msra.gmra.mxu1 %vm147_vm2, %v574_v23 }
  0xdc   :  { %527 = vmatpush.bf16.msrb.mxu2 %v5691_v1 }
  0xde   :  { %v572_v27 = vpop.f32.mrf.mxu0 }
  0xdf   :  { %v1027_v27 = vld [vmem:[#allocation2 + $0x2c] sm:$0x3] }
  0xe6   :  { %v652_v33 = vpop.f32.mrf.mxu0 }
  0xe7   :  { %4395 = vmatmul.msk.bf16.vlgmr.msra.gmra.mxu2 %vm107_vm0, %v4394_v22  ;;  %v4451_v22 = vld [vmem:[%s6321_s1 + $0x6c] sm:$0xf]  ;;  %v656_v35 = vpack.c.bf16 %v652_v33, %v652_v33 }
  0xe8   :  { %608 = vmatpush.bf16.msra.mxu2 %v5685_v0  ;;  %4452 = vmatmul.msk.bf16.vlgmr.msra.gmra.mxu0 %vm107_vm0, %v4451_v22 }
  0xe9   :  { %1387 = vmatpush.bf16.msra.mxu0 %v5685_v0 }
  0xec   :  { %609 = vmatpush.bf16.msra.mxu2 %v5691_v1 }
  0xed   :  { %1388 = vmatpush.bf16.msra.mxu0 %v5691_v1 }
  0xee   :  { %v654_v39 = vpop.f32.mrf.mxu0 }
  0xf7   :  { %4401 = vmatmul.msk.bf16.vlgmr.msrb.gmra.mxu2 %vm107_vm0, %v4400_v24  ;;  %v4442_v24 = vld [vmem:[%s6321_s1 + $0x60] sm:$0xf] }
  0xf8   :  { %690 = vmatpush.bf16.msrb.mxu2 %v5685_v0 }
  0xfc   :  { %691 = vmatpush.bf16.msrb.mxu2 %v5691_v1 }
 0x107   :  { %4407 = vmatmul.msk.bf16.vlgmr.msra.gmra.mxu2 %vm107_vm0, %v4406_v26 }
 0x108   :  { %772 = vmatpush.bf16.msra.mxu2 %v5685_v0 }
 0x10c   :  { %773 = vmatpush.bf16.msra.mxu2 %v5691_v1 }
 0x117   :  { %4413 = vmatmul.msk.bf16.vlgmr.msrb.gmra.mxu2 %vm107_vm0, %v4412_v28 }
 0x118   :  { %854 = vmatpush.bf16.msrb.mxu2 %v5685_v0 }
 0x11a   :  { %v183_v31 = vpop.f32.mrf.mxu3 }
 0x11c   :  { %855 = vmatpush.bf16.msrb.mxu2 %v5691_v1 }
 0x122   :  { %v185_v34 = vpop.f32.mrf.mxu3 }
 0x123   :  { %v4457_v34 = vld [vmem:[%s6321_s1 + $0x74] sm:$0xf] }
 0x124   :  { %4458 = vmatmul.msk.bf16.vlgmr.msrb.gmra.mxu0 %vm107_vm0, %v4457_v34  ;;  %v1068_v34 = vld [vmem:[#allocation2 + $0x2e] sm:$0x3] }
 0x125   :  { %1469 = vmatpush.bf16.msrb.mxu0 %v5685_v0 }
 0x127   :  { %4419 = vmatmul.msk.bf16.vlgmr.msra.gmra.mxu2 %vm107_vm0, %v4418_v38 }
 0x128   :  { %936 = vmatpush.bf16.msra.mxu2 %v5685_v0 }
 0x129   :  { %1470 = vmatpush.bf16.msrb.mxu0 %v5691_v1 }
 0x12a   :  { %v164_v41 = vpop.f32.mrf.mxu2 }
 0x12b   :  { %v5821_v43 = vadd.f32 %v183_v31, %v164_v41  ;;  %v663_v31 = vsel %vm151_vm1, %v658_v30, 0  ;;  %v704_v41 = vsel %vm151_vm1, %v699_v37, 0 }
 0x12c   :  { %937 = vmatpush.bf16.msra.mxu2 %v5691_v1  ;;  %672 = vmatpush.bf16.msrb.mxu1 %v663_v31 }
 0x12f   :  { %4411 = vmatmul.msk.bf16.vlgmr.msrb.gmra.mxu1 %vm147_vm2, %v656_v35 }
 0x130   :  { %754 = vmatpush.bf16.msra.mxu1 %v745_v44 }
 0x132   :  { %v166_v46 = vpop.f32.mrf.mxu2 }
 0x133   :  { %v734_v46 = vpop.f32.mrf.mxu0 }
 0x134   :  { %v738_v48 = vpack.c.bf16 %v734_v46, %v734_v46  ;;  %4464 = vmatmul.msk.bf16.vlgmr.msra.gmra.mxu0 %vm107_vm0, %v4463_v47 }
 0x135   :  { %1551 = vmatpush.bf16.msra.mxu0 %v5685_v0 }
 0x137   :  { %4425 = vmatmul.msk.bf16.vlgmr.msrb.gmra.mxu2 %vm107_vm0, %v4424_v50  ;;  %v781_v50 = vld [vmem:[#allocation2 + $0x20] sm:$0x3] }
 0x138   :  { %1018 = vmatpush.bf16.msrb.mxu2 %v5685_v0 }
 0x139   :  { %1552 = vmatpush.bf16.msra.mxu0 %v5691_v1 }
 0x13a   :  { %v201_v52 = vpop.f32.mrf.mxu2 }
 0x13b   :  { %v205_v54 = vpack.c.bf16 %v201_v52, %v201_v52  ;;  %v736_v52 = vpop.f32.mrf.mxu0 }
 0x13c   :  { %1019 = vmatpush.bf16.msrb.mxu2 %v5691_v1  ;;  %v1150_v52 = vld [vmem:[#allocation2 + $0x32] sm:$0x3] }
 0x13d   :  { %4378 = vmatmul.msk.bf16.vlgmr.msrb.gmra.mxu3 %vm147_vm2, %v205_v54  ;;  %v786_v54 = vsel %vm151_vm1, %v781_v50, 0 }
 0x13e   :  { %385 = vmatpush.bf16.msrb.mxu3 %v376_v55  ;;  %v822_v55 = vld [vmem:[#allocation2 + $0x22] sm:$0x3] }
 0x13f   :  { %4417 = vmatmul.msk.bf16.vlgmr.msra.gmra.mxu1 %vm147_vm2, %v738_v48  ;;  %v827_v56 = vsel %vm151_vm1, %v822_v55, 0 }
 0x140   :  { %836 = vmatpush.bf16.msrb.mxu1 %v827_v56 }
 0x142   :  { %v203_v58 = vpop.f32.mrf.mxu2 }
 0x143   :  { %v816_v58 = vpop.f32.mrf.mxu0 }
 0x144   :  { %v820_v60 = vpack.c.bf16 %v816_v58, %v816_v58  ;;  %4470 = vmatmul.msk.bf16.vlgmr.msrb.gmra.mxu0 %vm107_vm0, %v4469_v59  ;;  %v4493_v59 = vld [vmem:[%s6321_s1 + $0xa4] sm:$0xf] }
 0x145   :  { %1633 = vmatpush.bf16.msrb.mxu0 %v5685_v0 }
 0x147   :  { %4431 = vmatmul.msk.bf16.vlgmr.msra.gmra.mxu2 %vm107_vm0, %v4430_v62  ;;  %v863_v62 = vld [vmem:[#allocation2 + $0x24] sm:$0x3] }
 0x148   :  { %1100 = vmatpush.bf16.msra.mxu2 %v5685_v0 }
 0x149   :  { %1634 = vmatpush.bf16.msrb.mxu0 %v5691_v1 }
 0x14a   :  { %v283_v2 = vpop.f32.mrf.mxu2 }
 0x14b   :  { %v287_v4 = vpack.c.bf16 %v283_v2, %v283_v2  ;;  %v818_v2 = vpop.f32.mrf.mxu0 }
 0x14c   :  { %1101 = vmatpush.bf16.msra.mxu2 %v5691_v1 }
 0x14d   :  { %4384 = vmatmul.msk.bf16.vlgmr.msra.gmra.mxu3 %vm147_vm2, %v287_v4  ;;  %v868_v4 = vsel %vm151_vm1, %v863_v62, 0 }
 0x14e   :  { %467 = vmatpush.bf16.msra.mxu3 %v458_v5  ;;  %v904_v5 = vld [vmem:[#allocation2 + $0x26] sm:$0x3] }
 0x14f   :  { %4423 = vmatmul.msk.bf16.vlgmr.msrb.gmra.mxu1 %vm147_vm2, %v820_v60  ;;  %v909_v6 = vsel %vm151_vm1, %v904_v5, 0  ;;  %v4484_v60 = vld [vmem:[%s6321_s1 + $0x98] sm:$0xf] }
 0x150   :  { %918 = vmatpush.bf16.msra.mxu1 %v909_v6 }
 0x152   :  { %v285_v8 = vpop.f32.mrf.mxu2 }
 0x153   :  { %v264_v8 = vpop.f32.mrf.mxu1  ;;  %v898_v9 = vpop.f32.mrf.mxu0 }
 0x154   :  { %4476 = vmatmul.msk.bf16.vlgmr.msra.gmra.mxu0 %vm107_vm0, %v4475_v10 }
 0x155   :  { %1715 = vmatpush.bf16.msra.mxu0 %v5685_v0 }
 0x157   :  { %4437 = vmatmul.msk.bf16.vlgmr.msrb.gmra.mxu2 %vm107_vm0, %v4436_v12  ;;  %v902_v12 = vpack.c.bf16 %v898_v9, %v898_v9 }
 0x158   :  { %1182 = vmatpush.bf16.msrb.mxu2 %v5685_v0 }
 0x159   :  { %1716 = vmatpush.bf16.msra.mxu0 %v5691_v1 }
 0x15a   :  { %v365_v14 = vpop.f32.mrf.mxu2 }
 0x15b   :  { %v369_v16 = vpack.c.bf16 %v365_v14, %v365_v14  ;;  %v266_v15 = vpop.f32.mrf.mxu1 }
 0x15c   :  { %1183 = vmatpush.bf16.msrb.mxu2 %v5691_v1  ;;  %v4499_v15 = vld [vmem:[%s6321_s1 + $0xac] sm:$0xf] }
 0x15d   :  { %4390 = vmatmul.msk.bf16.vlgmr.msrb.gmra.mxu3 %vm147_vm2, %v369_v16 }
 0x15e   :  { %549 = vmatpush.bf16.msrb.mxu3 %v540_v17  ;;  %v900_v17 = vpop.f32.mrf.mxu0 }
 0x15f   :  { %4429 = vmatmul.msk.bf16.vlgmr.msra.gmra.mxu1 %vm147_vm2, %v902_v12 }
 0x162   :  { %v367_v20 = vpop.f32.mrf.mxu2 }
 0x163   :  { %v991_v20 = vsel %vm151_vm1, %v986_v19, 0  ;;  %v346_v22 = vpop.f32.mrf.mxu1  ;;  %v1273_v19 = vld [vmem:[#allocation2 + $0x38] sm:$0x3] }
 0x164   :  { %1000 = vmatpush.bf16.msrb.mxu1 %v991_v20 }
 0x166   :  { %v980_v23 = vpop.f32.mrf.mxu0 }
 0x167   :  { %4443 = vmatmul.msk.bf16.vlgmr.msra.gmra.mxu2 %vm107_vm0, %v4442_v24  ;;  %v4481_v24 = vld [vmem:[%s6321_s1 + $0x94] sm:$0xf] }
 0x168   :  { %1264 = vmatpush.bf16.msra.mxu2 %v5685_v0  ;;  %4482 = vmatmul.msk.bf16.vlgmr.msrb.gmra.mxu0 %vm107_vm0, %v4481_v24  ;;  %v1278_v24 = vsel %vm151_vm1, %v1273_v19, 0 }
 0x169   :  { %1797 = vmatpush.bf16.msrb.mxu0 %v5685_v0 }
 0x16a   :  { %v447_v26 = vpop.f32.mrf.mxu2 }
 0x16b   :  { %v451_v28 = vpack.c.bf16 %v447_v26, %v447_v26  ;;  %v984_v26 = vpack.c.bf16 %v980_v23, %v980_v23 }
 0x16c   :  { %1265 = vmatpush.bf16.msra.mxu2 %v5691_v1 }
 0x16d   :  { %4396 = vmatmul.msk.bf16.vlgmr.msra.gmra.mxu3 %vm147_vm2, %v451_v28  ;;  %1798 = vmatpush.bf16.msrb.mxu0 %v5691_v1 }
 0x16e   :  { %631 = vmatpush.bf16.msra.mxu3 %v622_v29  ;;  %v348_v29 = vpop.f32.mrf.mxu1  ;;  %v982_v31 = vpop.f32.mrf.mxu0 }
 0x16f   :  { %4435 = vmatmul.msk.bf16.vlgmr.msrb.gmra.mxu1 %vm147_vm2, %v984_v26  ;;  %v1314_v26 = vld [vmem:[#allocation2 + $0x3a] sm:$0x3] }
 0x172   :  { %v449_v32 = vpop.f32.mrf.mxu2 }
 0x173   :  { %v1032_v32 = vsel %vm151_vm1, %v1027_v27, 0 }
 0x177   :  { %4449 = vmatmul.msk.bf16.vlgmr.msrb.gmra.mxu2 %vm107_vm0, %v4448_v36  ;;  %v1073_v36 = vsel %vm151_vm1, %v1068_v34, 0  ;;  %v4496_v34 = vld [vmem:[%s6321_s1 + $0xa8] sm:$0xf] }
 0x178   :  { %1346 = vmatpush.bf16.msrb.mxu2 %v5685_v0  ;;  %1082 = vmatpush.bf16.msra.mxu1 %v1073_v36 }
 0x17a   :  { %v529_v38 = vpop.f32.mrf.mxu2 }
 0x17b   :  { %v533_v40 = vpack.c.bf16 %v529_v38, %v529_v38  ;;  %v428_v38 = vpop.f32.mrf.mxu1 }
 0x17c   :  { %1347 = vmatpush.bf16.msrb.mxu2 %v5691_v1 }
 0x17d   :  { %4402 = vmatmul.msk.bf16.vlgmr.msrb.gmra.mxu3 %vm147_vm2, %v533_v40  ;;  %v1062_v40 = vpop.f32.mrf.mxu0 }
 0x17e   :  { %713 = vmatpush.bf16.msrb.mxu3 %v704_v41  ;;  %v4487_v41 = vld [vmem:[%s6321_s1 + $0x9c] sm:$0xf]  ;;  %v1066_v44 = vpack.c.bf16 %v1062_v40, %v1062_v40 }
 0x17f   :  { %4488 = vmatmul.msk.bf16.vlgmr.msra.gmra.mxu0 %vm107_vm0, %v4487_v41 }
 0x180   :  { %1879 = vmatpush.bf16.msra.mxu0 %v5685_v0  ;;  %4441 = vmatmul.msk.bf16.vlgmr.msra.gmra.mxu1 %vm147_vm2, %v1066_v44 }
 0x182   :  { %v531_v45 = vpop.f32.mrf.mxu2 }
 0x183   :  { %v1109_v45 = vld [vmem:[#allocation2 + $0x30] sm:$0x3]  ;;  %v430_v47 = vpop.f32.mrf.mxu1 }
 0x184   :  { %1880 = vmatpush.bf16.msra.mxu0 %v5691_v1  ;;  %v1114_v50 = vsel %vm151_vm1, %v1109_v45, 0 }
 0x187   :  { %4455 = vmatmul.msk.bf16.vlgmr.msra.gmra.mxu2 %vm107_vm0, %v4454_v49  ;;  %v1064_v49 = vpop.f32.mrf.mxu0 }
 0x188   :  { %1428 = vmatpush.bf16.msra.mxu2 %v5685_v0 }
 0x18a   :  { %v611_v51 = vpop.f32.mrf.mxu2 }
 0x18b   :  { %v615_v53 = vpack.c.bf16 %v611_v51, %v611_v51  ;;  %v510_v56 = vpop.f32.mrf.mxu1 }
 0x18c   :  { %1429 = vmatpush.bf16.msra.mxu2 %v5691_v1 }
 0x18d   :  { %4408 = vmatmul.msk.bf16.vlgmr.msra.gmra.mxu3 %vm147_vm2, %v615_v53 }
 0x18e   :  { %795 = vmatpush.bf16.msra.mxu3 %v786_v54  ;;  %v1155_v54 = vsel %vm151_vm1, %v1150_v52, 0  ;;  %v4502_v52 = vld [vmem:[%s6321_s1 + $0xb0] sm:$0xf] }
 0x18f   :  { %1164 = vmatpush.bf16.msrb.mxu1 %v1155_v54  ;;  %v1144_v58 = vpop.f32.mrf.mxu0  ;;  %4494 = vmatmul.msk.bf16.vlgmr.msrb.gmra.mxu0 %vm107_vm0, %v4493_v59 }
 0x190   :  { %1961 = vmatpush.bf16.msrb.mxu0 %v5685_v0 }
 0x192   :  { %v613_v57 = vpop.f32.mrf.mxu2 }
 0x194   :  { %1962 = vmatpush.bf16.msrb.mxu0 %v5691_v1 }
 0x197   :  { %4461 = vmatmul.msk.bf16.vlgmr.msrb.gmra.mxu2 %vm107_vm0, %v4460_v61  ;;  %v1148_v61 = vpack.c.bf16 %v1144_v58, %v1144_v58  ;;  %v1146_v5 = vpop.f32.mrf.mxu0 }
 0x198   :  { %1510 = vmatpush.bf16.msrb.mxu2 %v5685_v0 }
 0x199   :  { %4447 = vmatmul.msk.bf16.vlgmr.msrb.gmra.mxu1 %vm147_vm2, %v1148_v61 }
 0x19a   :  { %v693_v63 = vpop.f32.mrf.mxu2 }
 0x19b   :  { %v697_v3 = vpack.c.bf16 %v693_v63, %v693_v63  ;;  %v1191_v63 = vld [vmem:[#allocation2 + $0x34] sm:$0x3] }
 0x19c   :  { %1511 = vmatpush.bf16.msrb.mxu2 %v5691_v1  ;;  %v1196_v6 = vsel %vm151_vm1, %v1191_v63, 0 }
 0x19d   :  { %4414 = vmatmul.msk.bf16.vlgmr.msrb.gmra.mxu3 %vm147_vm2, %v697_v3  ;;  %v512_v3 = vpop.f32.mrf.mxu1 }
 0x19e   :  { %877 = vmatpush.bf16.msrb.mxu3 %v868_v4 }
 0x19f   :  { %4500 = vmatmul.msk.bf16.vlgmr.msra.gmra.mxu0 %vm107_vm0, %v4499_v15  ;;  %v1560_v15 = vld [vmem:[#allocation2 + $0x46] sm:$0x3] }
 0x1a0   :  { %2043 = vmatpush.bf16.msra.mxu0 %v5685_v0 }
 0x1a2   :  { %v695_v7 = vpop.f32.mrf.mxu2 }
 0x1a4   :  { %2044 = vmatpush.bf16.msra.mxu0 %v5691_v1 }
 0x1a5   :  { %v592_v12 = vpop.f32.mrf.mxu1 }
 0x1a7   :  { %4467 = vmatmul.msk.bf16.vlgmr.msra.gmra.mxu2 %vm107_vm0, %v4466_v11 }
 0x1a8   :  { %1592 = vmatpush.bf16.msra.mxu2 %v5685_v0 }
 0x1aa   :  { %v775_v14 = vpop.f32.mrf.mxu2 }
 0x1ab   :  { %v779_v16 = vpack.c.bf16 %v775_v14, %v775_v14  ;;  %v1226_v14 = vpop.f32.mrf.mxu0 }
 0x1ac   :  { %1593 = vmatpush.bf16.msra.mxu2 %v5691_v1  ;;  %v1230_v17 = vpack.c.bf16 %v1226_v14, %v1226_v14 }
 0x1ad   :  { %4420 = vmatmul.msk.bf16.vlgmr.msra.gmra.mxu3 %vm147_vm2, %v779_v16  ;;  %v4490_v16 = vld [vmem:[%s6321_s1 + $0xa0] sm:$0xf] }
 0x1ae   :  { %959 = vmatpush.bf16.msra.mxu3 %v950_v18 }
 0x1b2   :  { %v777_v21 = vpop.f32.mrf.mxu2 }
 0x1b3   :  { %v594_v21 = vpop.f32.mrf.mxu1  ;;  %v1228_v23 = vpop.f32.mrf.mxu0 }
 0x1b7   :  { %4473 = vmatmul.msk.bf16.vlgmr.msrb.gmra.mxu2 %vm107_vm0, %v4472_v25 }
 0x1b8   :  { %1674 = vmatpush.bf16.msrb.mxu2 %v5685_v0 }
 0x1ba   :  { %v857_v28 = vpop.f32.mrf.mxu2 }
 0x1bb   :  { %v861_v30 = vpack.c.bf16 %v857_v28, %v857_v28  ;;  %v1319_v28 = vsel %vm151_vm1, %v1314_v26, 0 }
 0x1bc   :  { %1675 = vmatpush.bf16.msrb.mxu2 %v5691_v1 }
 0x1bd   :  { %4426 = vmatmul.msk.bf16.vlgmr.msrb.gmra.mxu3 %vm147_vm2, %v861_v30  ;;  %v674_v30 = vpop.f32.mrf.mxu1 }
 0x1be   :  { %1041 = vmatpush.bf16.msrb.mxu3 %v1032_v32  ;;  %v1308_v32 = vpop.f32.mrf.mxu0 }
 0x1c0   :  { %v223_v33 = vpop.f32.mrf.mxu3 }
 0x1c1   :  { %v227_v35 = vadd.f32 %v223_v33, %v5821_v43  ;;  %v4505_v33 = vld [vmem:[%s6321_s1 + $0xb4] sm:$0xf] }
 0x1c2   :  { %v859_v37 = vpop.f32.mrf.mxu2  ;;  %4506 = vmatmul.msk.bf16.vlgmr.msrb.gmra.mxu0 %vm107_vm0, %v4505_v33 }
 0x1c3   :  { %v268_v39 = vadd.f32 %v264_v8, %v227_v35  ;;  %v1232_v8 = vld [vmem:[#allocation2 + $0x36] sm:$0x3]  ;;  %v1312_v35 = vpack.c.bf16 %v1308_v32, %v1308_v32  ;;  %v1355_v37 = vld [vmem:[#allocation2 + $0x3c] sm:$0x3]  ;;  %v1642_v32 = vld [vmem:[#allocation2 + $0x4a] sm:$0x3] }
 0x1c4   :  { %v1237_v10 = vsel %vm151_vm1, %v1232_v8, 0  ;;  %v1519_v8 = vld [vmem:[#allocation2 + $0x44] sm:$0x3] }
 0x1c5   :  { %1246 = vmatpush.bf16.msra.mxu1 %v1237_v10 }
 0x1c6   :  { %v1310_v41 = vpop.f32.mrf.mxu0 }
 0x1c7   :  { %4479 = vmatmul.msk.bf16.vlgmr.msra.gmra.mxu2 %vm107_vm0, %v4478_v42  ;;  %v1360_v42 = vsel %vm151_vm1, %v1355_v37, 0  ;;  %v1683_v41 = vld [vmem:[#allocation2 + $0x4c] sm:$0x3] }
 0x1c8   :  { %v225_v43 = vpop.f32.mrf.mxu3  ;;  %1756 = vmatpush.bf16.msra.mxu2 %v5685_v0  ;;  %4453 = vmatmul.msk.bf16.vlgmr.msra.gmra.mxu1 %vm147_vm2, %v1230_v17  ;;  %v1565_v17 = vsel %vm151_vm1, %v1560_v15, 0 }
 0x1c9   :  { %1328 = vmatpush.bf16.msrb.mxu1 %v1319_v28  ;;  %v1396_v43 = vld [vmem:[#allocation2 + $0x3e] sm:$0x3] }
 0x1ca   :  { %v939_v46 = vpop.f32.mrf.mxu2 }
 0x1cb   :  { %v943_v48 = vpack.c.bf16 %v939_v46, %v939_v46  ;;  %v1401_v46 = vsel %vm151_vm1, %v1396_v43, 0 }
 0x1cc   :  { %1757 = vmatpush.bf16.msra.mxu2 %v5691_v1 }
 0x1cd   :  { %4432 = vmatmul.msk.bf16.vlgmr.msra.gmra.mxu3 %vm147_vm2, %v943_v48  ;;  %1410 = vmatpush.bf16.msra.mxu1 %v1401_v46  ;;  %v1688_v46 = vsel %vm151_vm1, %v1683_v41, 0  ;;  %v2011_v41 = vld [vmem:[#allocation2 + $0x5c] sm:$0x3] }
 0x1ce   :  { %1123 = vmatpush.bf16.msra.mxu3 %v1114_v50  ;;  %v1390_v50 = vpop.f32.mrf.mxu0 }
 0x1d0   :  { %v305_v51 = vpop.f32.mrf.mxu3 }
 0x1d1   :  { %v309_v53 = vadd.f32 %v305_v51, %v268_v39  ;;  %v676_v39 = vpop.f32.mrf.mxu1  ;;  %v4511_v51 = vld [vmem:[%s6321_s1 + $0xbc] sm:$0xf] }
 0x1d2   :  { %v941_v55 = vpop.f32.mrf.mxu2  ;;  %4512 = vmatmul.msk.bf16.vlgmr.msra.gmra.mxu0 %vm107_vm0, %v4511_v51 }
 0x1d3   :  { %v350_v57 = vadd.f32 %v346_v22, %v309_v53  ;;  %v1394_v53 = vpack.c.bf16 %v1390_v50, %v1390_v50  ;;  %v1437_v55 = vld [vmem:[#allocation2 + $0x40] sm:$0x3] }
 0x1d6   :  { %v1392_v59 = vpop.f32.mrf.mxu0 }
 0x1d7   :  { %4485 = vmatmul.msk.bf16.vlgmr.msrb.gmra.mxu2 %vm107_vm0, %v4484_v60  ;;  %v1442_v60 = vsel %vm151_vm1, %v1437_v55, 0 }
 0x1d8   :  { %v307_v62 = vpop.f32.mrf.mxu3  ;;  %1838 = vmatpush.bf16.msrb.mxu2 %v5685_v0  ;;  %4459 = vmatmul.msk.bf16.vlgmr.msrb.gmra.mxu1 %vm147_vm2, %v1312_v35 }
 0x1d9   :  { %v756_v48 = vpop.f32.mrf.mxu1  ;;  %v1478_v62 = vld [vmem:[#allocation2 + $0x42] sm:$0x3] }
 0x1da   :  { %v1021_v2 = vpop.f32.mrf.mxu2 }
 0x1db   :  { %v1025_v4 = vpack.c.bf16 %v1021_v2, %v1021_v2  ;;  %v1483_v2 = vsel %vm151_vm1, %v1478_v62, 0 }
 0x1dc   :  { %1839 = vmatpush.bf16.msrb.mxu2 %v5691_v1  ;;  %1492 = vmatpush.bf16.msrb.mxu1 %v1483_v2  ;;  %v1806_v2 = vld [vmem:[#allocation2 + $0x52] sm:$0x3] }
 0x1dd   :  { %4438 = vmatmul.msk.bf16.vlgmr.msrb.gmra.mxu3 %vm147_vm2, %v1025_v4 }
 0x1de   :  { %1205 = vmatpush.bf16.msrb.mxu3 %v1196_v6  ;;  %v1472_v5 = vpop.f32.mrf.mxu0  ;;  %v4508_v6 = vld [vmem:[%s6321_s1 + $0xb8] sm:$0xf] }
 0x1e0   :  { %v387_v7 = vpop.f32.mrf.mxu3 }
 0x1e1   :  { %v391_v9 = vadd.f32 %v387_v7, %v350_v57  ;;  %v758_v57 = vpop.f32.mrf.mxu1  ;;  %v1476_v7 = vpack.c.bf16 %v1472_v5, %v1472_v5 }
 0x1e2   :  { %v1023_v11 = vpop.f32.mrf.mxu2  ;;  %v1765_v57 = vld [vmem:[#allocation2 + $0x50] sm:$0x3] }
 0x1e3   :  { %v432_v13 = vadd.f32 %v428_v38, %v391_v9  ;;  %v1770_v62 = vsel %vm151_vm1, %v1765_v57, 0  ;;  %v2093_v57 = vld [vmem:[#allocation2 + $0x60] sm:$0x3] }
 0x1e7   :  { %4491 = vmatmul.msk.bf16.vlgmr.msra.gmra.mxu2 %vm107_vm0, %v4490_v16 }
 0x1e8   :  { %v389_v18 = vpop.f32.mrf.mxu3  ;;  %1920 = vmatpush.bf16.msra.mxu2 %v5685_v0  ;;  %4465 = vmatmul.msk.bf16.vlgmr.msra.gmra.mxu1 %vm147_vm2, %v1394_v53 }
 0x1e9   :  { %v838_v4 = vpop.f32.mrf.mxu1  ;;  %1574 = vmatpush.bf16.msra.mxu1 %v1565_v17 }
 0x1ea   :  { %v1103_v20 = vpop.f32.mrf.mxu2 }
 0x1eb   :  { %v1107_v22 = vpack.c.bf16 %v1103_v20, %v1103_v20 }
 0x1ec   :  { %1921 = vmatpush.bf16.msra.mxu2 %v5691_v1 }
 0x1ed   :  { %4444 = vmatmul.msk.bf16.vlgmr.msra.gmra.mxu3 %vm147_vm2, %v1107_v22  ;;  %v4514_v22 = vld [vmem:[%s6321_s1 + $0xc0] sm:$0xf] }
 0x1ee   :  { %1287 = vmatpush.bf16.msra.mxu3 %v1278_v24 }
 0x1f0   :  { %v469_v25 = vpop.f32.mrf.mxu3 }
 0x1f1   :  { %v473_v27 = vadd.f32 %v469_v25, %v432_v13  ;;  %v840_v10 = vpop.f32.mrf.mxu1  ;;  %v1524_v13 = vsel %vm151_vm1, %v1519_v8, 0  ;;  %v1601_v25 = vld [vmem:[#allocation2 + $0x48] sm:$0x3] }
 0x1f2   :  { %v1105_v29 = vpop.f32.mrf.mxu2 }
 0x1f3   :  { %v514_v31 = vadd.f32 %v510_v56, %v473_v27 }
 0x1f7   :  { %4497 = vmatmul.msk.bf16.vlgmr.msrb.gmra.mxu2 %vm107_vm0, %v4496_v34  ;;  %v1647_v34 = vsel %vm151_vm1, %v1642_v32, 0  ;;  %v1970_v32 = vld [vmem:[#allocation2 + $0x5a] sm:$0x3] }
 0x1f8   :  { %v471_v36 = vpop.f32.mrf.mxu3  ;;  %2002 = vmatpush.bf16.msrb.mxu2 %v5685_v0  ;;  %4471 = vmatmul.msk.bf16.vlgmr.msrb.gmra.mxu1 %vm147_vm2, %v1476_v7 }
 0x1f9   :  { %v920_v20 = vpop.f32.mrf.mxu1  ;;  %1656 = vmatpush.bf16.msrb.mxu1 %v1647_v34  ;;  %v1975_v34 = vsel %vm151_vm1, %v1970_v32, 0 }
 0x1fa   :  { %v1185_v38 = vpop.f32.mrf.mxu2 }
 0x1fb   :  { %v1189_v40 = vpack.c.bf16 %v1185_v38, %v1185_v38 }
 0x1fc   :  { %2003 = vmatpush.bf16.msrb.mxu2 %v5691_v1 }
 0x1fd   :  { %4450 = vmatmul.msk.bf16.vlgmr.msrb.gmra.mxu3 %vm147_vm2, %v1189_v40 }
 0x1fe   :  { %1369 = vmatpush.bf16.msrb.mxu3 %v1360_v42 }
 0x200   :  { %v551_v44 = vpop.f32.mrf.mxu3 }
 0x201   :  { %v555_v45 = vadd.f32 %v551_v44, %v514_v31  ;;  %v922_v28 = vpop.f32.mrf.mxu1 }
 0x202   :  { %v1187_v47 = vpop.f32.mrf.mxu2 }
 0x203   :  { %v596_v49 = vadd.f32 %v592_v12, %v555_v45  ;;  %v1474_v12 = vpop.f32.mrf.mxu0 }
 0x207   :  { %4503 = vmatmul.msk.bf16.vlgmr.msra.gmra.mxu2 %vm107_vm0, %v4502_v52 }
 0x208   :  { %v553_v54 = vpop.f32.mrf.mxu3  ;;  %2084 = vmatpush.bf16.msra.mxu2 %v5685_v0 }
 0x209   :  { %v1002_v37 = vpop.f32.mrf.mxu1 }
 0x20a   :  { %v1267_v56 = vpop.f32.mrf.mxu2 }
 0x20b   :  { %v1271_v58 = vpack.c.bf16 %v1267_v56, %v1267_v56  ;;  %v1554_v21 = vpop.f32.mrf.mxu0 }
 0x20c   :  { %2085 = vmatpush.bf16.msra.mxu2 %v5691_v1  ;;  %v1558_v23 = vpack.c.bf16 %v1554_v21, %v1554_v21 }
 0x20d   :  { %4456 = vmatmul.msk.bf16.vlgmr.msra.gmra.mxu3 %vm147_vm2, %v1271_v58 }
 0x20e   :  { %1451 = vmatpush.bf16.msra.mxu3 %v1442_v60  ;;  %4477 = vmatmul.msk.bf16.vlgmr.msra.gmra.mxu1 %vm147_vm2, %v1558_v23 }
 0x210   :  { %v633_v61 = vpop.f32.mrf.mxu3 }
 0x211   :  { %v637_v63 = vadd.f32 %v633_v61, %v596_v49  ;;  %v1004_v43 = vpop.f32.mrf.mxu1 }
 0x212   :  { %v1269_v3 = vpop.f32.mrf.mxu2 }
 0x213   :  { %v678_v0 = vadd.f32 %v674_v30, %v637_v63  ;;  %v1556_v29 = vpop.f32.mrf.mxu0  ;;  %v1606_v30 = vsel %vm151_vm1, %v1601_v25, 0  ;;  %v1929_v25 = vld [vmem:[#allocation2 + $0x58] sm:$0x3] }
 0x217   :  { %4509 = vmatmul.msk.bf16.vlgmr.msrb.gmra.mxu2 %vm107_vm0, %v4508_v6 }
 0x218   :  { %v635_v1 = vpop.f32.mrf.mxu3 }
 0x219   :  { %v1084_v53 = vpop.f32.mrf.mxu1 }
 0x21a   :  { %v1349_v9 = vpop.f32.mrf.mxu2 }
 0x21b   :  { %v1353_v11 = vpack.c.bf16 %v1349_v9, %v1349_v9  ;;  %v1636_v38 = vpop.f32.mrf.mxu0  ;;  %v1847_v9 = vld [vmem:[#allocation2 + $0x54] sm:$0x3] }
 0x21c   :  { %v1640_v39 = vpack.c.bf16 %v1636_v38, %v1636_v38 }
 0x21d   :  { %4462 = vmatmul.msk.bf16.vlgmr.msrb.gmra.mxu3 %vm147_vm2, %v1353_v11 }
 0x21e   :  { %1533 = vmatpush.bf16.msrb.mxu3 %v1524_v13  ;;  %4483 = vmatmul.msk.bf16.vlgmr.msrb.gmra.mxu1 %vm147_vm2, %v1640_v39 }
 0x220   :  { %v715_v14 = vpop.f32.mrf.mxu3 }
 0x221   :  { %v719_v16 = vadd.f32 %v715_v14, %v678_v0  ;;  %v1086_v60 = vpop.f32.mrf.mxu1  ;;  %v1852_v14 = vsel %vm151_vm1, %v1847_v9, 0 }
 0x222   :  { %v1351_v18 = vpop.f32.mrf.mxu2 }
 0x223   :  { %v760_v19 = vadd.f32 %v756_v48, %v719_v16  ;;  %v1638_v45 = vpop.f32.mrf.mxu0  ;;  %v1724_v48 = vld [vmem:[#allocation2 + $0x4e] sm:$0x3]  ;;  %v1888_v16 = vld [vmem:[#allocation2 + $0x56] sm:$0x3] }
 0x224   :  { %v1729_v50 = vsel %vm151_vm1, %v1724_v48, 0  ;;  %v1893_v18 = vsel %vm151_vm1, %v1888_v16, 0  ;;  %v2052_v48 = vld [vmem:[#allocation2 + $0x5e] sm:$0x3] }
 0x225   :  { %1738 = vmatpush.bf16.msra.mxu1 %v1729_v50  ;;  %v2057_v50 = vsel %vm151_vm1, %v2052_v48, 0 }
 0x227   :  { %4515 = vmatmul.msk.bf16.vlgmr.msra.gmra.mxu2 %vm107_vm0, %v4514_v22 }
 0x228   :  { %v717_v24 = vpop.f32.mrf.mxu3 }
 0x229   :  { %v1166_v6 = vpop.f32.mrf.mxu1 }
 0x22a   :  { %v1431_v26 = vpop.f32.mrf.mxu2 }
 0x22b   :  { %v1435_v27 = vpack.c.bf16 %v1431_v26, %v1431_v26  ;;  %v1718_v54 = vpop.f32.mrf.mxu0 }
 0x22c   :  { %v1722_v55 = vpack.c.bf16 %v1718_v54, %v1718_v54 }
 0x22d   :  { %4468 = vmatmul.msk.bf16.vlgmr.msra.gmra.mxu3 %vm147_vm2, %v1435_v27 }
 0x22e   :  { %1615 = vmatpush.bf16.msra.mxu3 %v1606_v30  ;;  %4489 = vmatmul.msk.bf16.vlgmr.msra.gmra.mxu1 %vm147_vm2, %v1722_v55  ;;  %v1934_v30 = vsel %vm151_vm1, %v1929_v25, 0 }
 0x230   :  { %v797_v31 = vpop.f32.mrf.mxu3 }
 0x231   :  { %v801_v33 = vadd.f32 %v797_v31, %v760_v19  ;;  %v1168_v12 = vpop.f32.mrf.mxu1 }
 0x232   :  { %v1433_v35 = vpop.f32.mrf.mxu2 }
 0x233   :  { %v842_v36 = vadd.f32 %v838_v4, %v801_v33  ;;  %v1720_v61 = vpop.f32.mrf.mxu0  ;;  %v1811_v4 = vsel %vm151_vm1, %v1806_v2, 0 }
 0x234   :  { %1820 = vmatpush.bf16.msrb.mxu1 %v1811_v4  ;;  %v2098_v61 = vsel %vm151_vm1, %v2093_v57, 0 }
 0x238   :  { %v799_v40 = vpop.f32.mrf.mxu3  ;;  %1902 = vmatpush.bf16.msra.mxu1 %v1893_v18 }
 0x23a   :  { %v1513_v42 = vpop.f32.mrf.mxu2 }
 0x23b   :  { %v1517_v44 = vpack.c.bf16 %v1513_v42, %v1513_v42  ;;  %v1800_v7 = vpop.f32.mrf.mxu0 }
 0x23c   :  { %v1804_v1 = vpack.c.bf16 %v1800_v7, %v1800_v7 }
 0x23d   :  { %4474 = vmatmul.msk.bf16.vlgmr.msrb.gmra.mxu3 %vm147_vm2, %v1517_v44 }
 0x23e   :  { %1697 = vmatpush.bf16.msrb.mxu3 %v1688_v46  ;;  %4495 = vmatmul.msk.bf16.vlgmr.msrb.gmra.mxu1 %vm147_vm2, %v1804_v1  ;;  %v2016_v46 = vsel %vm151_vm1, %v2011_v41, 0 }
 0x23f   :  { %1984 = vmatpush.bf16.msrb.mxu1 %v1975_v34 }
 0x240   :  { %v879_v47 = vpop.f32.mrf.mxu3 }
 0x241   :  { %v883_v49 = vadd.f32 %v879_v47, %v842_v36 }
 0x242   :  { %v1515_v51 = vpop.f32.mrf.mxu2 }
 0x243   :  { %v924_v52 = vadd.f32 %v920_v20, %v883_v49  ;;  %v1802_v13 = vpop.f32.mrf.mxu0 }
 0x245   :  { %v1248_v21 = vpop.f32.mrf.mxu1 }
 0x248   :  { %v881_v56 = vpop.f32.mrf.mxu3 }
 0x24a   :  { %v1595_v58 = vpop.f32.mrf.mxu2 }
 0x24b   :  { %v1599_v59 = vpack.c.bf16 %v1595_v58, %v1595_v58  ;;  %v1882_v22 = vpop.f32.mrf.mxu0 }
 0x24c   :  { %v1886_v23 = vpack.c.bf16 %v1882_v22, %v1882_v22 }
 0x24d   :  { %4480 = vmatmul.msk.bf16.vlgmr.msra.gmra.mxu3 %vm147_vm2, %v1599_v59  ;;  %v1250_v28 = vpop.f32.mrf.mxu1 }
 0x24e   :  { %1779 = vmatpush.bf16.msra.mxu3 %v1770_v62  ;;  %4501 = vmatmul.msk.bf16.vlgmr.msra.gmra.mxu1 %vm147_vm2, %v1886_v23 }
 0x24f   :  { %2066 = vmatpush.bf16.msra.mxu1 %v2057_v50 }
 0x250   :  { %v961_v63 = vpop.f32.mrf.mxu3 }
 0x251   :  { %v965_v3 = vadd.f32 %v961_v63, %v924_v52 }
 0x252   :  { %v1597_v0 = vpop.f32.mrf.mxu2 }
 0x253   :  { %v1006_v5 = vadd.f32 %v1002_v37, %v965_v3  ;;  %v1884_v29 = vpop.f32.mrf.mxu0 }
 0x255   :  { %v1330_v37 = vpop.f32.mrf.mxu1 }
 0x258   :  { %v963_v8 = vpop.f32.mrf.mxu3 }
 0x25a   :  { %v1677_v10 = vpop.f32.mrf.mxu2 }
 0x25b   :  { %v1681_v11 = vpack.c.bf16 %v1677_v10, %v1677_v10  ;;  %v1964_v38 = vpop.f32.mrf.mxu0 }
 0x25c   :  { %v1968_v39 = vpack.c.bf16 %v1964_v38, %v1964_v38 }
 0x25d   :  { %4486 = vmatmul.msk.bf16.vlgmr.msrb.gmra.mxu3 %vm147_vm2, %v1681_v11  ;;  %v1332_v43 = vpop.f32.mrf.mxu1 }
 0x25e   :  { %1861 = vmatpush.bf16.msrb.mxu3 %v1852_v14  ;;  %4507 = vmatmul.msk.bf16.vlgmr.msrb.gmra.mxu1 %vm147_vm2, %v1968_v39 }
 0x260   :  { %v1043_v15 = vpop.f32.mrf.mxu3 }
 0x261   :  { %v1047_v17 = vadd.f32 %v1043_v15, %v1006_v5 }
 0x262   :  { %v1679_v19 = vpop.f32.mrf.mxu2 }
 0x263   :  { %v1088_v20 = vadd.f32 %v1084_v53, %v1047_v17  ;;  %v1966_v45 = vpop.f32.mrf.mxu0 }
 0x265   :  { %v1412_v53 = vpop.f32.mrf.mxu1 }
 0x268   :  { %v1045_v24 = vpop.f32.mrf.mxu3 }
 0x26a   :  { %v1759_v26 = vpop.f32.mrf.mxu2 }
 0x26b   :  { %v1763_v27 = vpack.c.bf16 %v1759_v26, %v1759_v26  ;;  %v2046_v54 = vpop.f32.mrf.mxu0 }
 0x26c   :  { %v2050_v55 = vpack.c.bf16 %v2046_v54, %v2046_v54 }
 0x26d   :  { %4492 = vmatmul.msk.bf16.vlgmr.msra.gmra.mxu3 %vm147_vm2, %v1763_v27  ;;  %v1414_v60 = vpop.f32.mrf.mxu1 }
 0x26e   :  { %1943 = vmatpush.bf16.msra.mxu3 %v1934_v30  ;;  %4513 = vmatmul.msk.bf16.vlgmr.msra.gmra.mxu1 %vm147_vm2, %v2050_v55 }
 0x270   :  { %v1125_v31 = vpop.f32.mrf.mxu3 }
 0x271   :  { %v1129_v33 = vadd.f32 %v1125_v31, %v1088_v20 }
 0x272   :  { %v1761_v35 = vpop.f32.mrf.mxu2 }
 0x273   :  { %v1170_v36 = vadd.f32 %v1166_v6, %v1129_v33  ;;  %v2048_v62 = vpop.f32.mrf.mxu0 }
 0x275   :  { %v1494_v0 = vpop.f32.mrf.mxu1 }
 0x278   :  { %v1127_v40 = vpop.f32.mrf.mxu3 }
 0x27a   :  { %v1841_v42 = vpop.f32.mrf.mxu2 }
 0x27b   :  { %v1845_v44 = vpack.c.bf16 %v1841_v42, %v1841_v42 }
 0x27d   :  { %4498 = vmatmul.msk.bf16.vlgmr.msrb.gmra.mxu3 %vm147_vm2, %v1845_v44  ;;  %v1496_v1 = vpop.f32.mrf.mxu1 }
 0x27e   :  { %2025 = vmatpush.bf16.msrb.mxu3 %v2016_v46  ;;  %v5307_v1 = vld [vmem:[#allocation5 + $0x18] sm:$0xff] }
 0x280   :  { %v1207_v47 = vpop.f32.mrf.mxu3 }
 0x281   :  { %v1211_v49 = vadd.f32 %v1207_v47, %v1170_v36 }
 0x282   :  { %v1843_v51 = vpop.f32.mrf.mxu2 }
 0x283   :  { %v1252_v52 = vadd.f32 %v1248_v21, %v1211_v49 }
 0x288   :  { %v1209_v56 = vpop.f32.mrf.mxu3 }
 0x28a   :  { %v1923_v58 = vpop.f32.mrf.mxu2 }
 0x28b   :  { %v1927_v59 = vpack.c.bf16 %v1923_v58, %v1923_v58  ;;  %v1576_v12 = vpop.f32.mrf.mxu1  ;;  %v5311_v58 = vld [vmem:[#allocation5 + $0x38] sm:$0xff] }
 0x28d   :  { %4504 = vmatmul.msk.bf16.vlgmr.msra.gmra.mxu3 %vm147_vm2, %v1927_v59 }
 0x28e   :  { %2107 = vmatpush.bf16.msra.mxu3 %v2098_v61  ;;  %v5310_v61 = vld [vmem:[#allocation5 + $0x30] sm:$0xff] }
 0x290   :  { %v1289_v63 = vpop.f32.mrf.mxu3 }
 0x291   :  { %v1293_v2 = vadd.f32 %v1289_v63, %v1252_v52  ;;  %v5309_v63 = vld [vmem:[#allocation5 + $0x28] sm:$0xff] }
 0x292   :  { %v1925_v3 = vpop.f32.mrf.mxu2 }
 0x293   :  { %v1334_v4 = vadd.f32 %v1330_v37, %v1293_v2  ;;  %v1578_v16 = vpop.f32.mrf.mxu1  ;;  %v5488_v3 = vld [vmem:[%s6324_s4] ss:$0 sm:$0xff] }
 0x298   :  { %v1291_v5 = vpop.f32.mrf.mxu3 }
 0x299   :  { %v5308_v5 = vld [vmem:[#allocation5 + $0x20] sm:$0xff] }
 0x29a   :  { %v2005_v6 = vpop.f32.mrf.mxu2 }
 0x29b   :  { %v2009_v7 = vpack.c.bf16 %v2005_v6, %v2005_v6  ;;  %v1658_v21 = vpop.f32.mrf.mxu1 }
 0x29d   :  { %4510 = vmatmul.msk.bf16.vlgmr.msrb.gmra.mxu3 %vm147_vm2, %v2009_v7 }
 0x29e   :  { %2336 = vmatpush.bf16.msrb.mxu3 %v5311_v58  ;;  %v5320_v58 = vld [vmem:[#allocation5 + $0x80] sm:$0xff] }
 0x2a0   :  { %v1371_v8 = vpop.f32.mrf.mxu3 }
 0x2a1   :  { %v1375_v9 = vadd.f32 %v1371_v8, %v1334_v4 }
 0x2a2   :  { %v2007_v10 = vpop.f32.mrf.mxu2  ;;  %2337 = vmatpush.bf16.msrb.mxu3 %v5310_v61  ;;  %v5315_v61 = vld [vmem:[#allocation5 + $0x58] sm:$0xff] }
 0x2a3   :  { %v1416_v11 = vadd.f32 %v1412_v53, %v1375_v9  ;;  %v1660_v23 = vpop.f32.mrf.mxu1 }
 0x2a4   :  { %v5304_v23 = vld [vmem:[#allocation5] sm:$0xff] }
 0x2a6   :  { %2338 = vmatpush.bf16.msrb.mxu3 %v5309_v63  ;;  %v5339_v63 = vld [vmem:[#allocation5 + $0x118] sm:$0xff] }
 0x2a8   :  { %v1373_v13 = vpop.f32.mrf.mxu3 }
 0x2a9   :  { %v5306_v13 = vld [vmem:[#allocation5 + $0x10] sm:$0xff] }
 0x2aa   :  { %v2087_v14 = vpop.f32.mrf.mxu2  ;;  %2339 = vmatpush.bf16.msrb.mxu3 %v5308_v5  ;;  %v5336_v5 = vld [vmem:[#allocation5 + $0x100] sm:$0xff] }
 0x2ab   :  { %v2091_v15 = vpack.c.bf16 %v2087_v14, %v2087_v14  ;;  %v1740_v27 = vpop.f32.mrf.mxu1 }
 0x2ad   :  { %4516 = vmatmul.msk.bf16.vlgmr.msra.gmra.mxu3 %vm147_vm2, %v2091_v15 }
 0x2ae   :  { %2340 = vmatpush.bf16.msrb.mxu3 %v5307_v1  ;;  %v5334_v1 = vld [vmem:[#allocation5 + $0xf0] sm:$0xff] }
 0x2b0   :  { %v1453_v17 = vpop.f32.mrf.mxu3 }
 0x2b1   :  { %v1457_v18 = vadd.f32 %v1453_v17, %v1416_v11 }
 0x2b2   :  { %v2089_v19 = vpop.f32.mrf.mxu2  ;;  %2341 = vmatpush.bf16.msrb.mxu3 %v5306_v13  ;;  %v5328_v13 = vld [vmem:[#allocation5 + $0xc0] sm:$0xff] }
 0x2b3   :  { %v1498_v20 = vadd.f32 %v1494_v0, %v1457_v18  ;;  %v1742_v29 = vpop.f32.mrf.mxu1  ;;  %v5305_v18 = vld [vmem:[#allocation5 + $0x8] sm:$0xff] }
 0x2b6   :  { %2342 = vmatpush.bf16.msrb.mxu3 %v5305_v18 }
 0x2b8   :  { %v1455_v22 = vpop.f32.mrf.mxu3 }
 0x2ba   :  { %2343 = vmatpush.bf16.msrb.mxu3 %v5304_v23  ;;  %v5348_v23 = vld [vmem:[#allocation5 + $0x160] sm:$0xff] }
 0x2bb   :  { %v1822_v33 = vpop.f32.mrf.mxu1 }
 0x2c0   :  { %v1535_v24 = vpop.f32.mrf.mxu3 }
 0x2c1   :  { %v1539_v25 = vadd.f32 %v1535_v24, %v1498_v20 }
 0x2c3   :  { %v1580_v26 = vadd.f32 %v1576_v12, %v1539_v25  ;;  %v1824_v35 = vpop.f32.mrf.mxu1 }
 0x2c8   :  { %v1537_v28 = vpop.f32.mrf.mxu3 }
 0x2cb   :  { %v1904_v39 = vpop.f32.mrf.mxu1 }
 0x2d0   :  { %v1617_v30 = vpop.f32.mrf.mxu3 }
 0x2d1   :  { %v1621_v31 = vadd.f32 %v1617_v30, %v1580_v26 }
 0x2d3   :  { %v1662_v32 = vadd.f32 %v1658_v21, %v1621_v31  ;;  %v1906_v41 = vpop.f32.mrf.mxu1 }
 0x2d4   :  { %v5327_v41 = vld [vmem:[#allocation5 + $0xb8] sm:$0xff] }
 0x2d8   :  { %v1619_v34 = vpop.f32.mrf.mxu3 }
 0x2db   :  { %v1986_v45 = vpop.f32.mrf.mxu1 }
 0x2e0   :  { %v1699_v36 = vpop.f32.mrf.mxu3 }
 0x2e1   :  { %v1703_v37 = vadd.f32 %v1699_v36, %v1662_v32 }
 0x2e3   :  { %v1744_v38 = vadd.f32 %v1740_v27, %v1703_v37  ;;  %v1988_v47 = vpop.f32.mrf.mxu1 }
 0x2e4   :  { %v5324_v47 = vld [vmem:[#allocation5 + $0xa0] sm:$0xff] }
 0x2e8   :  { %v1701_v40 = vpop.f32.mrf.mxu3 }
 0x2eb   :  { %v2068_v51 = vpop.f32.mrf.mxu1 }
 0x2f0   :  { %v1781_v42 = vpop.f32.mrf.mxu3 }
 0x2f1   :  { %v1785_v44 = vadd.f32 %v1781_v42, %v1744_v38 }
 0x2f3   :  { %v1826_v43 = vadd.f32 %v1822_v33, %v1785_v44  ;;  %v2070_v53 = vpop.f32.mrf.mxu1  ;;  %v6098_v44 = vld [vmem:[%s6322_s2] sm:$0xf] }
 0x2f4   :  { %v5318_v53 = vld [vmem:[#allocation5 + $0x70] sm:$0xff] }
 0x2f8   :  { %v1783_v46 = vpop.f32.mrf.mxu3 }
 0x2f9   :  { %v5325_v46 = vld [vmem:[#allocation5 + $0xa8] sm:$0xff] }
 0x300   :  { %v1863_v48 = vpop.f32.mrf.mxu3 }
 0x301   :  { %v1867_v49 = vadd.f32 %v1863_v48, %v1826_v43  ;;  %v6103_v43 = vld [vmem:[%s6322_s2 + $0x4] sm:$0xf]  ;;  %v5323_v48 = vld [vmem:[#allocation5 + $0x98] sm:$0xff] }
 0x303   :  { %v1908_v50 = vadd.f32 %v1904_v39, %v1867_v49  ;;  %v6115_v49 = vld [vmem:[%s6322_s2 + $0x8] sm:$0xf] }
 0x308   :  { %v1865_v52 = vpop.f32.mrf.mxu3 }
 0x309   :  { %v5322_v52 = vld [vmem:[#allocation5 + $0x90] sm:$0xff] }
 0x310   :  { %v1945_v54 = vpop.f32.mrf.mxu3 }
 0x311   :  { %v1949_v57 = vadd.f32 %v1945_v54, %v1908_v50  ;;  %v5343_v50 = vld [vmem:[#allocation5 + $0x138] sm:$0xff]  ;;  %v5342_v54 = vld [vmem:[#allocation5 + $0x130] sm:$0xff] }
 0x313   :  { %v1990_v60 = vadd.f32 %v1986_v45, %v1949_v57  ;;  %v5326_v45 = vld [vmem:[#allocation5 + $0xb0] sm:$0xff]  ;;  %v5341_v57 = vld [vmem:[#allocation5 + $0x128] sm:$0xff] }
 0x318   :  { %v1947_v55 = vpop.f32.mrf.mxu3 }
 0x319   :  { %v5321_v55 = vld [vmem:[#allocation5 + $0x88] sm:$0xff] }
 0x320   :  { %v2027_v56 = vpop.f32.mrf.mxu3 }
 0x321   :  { %v2031_v62 = vadd.f32 %v2027_v56, %v1990_v60  ;;  %v5317_v56 = vld [vmem:[#allocation5 + $0x68] sm:$0xff]  ;;  %v5340_v60 = vld [vmem:[#allocation5 + $0x120] sm:$0xff] }
 0x323   :  { %v2072_v2 = vadd.f32 %v2068_v51, %v2031_v62  ;;  %v5319_v51 = vld [vmem:[#allocation5 + $0x78] sm:$0xff]  ;;  %v6123_v62 = vld [vmem:[%s6322_s2 + $0xc] sm:$0xf] }
 0x324   :  { %2275 = vmatpush.bf16.msrb.mxu2 %v5319_v51 }
 0x328   :  { %v2029_v59 = vpop.f32.mrf.mxu3  ;;  %2276 = vmatpush.bf16.msrb.mxu2 %v5318_v53 }
 0x329   :  { %v5316_v59 = vld [vmem:[#allocation5 + $0x60] sm:$0xff] }
 0x32c   :  { %2277 = vmatpush.bf16.msrb.mxu2 %v5317_v56  ;;  %v5366_v56 = vld [vmem:[#allocation5 + $0x1f0] sm:$0xff] }
 0x330   :  { %v2109_v4 = vpop.f32.mrf.mxu3  ;;  %2278 = vmatpush.bf16.msrb.mxu2 %v5316_v59 }
 0x331   :  { %v2113_v0 = vadd.f32 %v2109_v4, %v2072_v2  ;;  %v5314_v2 = vld [vmem:[#allocation5 + $0x50] sm:$0xff]  ;;  %v5313_v4 = vld [vmem:[#allocation5 + $0x48] sm:$0xff] }
 0x333   :  { %v2118_v6 = vadd.f32 %v5488_v3, %v2113_v0  ;;  %v5338_v3 = vld [vmem:[#allocation5 + $0x110] sm:$0xff]  ;;  %v5337_v0 = vld [vmem:[#allocation5 + $0x108] sm:$0xff] }
 0x334   :  { %2279 = vmatpush.bf16.msrb.mxu2 %v5315_v61 }
 0x335   :  { %v2119_v7 = vmax.f32 %v2118_v6, 0.0  ;;  %v5312_v6 = vld [vmem:[#allocation5 + $0x40] sm:$0xff] }
 0x337   :  { %v2120_v8 = vrot.slane %v2119_v7, 4  ;;  %v2127_v9 = vmul.f32 %v2119_v7, %v2119_v7 }
 0x338   :  { %v2111_v10 = vpop.f32.mrf.mxu3  ;;  %2280 = vmatpush.bf16.msrb.mxu2 %v5314_v2 }
 0x339   :  { %v2121_v11 = vadd.f32 %v2120_v8, %v2119_v7  ;;  %v2128_v12 = vrot.slane %v2127_v9, 4  ;;  %v5333_v8 = vld [vmem:[#allocation5 + $0xe8] sm:$0xff]  ;;  %v5331_v10 = vld [vmem:[#allocation5 + $0xd8] sm:$0xff] }
 0x33b   :  { %v2122_v14 = vrot.slane %v2121_v11, 2  ;;  %v2129_v15 = vadd.f32 %v2128_v12, %v2127_v9  ;;  %v5332_v9 = vld [vmem:[#allocation5 + $0xe0] sm:$0xff]  ;;  %v5329_v12 = vld [vmem:[#allocation5 + $0xc8] sm:$0xff] }
 0x33c   :  { %2281 = vmatpush.bf16.msrb.mxu2 %v5313_v4  ;;  %v6154_v4 = vld [vmem:[%s6322_s2 + $0x1c] sm:$0xf] }
 0x33d   :  { %v2123_v16 = vadd.f32 %v2122_v14, %v2121_v11  ;;  %v2130_v17 = vrot.slane %v2129_v15, 2  ;;  %v5330_v11 = vld [vmem:[#allocation5 + $0xd0] sm:$0xff] }
 0x33f   :  { %v2124_v19 = vrot.slane %v2123_v16, 1  ;;  %v2131_v20 = vadd.f32 %v2130_v17, %v2129_v15 }
 0x340   :  { %2282 = vmatpush.bf16.msrb.mxu2 %v5312_v6 }
 0x341   :  { %v2125_v21 = vadd.f32 %v2124_v19, %v2123_v16  ;;  %v2132_v22 = vrot.slane %v2131_v20, 1  ;;  %v5351_v16 = vld [vmem:[#allocation5 + $0x178] sm:$0xff]  ;;  %v5350_v19 = vld [vmem:[#allocation5 + $0x170] sm:$0xff] }
 0x343   :  { %v2126_v24 = vmul.f32 0.125, %v2125_v21  ;;  %v2133_v25 = vadd.f32 %v2132_v22, %v2131_v20  ;;  %v5349_v21 = vld [vmem:[#allocation5 + $0x168] sm:$0xff] }
 0x345   :  { %v2134_v26 = vmul.f32 0.125, %v2133_v25  ;;  %v2135_v27 = vmul.f32 %v2126_v24, %v2126_v24  ;;  %v2138_v37 = vsub.f32 %v2119_v7, %v2126_v24  ;;  %v5335_v7 = vld [vmem:[#allocation5 + $0xf8] sm:$0xff]  ;;  %v6131_v25 = vld [vmem:[%s6322_s2 + $0x10] sm:$0xf] }
 0x346   :  { %2531 = vmatpush.bf16.msra.mxu2 %v5335_v7 }
 0x347   :  { %v2136_v28 = vsub.f32 %v2134_v26, %v2135_v27  ;;  %v5347_v26 = vld [vmem:[#allocation5 + $0x158] sm:$0xff] }
 0x349   :  { %v2137_v29 = vmax.f32 %v2136_v28, 0.0  ;;  %v5346_v28 = vld [vmem:[#allocation5 + $0x150] sm:$0xff] }
 0x34a   :  { %2532 = vmatpush.bf16.msra.mxu2 %v5334_v1  ;;  %v6161_v1 = vld [vmem:[%s6322_s2 + $0x20] sm:$0xf] }
 0x34b   :  { %v2139_v30 = vadd.f32 1e-05, %v2137_v29 }
 0x34d   :  { %5492 = vrsqrt.f32 %v2139_v30  ;;  %vm2146_vm4 = vweird.f32 %v2139_v30 }
 0x34e   :  { %2533 = vmatpush.bf16.msra.mxu2 %v5333_v8 }
 0x352   :  { %2534 = vmatpush.bf16.msra.mxu2 %v5332_v9 }
 0x353   :  { %v5493_v31 = vpop.eup %5492 }
 0x354   :  { %v2141_v32 = vmul.f32 %v5493_v31, %v2139_v30  ;;  %vm2147_vm3 = vweird.f32 %v5493_v31  ;;  %v5345_v30 = vld [vmem:[#allocation5 + $0x148] sm:$0xff] }
 0x355   :  { %vm2148_vm5 = vmor %vm2146_vm4, %vm2147_vm3 }
 0x356   :  { %v2142_v33 = vmul.f32 %v5493_v31, %v2141_v32  ;;  %2535 = vmatpush.bf16.msra.mxu2 %v5331_v10  ;;  %v5364_v10 = vld [vmem:[#allocation5 + $0x1e0] sm:$0xff] }
 0x358   :  { %v2143_v34 = vmul.f32 0.5, %v2142_v33  ;;  %v6139_v33 = vld [vmem:[%s6322_s2 + $0x14] sm:$0xf] }
 0x35a   :  { %v2144_v35 = vsub.f32 1.5, %v2143_v34  ;;  %2536 = vmatpush.bf16.msra.mxu2 %v5330_v11  ;;  %v5363_v11 = vld [vmem:[#allocation5 + $0x1d8] sm:$0xff] }
 0x35c   :  { %v2145_v36 = vmul.f32 %v5493_v31, %v2144_v35 }
 0x35e   :  { %v2149_v38 = vsel %vm2148_vm5, %v5493_v31, %v2145_v36  ;;  %2537 = vmatpush.bf16.msra.mxu2 %v5329_v12  ;;  %v5344_v31 = vld [vmem:[#allocation5 + $0x140] sm:$0xff]  ;;  %v6147_v36 = vld [vmem:[%s6322_s2 + $0x18] sm:$0xf] }
 0x35f   :  { %v2150_v39 = vmul.f32 %v2149_v38, %v2138_v37  ;;  %v5359_v37 = vld [vmem:[#allocation5 + $0x1b8] sm:$0xff]  ;;  %v5358_v38 = vld [vmem:[#allocation5 + $0x1b0] sm:$0xff] }
 0x360   :  { %v5375_v12 = vld [vmem:[#allocation5 + $0x238] sm:$0xff] }
 0x361   :  { %v2151_v40 = vpack.c.bf16 %v2150_v39, %v2150_v39  ;;  %v5357_v39 = vld [vmem:[#allocation5 + $0x1a8] sm:$0xff] }
 0x362   :  { %2538 = vmatpush.bf16.msra.mxu2 %v5328_v13  ;;  %v5362_v13 = vld [vmem:[#allocation5 + $0x1d0] sm:$0xff] }
 0x363   :  { %v6091_v42 = vsel %vm2157_vm6, %v2151_v40, 0  ;;  %v5356_v40 = vld [vmem:[#allocation5 + $0x1a0] sm:$0xff] }
 0x364   :  { %2168 = vmatpush.bf16.msrb.mxu0 %v6091_v42  ;;  %2203 = vmatpush.bf16.msrb.mxu1 %v6091_v42 }
 0x365   :  { %2557 = vmatpush.bf16.msra.mxu3 %v6091_v42 }
 0x367   :  { %4517 = vmatmul.msk.bf16.vlgmr.msrb.gmra.mxu0 %vm2153_vm7, %v6098_v44  ;;  %4519 = vmatmul.msk.bf16.vlgmr.msrb.gmra.mxu1 %vm2153_vm7, %v6103_v43 }
 0x368   :  { %2361 = vmatpush.bf16.msra.mxu0 %v6091_v42  ;;  %2433 = vmatpush.bf16.msra.mxu1 %v5327_v41  ;;  %v5355_v41 = vld [vmem:[#allocation5 + $0x198] sm:$0xff] }
 0x36c   :  { %2459 = vmatpush.bf16.msrb.mxu0 %v6091_v42  ;;  %2434 = vmatpush.bf16.msra.mxu1 %v5326_v45 }
 0x370   :  { %2435 = vmatpush.bf16.msra.mxu1 %v5325_v46 }
 0x374   :  { %2436 = vmatpush.bf16.msra.mxu1 %v5324_v47  ;;  %v5354_v47 = vld [vmem:[#allocation5 + $0x190] sm:$0xff] }
 0x377   :  { %4585 = vmatmul.msk.bf16.vlgmr.msra.gmra.mxu0 %vm2153_vm7, %v6115_v49 }
 0x378   :  { %2437 = vmatpush.bf16.msra.mxu1 %v5323_v48  ;;  %2629 = vmatpush.bf16.msra.mxu0 %v5343_v50  ;;  %v5353_v48 = vld [vmem:[#allocation5 + $0x188] sm:$0xff] }
 0x37c   :  { %2438 = vmatpush.bf16.msra.mxu1 %v5322_v52  ;;  %2630 = vmatpush.bf16.msra.mxu0 %v5342_v54  ;;  %v5352_v52 = vld [vmem:[#allocation5 + $0x180] sm:$0xff] }
 0x380   :  { %2439 = vmatpush.bf16.msra.mxu1 %v5321_v55  ;;  %2631 = vmatpush.bf16.msra.mxu0 %v5341_v57  ;;  %v5367_v55 = vld [vmem:[#allocation5 + $0x1f8] sm:$0xff] }
 0x384   :  { %2440 = vmatpush.bf16.msra.mxu1 %v5320_v58  ;;  %2632 = vmatpush.bf16.msra.mxu0 %v5340_v60  ;;  %v5365_v60 = vld [vmem:[#allocation5 + $0x1e8] sm:$0xff] }
 0x387   :  { %4619 = vmatmul.msk.bf16.vlgmr.msrb.gmra.mxu0 %vm2153_vm7, %v6123_v62 }
 0x388   :  { %2655 = vmatpush.bf16.msrb.mxu1 %v6091_v42  ;;  %2633 = vmatpush.bf16.msra.mxu0 %v5339_v63 }
 0x38c   :  { %2634 = vmatpush.bf16.msra.mxu0 %v5338_v3 }
 0x390   :  { %2635 = vmatpush.bf16.msra.mxu0 %v5337_v0 }
 0x394   :  { %2636 = vmatpush.bf16.msra.mxu0 %v5336_v5 }
 0x398   :  { %2851 = vmatpush.bf16.msrb.mxu0 %v6091_v42 }
 0x3e4   :  { %v2170_v14 = vpop.f32.mrf.mxu0  ;;  %v2205_v15 = vpop.f32.mrf.mxu1 }
 0x3e5   :  { %v2174_v17 = vpack.c.bf16 %v2170_v14, %v2170_v14  ;;  %v2209_v18 = vpack.c.bf16 %v2205_v15, %v2205_v15  ;;  %v5374_v14 = vld [vmem:[#allocation5 + $0x230] sm:$0xff]  ;;  %v5361_v15 = vld [vmem:[#allocation5 + $0x1c8] sm:$0xff] }
 0x3e7   :  { %2283 = vmatmul.bf16.vlgmr.msrb.gmra.mxu2 %v2209_v18  ;;  %2344 = vmatmul.bf16.vlgmr.msrb.gmra.mxu3 %v2174_v17  ;;  %v5360_v17 = vld [vmem:[#allocation5 + $0x1c0] sm:$0xff] }
 0x3e8   :  { %2727 = vmatpush.bf16.msrb.mxu3 %v5351_v16  ;;  %2825 = vmatpush.bf16.msrb.mxu2 %v5359_v37  ;;  %v5373_v16 = vld [vmem:[#allocation5 + $0x228] sm:$0xff]  ;;  %v5372_v18 = vld [vmem:[#allocation5 + $0x220] sm:$0xff] }
 0x3ec   :  { %2728 = vmatpush.bf16.msrb.mxu3 %v5350_v19  ;;  %v2172_v20 = vpop.f32.mrf.mxu0  ;;  %v2207_v22 = vpop.f32.mrf.mxu1  ;;  %2826 = vmatpush.bf16.msrb.mxu2 %v5358_v38  ;;  %v5371_v19 = vld [vmem:[#allocation5 + $0x218] sm:$0xff] }
 0x3ed   :  { %v5370_v20 = vld [vmem:[#allocation5 + $0x210] sm:$0xff]  ;;  %v5368_v22 = vld [vmem:[#allocation5 + $0x200] sm:$0xff] }
 0x3f0   :  { %2729 = vmatpush.bf16.msrb.mxu3 %v5349_v21  ;;  %2827 = vmatpush.bf16.msrb.mxu2 %v5357_v39  ;;  %v5369_v21 = vld [vmem:[#allocation5 + $0x208] sm:$0xff] }
 0x3f4   :  { %2730 = vmatpush.bf16.msrb.mxu3 %v5348_v23  ;;  %v2363_v24 = vpop.f32.mrf.mxu0  ;;  %2828 = vmatpush.bf16.msrb.mxu2 %v5356_v40 }
 0x3f5   :  { %v2367_v27 = vpack.c.bf16 %v2363_v24, %v2363_v24 }
 0x3f7   :  { %2441 = vmatmul.bf16.vlgmr.msra.gmra.mxu1 %v2367_v27  ;;  %4653 = vmatmul.msk.bf16.vlgmr.msra.gmra.mxu3 %vm2153_vm7, %v6131_v25 }
 0x3f8   :  { %2731 = vmatpush.bf16.msrb.mxu3 %v5347_v26  ;;  %2753 = vmatpush.bf16.msra.mxu1 %v6091_v42 }
 0x3f9   :  { %2829 = vmatpush.bf16.msrb.mxu2 %v5355_v41 }
 0x3fc   :  { %2732 = vmatpush.bf16.msrb.mxu3 %v5346_v28  ;;  %v2365_v29 = vpop.f32.mrf.mxu0 }
 0x3fd   :  { %2830 = vmatpush.bf16.msrb.mxu2 %v5354_v47  ;;  %v5397_v47 = vld [vmem:[#allocation7 + $0xa8] sm:$0xff] }
 0x400   :  { %2733 = vmatpush.bf16.msrb.mxu3 %v5345_v30 }
 0x401   :  { %2831 = vmatpush.bf16.msrb.mxu2 %v5353_v48 }
 0x404   :  { %2734 = vmatpush.bf16.msrb.mxu3 %v5344_v31  ;;  %v2461_v32 = vpop.f32.mrf.mxu0 }
 0x405   :  { %v2465_v34 = vpack.c.bf16 %v2461_v32, %v2461_v32  ;;  %2832 = vmatpush.bf16.msrb.mxu2 %v5352_v52 }
 0x407   :  { %2539 = vmatmul.bf16.vlgmr.msra.gmra.mxu2 %v2465_v34  ;;  %4687 = vmatmul.msk.bf16.vlgmr.msrb.gmra.mxu1 %vm2153_vm7, %v6139_v33 }
 0x408   :  { %2949 = vmatpush.bf16.msra.mxu3 %v6091_v42  ;;  %2923 = vmatpush.bf16.msrb.mxu1 %v5367_v55 }
 0x40c   :  { %v2463_v35 = vpop.f32.mrf.mxu0  ;;  %2924 = vmatpush.bf16.msrb.mxu1 %v5366_v56  ;;  %v5395_v56 = vld [vmem:[#allocation7 + $0x98] sm:$0xff] }
 0x410   :  { %2925 = vmatpush.bf16.msrb.mxu1 %v5365_v60 }
 0x414   :  { %2926 = vmatpush.bf16.msrb.mxu1 %v5364_v10 }
 0x417   :  { %4721 = vmatmul.msk.bf16.vlgmr.msra.gmra.mxu1 %vm2153_vm7, %v6147_v36 }
 0x418   :  { %2927 = vmatpush.bf16.msrb.mxu1 %v5363_v11  ;;  %v5392_v11 = vld [vmem:[#allocation7 + $0x80] sm:$0xff] }
 0x41c   :  { %2928 = vmatpush.bf16.msrb.mxu1 %v5362_v13 }
 0x420   :  { %2929 = vmatpush.bf16.msrb.mxu1 %v5361_v15 }
 0x424   :  { %2930 = vmatpush.bf16.msrb.mxu1 %v5360_v17 }
 0x46a   :  { %v2284_v42 = vpop.f32.mrf.mxu2  ;;  %v2345_v45 = vpop.f32.mrf.mxu3 }
 0x46b   :  { %v2346_v46 = vadd.f32 %v2345_v45, %v2284_v42  ;;  %v5399_v42 = vld [vmem:[#allocation7 + $0xb8] sm:$0xff] }
 0x472   :  { %v2347_v50 = vpop.f32.mrf.mxu3  ;;  %v2286_v51 = vpop.f32.mrf.mxu2 }
 0x473   :  { %v5489_v50 = vld [vmem:[%s6326_s6] ss:$0 sm:$0xff] }
 0x474   :  { %v2442_v53 = vpop.f32.mrf.mxu1 }
 0x475   :  { %v2446_v54 = vadd.f32 %v2442_v53, %v2346_v46  ;;  %v5398_v46 = vld [vmem:[#allocation7 + $0xb0] sm:$0xff]  ;;  %v5396_v53 = vld [vmem:[#allocation7 + $0xa0] sm:$0xff] }
 0x47a   :  { %v2559_v57 = vpop.f32.mrf.mxu3 }
 0x47b   :  { %v2563_v58 = vpack.c.bf16 %v2559_v57, %v2559_v57 }
 0x47c   :  { %v2444_v59 = vpop.f32.mrf.mxu1 }
 0x47d   :  { %2637 = vmatmul.bf16.vlgmr.msra.gmra.mxu0 %v2563_v58 }
 0x47e   :  { %3021 = vmatpush.bf16.msra.mxu0 %v5375_v12 }
 0x482   :  { %v2561_v61 = vpop.f32.mrf.mxu3  ;;  %3022 = vmatpush.bf16.msra.mxu0 %v5374_v14 }
 0x484   :  { %v2657_v63 = vpop.f32.mrf.mxu1 }
 0x485   :  { %v2661_v2 = vpack.c.bf16 %v2657_v63, %v2657_v63  ;;  %v5394_v63 = vld [vmem:[#allocation7 + $0x90] sm:$0xff] }
 0x486   :  { %3023 = vmatpush.bf16.msra.mxu0 %v5373_v16 }
 0x487   :  { %2735 = vmatmul.bf16.vlgmr.msrb.gmra.mxu3 %v2661_v2 }
 0x48a   :  { %v2540_v3 = vpop.f32.mrf.mxu2  ;;  %3024 = vmatpush.bf16.msra.mxu0 %v5372_v18 }
 0x48b   :  { %v2544_v0 = vadd.f32 %v2540_v3, %v2446_v54 }
 0x48c   :  { %v2659_v5 = vpop.f32.mrf.mxu1 }
 0x48d   :  { %4755 = vmatmul.msk.bf16.vlgmr.msrb.gmra.mxu0 %vm2153_vm7, %v6154_v4 }
 0x48e   :  { %3025 = vmatpush.bf16.msra.mxu0 %v5371_v19 }
 0x492   :  { %v2542_v6 = vpop.f32.mrf.mxu2  ;;  %3026 = vmatpush.bf16.msra.mxu0 %v5370_v20 }
 0x493   :  { %v5393_v6 = vld [vmem:[#allocation7 + $0x88] sm:$0xff] }
 0x494   :  { %v2755_v7 = vpop.f32.mrf.mxu1 }
 0x495   :  { %v2759_v8 = vpack.c.bf16 %v2755_v7, %v2755_v7 }
 0x496   :  { %3027 = vmatpush.bf16.msra.mxu0 %v5369_v21 }
 0x497   :  { %2833 = vmatmul.bf16.vlgmr.msrb.gmra.mxu2 %v2759_v8  ;;  %4789 = vmatmul.msk.bf16.vlgmr.msra.gmra.mxu3 %vm2153_vm7, %v6161_v1 }
 0x49a   :  { %3028 = vmatpush.bf16.msra.mxu0 %v5368_v22 }
 0x49c   :  { %v2757_v9 = vpop.f32.mrf.mxu1 }
 0x49e   :  { %3338 = vmatpush.bf16.msrb.mxu0 %v5399_v42  ;;  %v5389_v42 = vld [vmem:[#allocation7 + $0x68] sm:$0xff] }
 0x4a2   :  { %3339 = vmatpush.bf16.msrb.mxu0 %v5398_v46  ;;  %v5376_v46 = vld [vmem:[#allocation7] sm:$0xff] }
 0x4a6   :  { %3340 = vmatpush.bf16.msrb.mxu0 %v5397_v47  ;;  %v5388_v47 = vld [vmem:[#allocation7 + $0x60] sm:$0xff] }
 0x4aa   :  { %3341 = vmatpush.bf16.msrb.mxu0 %v5396_v53  ;;  %v5385_v53 = vld [vmem:[#allocation7 + $0x48] sm:$0xff] }
 0x4ae   :  { %3342 = vmatpush.bf16.msrb.mxu0 %v5395_v56  ;;  %v5384_v56 = vld [vmem:[#allocation7 + $0x40] sm:$0xff] }
 0x4b2   :  { %3343 = vmatpush.bf16.msrb.mxu0 %v5394_v63  ;;  %v5401_v63 = vld [vmem:[#allocation7 + $0xc8] sm:$0xff] }
 0x4b6   :  { %3344 = vmatpush.bf16.msrb.mxu0 %v5393_v6 }
 0x4ba   :  { %3345 = vmatpush.bf16.msrb.mxu0 %v5392_v11 }
 0x4fa   :  { %v2638_v23 = vpop.f32.mrf.mxu0 }
 0x4fb   :  { %v2642_v24 = vadd.f32 %v2638_v23, %v2544_v0 }
 0x502   :  { %v2640_v26 = vpop.f32.mrf.mxu0 }
 0x50a   :  { %v2736_v27 = vpop.f32.mrf.mxu3  ;;  %v2853_v28 = vpop.f32.mrf.mxu0 }
 0x50b   :  { %v2740_v29 = vadd.f32 %v2736_v27, %v2642_v24  ;;  %v2857_v30 = vpack.c.bf16 %v2853_v28, %v2853_v28 }
 0x50d   :  { %2931 = vmatmul.bf16.vlgmr.msrb.gmra.mxu1 %v2857_v30  ;;  %v5383_v30 = vld [vmem:[#allocation7 + $0x38] sm:$0xff] }
 0x512   :  { %v2738_v31 = vpop.f32.mrf.mxu3  ;;  %v2855_v32 = vpop.f32.mrf.mxu0 }
 0x513   :  { %v5382_v32 = vld [vmem:[#allocation7 + $0x30] sm:$0xff] }
 0x51a   :  { %v2834_v34 = vpop.f32.mrf.mxu2  ;;  %v2951_v35 = vpop.f32.mrf.mxu3 }
 0x51b   :  { %v2838_v37 = vadd.f32 %v2834_v34, %v2740_v29  ;;  %v2955_v38 = vpack.c.bf16 %v2951_v35, %v2951_v35  ;;  %v5381_v34 = vld [vmem:[#allocation7 + $0x28] sm:$0xff]  ;;  %v5380_v35 = vld [vmem:[#allocation7 + $0x20] sm:$0xff] }
 0x51d   :  { %3029 = vmatmul.bf16.vlgmr.msra.gmra.mxu0 %v2955_v38  ;;  %v5415_v38 = vld [vmem:[#allocation7 + $0x138] sm:$0xff] }
 0x522   :  { %v2953_v39 = vpop.f32.mrf.mxu3  ;;  %v2836_v40 = vpop.f32.mrf.mxu2 }
 0x523   :  { %v5378_v39 = vld [vmem:[#allocation7 + $0x10] sm:$0xff]  ;;  %v5391_v40 = vld [vmem:[#allocation7 + $0x78] sm:$0xff] }
 0x524   :  { %3185 = vmatpush.bf16.msra.mxu1 %v5391_v40 }
 0x58a   :  { %v2932_v41 = vpop.f32.mrf.mxu1 }
 0x58b   :  { %v2936_v48 = vadd.f32 %v2932_v41, %v2838_v37  ;;  %v5379_v37 = vld [vmem:[#allocation7 + $0x18] sm:$0xff]  ;;  %v5414_v41 = vld [vmem:[#allocation7 + $0x130] sm:$0xff] }
 0x592   :  { %v2934_v45 = vpop.f32.mrf.mxu1 }
 0x593   :  { %v5413_v45 = vld [vmem:[#allocation7 + $0x128] sm:$0xff] }
 0x59a   :  { %v3030_v51 = vpop.f32.mrf.mxu0 }
 0x59b   :  { %v3034_v52 = vadd.f32 %v3030_v51, %v2936_v48  ;;  %v5412_v48 = vld [vmem:[#allocation7 + $0x120] sm:$0xff]  ;;  %v5386_v51 = vld [vmem:[#allocation7 + $0x50] sm:$0xff] }
 0x59d   :  { %v3039_v54 = vadd.f32 %v5489_v50, %v3034_v52  ;;  %v5411_v50 = vld [vmem:[#allocation7 + $0x118] sm:$0xff]  ;;  %v5410_v52 = vld [vmem:[#allocation7 + $0x110] sm:$0xff] }
 0x59f   :  { %v3040_v55 = vmax.f32 %v3039_v54, 0.0  ;;  %v5409_v54 = vld [vmem:[#allocation7 + $0x108] sm:$0xff] }
 0x5a1   :  { %v3041_v57 = vrot.slane %v3040_v55, 4  ;;  %v3048_v58 = vmul.f32 %v3040_v55, %v3040_v55 }
 0x5a2   :  { %v3032_v59 = vpop.f32.mrf.mxu0 }
 0x5a3   :  { %v3042_v60 = vadd.f32 %v3041_v57, %v3040_v55  ;;  %v3049_v61 = vrot.slane %v3048_v58, 4  ;;  %v5407_v57 = vld [vmem:[#allocation7 + $0xf8] sm:$0xff]  ;;  %v5404_v59 = vld [vmem:[#allocation7 + $0xe0] sm:$0xff] }
 0x5a5   :  { %v3043_v2 = vrot.slane %v3042_v60, 2  ;;  %v3050_v3 = vadd.f32 %v3049_v61, %v3048_v58  ;;  %v5406_v58 = vld [vmem:[#allocation7 + $0xf0] sm:$0xff] }
 0x5a6   :  { %v5402_v61 = vld [vmem:[#allocation7 + $0xd0] sm:$0xff] }
 0x5a7   :  { %v3044_v0 = vadd.f32 %v3043_v2, %v3042_v60  ;;  %v3051_v5 = vrot.slane %v3050_v3, 2  ;;  %v5403_v60 = vld [vmem:[#allocation7 + $0xd8] sm:$0xff]  ;;  %v5400_v2 = vld [vmem:[#allocation7 + $0xc0] sm:$0xff] }
 0x5a9   :  { %v3045_v7 = vrot.slane %v3044_v0, 1  ;;  %v3052_v8 = vadd.f32 %v3051_v5, %v3050_v3  ;;  %v5423_v5 = vld [vmem:[#allocation7 + $0x178] sm:$0xff] }
 0x5ab   :  { %v3046_v9 = vadd.f32 %v3045_v7, %v3044_v0  ;;  %v3053_v10 = vrot.slane %v3052_v8, 1 }
 0x5ad   :  { %v3047_v12 = vmul.f32 0.125, %v3046_v9  ;;  %v3054_v13 = vadd.f32 %v3053_v10, %v3052_v8  ;;  %v5422_v8 = vld [vmem:[#allocation7 + $0x170] sm:$0xff]  ;;  %v5421_v10 = vld [vmem:[#allocation7 + $0x168] sm:$0xff] }
 0x5af   :  { %v3055_v14 = vmul.f32 0.125, %v3054_v13  ;;  %v3056_v15 = vmul.f32 %v3047_v12, %v3047_v12  ;;  %v3059_v26 = vsub.f32 %v3040_v55, %v3047_v12  ;;  %v5408_v55 = vld [vmem:[#allocation7 + $0x100] sm:$0xff] }
 0x5b0   :  { %v5420_v12 = vld [vmem:[#allocation7 + $0x160] sm:$0xff] }
 0x5b1   :  { %v3057_v16 = vsub.f32 %v3055_v14, %v3056_v15  ;;  %v5419_v14 = vld [vmem:[#allocation7 + $0x158] sm:$0xff] }
 0x5b3   :  { %v3058_v17 = vmax.f32 %v3057_v16, 0.0  ;;  %v5418_v16 = vld [vmem:[#allocation7 + $0x150] sm:$0xff] }
 0x5b5   :  { %v3060_v18 = vadd.f32 1e-05, %v3058_v17 }
 0x5b7   :  { %5494 = vrsqrt.f32 %v3060_v18  ;;  %vm3067_vm9 = vweird.f32 %v3060_v18 }
 0x5bd   :  { %v5495_v19 = vpop.eup %5494 }
 0x5be   :  { %v3062_v20 = vmul.f32 %v5495_v19, %v3060_v18  ;;  %vm3068_vm8 = vweird.f32 %v5495_v19  ;;  %v5417_v18 = vld [vmem:[#allocation7 + $0x148] sm:$0xff] }
 0x5bf   :  { %vm3069_vm10 = vmor %vm3067_vm9, %vm3068_vm8 }
 0x5c0   :  { %v3063_v21 = vmul.f32 %v5495_v19, %v3062_v20 }
 0x5c2   :  { %v3064_v22 = vmul.f32 0.5, %v3063_v21 }
 0x5c4   :  { %v3065_v23 = vsub.f32 1.5, %v3064_v22 }
 0x5c6   :  { %v3066_v24 = vmul.f32 %v5495_v19, %v3065_v23  ;;  %v5430_v23 = vld [vmem:[#allocation7 + $0x1b0] sm:$0xff] }
 0x5c8   :  { %v3070_v27 = vsel %vm3069_vm10, %v5495_v19, %v3066_v24  ;;  %v5416_v19 = vld [vmem:[#allocation7 + $0x140] sm:$0xff]  ;;  %v5429_v24 = vld [vmem:[#allocation7 + $0x1a8] sm:$0xff] }
 0x5c9   :  { %v3071_v28 = vmul.f32 %v3070_v27, %v3059_v26  ;;  %v5428_v26 = vld [vmem:[#allocation7 + $0x1a0] sm:$0xff] }
 0x5cb   :  { %v3072_v29 = vpack.c.bf16 %v3071_v28, %v3071_v28  ;;  %v5427_v28 = vld [vmem:[#allocation7 + $0x198] sm:$0xff] }
 0x5cd   :  { %v6169_v31 = vsel %vm2157_vm6, %v3072_v29, 0 }
 0x5ce   :  { %3083 = vmatpush.bf16.msra.mxu2 %v6169_v31  ;;  %3113 = vmatpush.bf16.msrb.mxu3 %v6169_v31 }
 0x5cf   :  { %3545 = vmatpush.bf16.msra.mxu0 %v6169_v31 }
 0x5d1   :  { %4822 = vmatmul.msk.bf16.vlgmr.msra.gmra.mxu2 %vm2153_vm7, %v6098_v44  ;;  %4823 = vmatmul.msk.bf16.vlgmr.msrb.gmra.mxu3 %vm2153_vm7, %v6103_v43  ;;  %v5390_v44 = vld [vmem:[#allocation7 + $0x70] sm:$0xff]  ;;  %v5377_v43 = vld [vmem:[#allocation7 + $0x8] sm:$0xff] }
 0x5d2   :  { %3246 = vmatpush.bf16.msrb.mxu2 %v5383_v30  ;;  %3266 = vmatpush.bf16.msra.mxu3 %v6169_v31 }
 0x5d3   :  { %3186 = vmatpush.bf16.msra.mxu1 %v5390_v44  ;;  %v5447_v44 = vld [vmem:[#allocation7 + $0x238] sm:$0xff] }
 0x5d6   :  { %3359 = vmatpush.bf16.msrb.mxu3 %v6169_v31  ;;  %3247 = vmatpush.bf16.msrb.mxu2 %v5382_v32 }
 0x5d7   :  { %3187 = vmatpush.bf16.msra.mxu1 %v5389_v42  ;;  %v5437_v42 = vld [vmem:[#allocation7 + $0x1e8] sm:$0xff] }
 0x5da   :  { %3248 = vmatpush.bf16.msrb.mxu2 %v5381_v34 }
 0x5db   :  { %3188 = vmatpush.bf16.msra.mxu1 %v5388_v47 }
 0x5de   :  { %3249 = vmatpush.bf16.msrb.mxu2 %v5380_v35 }
 0x5e1   :  { %4888 = vmatmul.msk.bf16.vlgmr.msra.gmra.mxu3 %vm2153_vm7, %v6115_v49  ;;  %v5387_v49 = vld [vmem:[#allocation7 + $0x58] sm:$0xff] }
 0x5e2   :  { %3250 = vmatpush.bf16.msrb.mxu2 %v5379_v37  ;;  %3524 = vmatpush.bf16.msra.mxu3 %v5415_v38  ;;  %v5439_v38 = vld [vmem:[#allocation7 + $0x1f8] sm:$0xff] }
 0x5e3   :  { %3189 = vmatpush.bf16.msra.mxu1 %v5387_v49 }
 0x5e6   :  { %3251 = vmatpush.bf16.msrb.mxu2 %v5378_v39  ;;  %3525 = vmatpush.bf16.msra.mxu3 %v5414_v41  ;;  %v5438_v39 = vld [vmem:[#allocation7 + $0x1f0] sm:$0xff] }
 0x5e7   :  { %3190 = vmatpush.bf16.msra.mxu1 %v5386_v51 }
 0x5ea   :  { %3252 = vmatpush.bf16.msrb.mxu2 %v5377_v43  ;;  %3526 = vmatpush.bf16.msra.mxu3 %v5413_v45 }
 0x5eb   :  { %3191 = vmatpush.bf16.msra.mxu1 %v5385_v53 }
 0x5ee   :  { %3253 = vmatpush.bf16.msrb.mxu2 %v5376_v46  ;;  %3527 = vmatpush.bf16.msra.mxu3 %v5412_v48 }
 0x5ef   :  { %3192 = vmatpush.bf16.msra.mxu1 %v5384_v56  ;;  %v5446_v56 = vld [vmem:[#allocation7 + $0x230] sm:$0xff] }
 0x5f1   :  { %4921 = vmatmul.msk.bf16.vlgmr.msrb.gmra.mxu3 %vm2153_vm7, %v6123_v62  ;;  %v5405_v62 = vld [vmem:[#allocation7 + $0xe8] sm:$0xff] }
 0x5f2   :  { %3452 = vmatpush.bf16.msra.mxu2 %v6169_v31  ;;  %3528 = vmatpush.bf16.msra.mxu3 %v5411_v50 }
 0x5f3   :  { %3431 = vmatpush.bf16.msrb.mxu1 %v5407_v57  ;;  %v5435_v57 = vld [vmem:[#allocation7 + $0x1d8] sm:$0xff] }
 0x5f6   :  { %3529 = vmatpush.bf16.msra.mxu3 %v5410_v52 }
 0x5f7   :  { %3432 = vmatpush.bf16.msrb.mxu1 %v5406_v58  ;;  %v5445_v58 = vld [vmem:[#allocation7 + $0x228] sm:$0xff] }
 0x5fa   :  { %3530 = vmatpush.bf16.msra.mxu3 %v5409_v54 }
 0x5fb   :  { %3433 = vmatpush.bf16.msrb.mxu1 %v5405_v62  ;;  %v5434_v62 = vld [vmem:[#allocation7 + $0x1d0] sm:$0xff] }
 0x5fe   :  { %3531 = vmatpush.bf16.msra.mxu3 %v5408_v55  ;;  %v5436_v55 = vld [vmem:[#allocation7 + $0x1e0] sm:$0xff] }
 0x5ff   :  { %3434 = vmatpush.bf16.msrb.mxu1 %v5404_v59  ;;  %v5444_v59 = vld [vmem:[#allocation7 + $0x220] sm:$0xff] }
 0x602   :  { %3731 = vmatpush.bf16.msrb.mxu3 %v6169_v31 }
 0x603   :  { %3435 = vmatpush.bf16.msrb.mxu1 %v5403_v60  ;;  %v5443_v60 = vld [vmem:[#allocation7 + $0x218] sm:$0xff] }
 0x607   :  { %3436 = vmatpush.bf16.msrb.mxu1 %v5402_v61  ;;  %v5432_v61 = vld [vmem:[#allocation7 + $0x1c0] sm:$0xff] }
 0x60b   :  { %3437 = vmatpush.bf16.msrb.mxu1 %v5401_v63  ;;  %v5441_v63 = vld [vmem:[#allocation7 + $0x208] sm:$0xff] }
 0x60f   :  { %3438 = vmatpush.bf16.msrb.mxu1 %v5400_v2  ;;  %v5440_v2 = vld [vmem:[#allocation7 + $0x200] sm:$0xff] }
 0x654   :  { %v3085_v3 = vpop.f32.mrf.mxu2  ;;  %v3115_v0 = vpop.f32.mrf.mxu3 }
 0x655   :  { %v3089_v6 = vpack.c.bf16 %v3085_v3, %v3085_v3  ;;  %v3119_v7 = vpack.c.bf16 %v3115_v0, %v3115_v0 }
 0x657   :  { %3193 = vmatmul.bf16.vlgmr.msra.gmra.mxu1 %v3119_v7  ;;  %3254 = vmatmul.bf16.vlgmr.msrb.gmra.mxu2 %v3089_v6 }
 0x658   :  { %3617 = vmatpush.bf16.msrb.mxu2 %v5423_v5 }
 0x65c   :  { %3618 = vmatpush.bf16.msrb.mxu2 %v5422_v8  ;;  %v3117_v9 = vpop.f32.mrf.mxu3  ;;  %v3087_v11 = vpop.f32.mrf.mxu2 }
 0x660   :  { %3619 = vmatpush.bf16.msrb.mxu2 %v5421_v10 }
 0x664   :  { %3620 = vmatpush.bf16.msrb.mxu2 %v5420_v12  ;;  %v3268_v13 = vpop.f32.mrf.mxu3 }
 0x665   :  { %v3272_v15 = vpack.c.bf16 %v3268_v13, %v3268_v13 }
 0x667   :  { %3346 = vmatmul.bf16.vlgmr.msrb.gmra.mxu0 %v3272_v15  ;;  %4954 = vmatmul.msk.bf16.vlgmr.msra.gmra.mxu2 %vm2153_vm7, %v6131_v25  ;;  %v5431_v25 = vld [vmem:[#allocation7 + $0x1b8] sm:$0xff] }
 0x668   :  { %3621 = vmatpush.bf16.msrb.mxu2 %v5419_v14  ;;  %3638 = vmatpush.bf16.msrb.mxu0 %v6169_v31 }
 0x669   :  { %3710 = vmatpush.bf16.msra.mxu1 %v5431_v25 }
 0x66c   :  { %3622 = vmatpush.bf16.msrb.mxu2 %v5418_v16  ;;  %v3270_v17 = vpop.f32.mrf.mxu3 }
 0x66d   :  { %3711 = vmatpush.bf16.msra.mxu1 %v5430_v23 }
 0x670   :  { %3623 = vmatpush.bf16.msrb.mxu2 %v5417_v18 }
 0x671   :  { %3712 = vmatpush.bf16.msra.mxu1 %v5429_v24 }
 0x674   :  { %3624 = vmatpush.bf16.msrb.mxu2 %v5416_v19  ;;  %v3361_v20 = vpop.f32.mrf.mxu3 }
 0x675   :  { %v3365_v21 = vpack.c.bf16 %v3361_v20, %v3361_v20  ;;  %3713 = vmatpush.bf16.msra.mxu1 %v5428_v26 }
 0x677   :  { %3439 = vmatmul.bf16.vlgmr.msrb.gmra.mxu1 %v3365_v21  ;;  %4987 = vmatmul.msk.bf16.vlgmr.msra.gmra.mxu0 %vm2153_vm7, %v6139_v33  ;;  %v5425_v33 = vld [vmem:[#allocation7 + $0x188] sm:$0xff]  ;;  %v5490_v21 = vld [vmem:[%s6328_s8] ss:$0 sm:$0xff] }
 0x678   :  { %3824 = vmatpush.bf16.msra.mxu2 %v6169_v31  ;;  %v5426_v31 = vld [vmem:[#allocation7 + $0x190] sm:$0xff]  ;;  %3803 = vmatpush.bf16.msra.mxu0 %v5439_v38 }
 0x679   :  { %3714 = vmatpush.bf16.msra.mxu1 %v5427_v28 }
 0x67c   :  { %v3363_v22 = vpop.f32.mrf.mxu3  ;;  %3804 = vmatpush.bf16.msra.mxu0 %v5438_v39 }
 0x67d   :  { %3715 = vmatpush.bf16.msra.mxu1 %v5426_v31 }
 0x680   :  { %3805 = vmatpush.bf16.msra.mxu0 %v5437_v42 }
 0x681   :  { %3716 = vmatpush.bf16.msra.mxu1 %v5425_v33 }
 0x684   :  { %3806 = vmatpush.bf16.msra.mxu0 %v5436_v55 }
 0x687   :  { %5020 = vmatmul.msk.bf16.vlgmr.msrb.gmra.mxu0 %vm2153_vm7, %v6147_v36  ;;  %v5424_v36 = vld [vmem:[#allocation7 + $0x180] sm:$0xff] }
 0x688   :  { %3717 = vmatpush.bf16.msra.mxu1 %v5424_v36  ;;  %3807 = vmatpush.bf16.msra.mxu0 %v5435_v57  ;;  %v5120_v57 = vld [vmem:[%s6329_s9 + $0x1] sm:$0x1] }
 0x68c   :  { %3808 = vmatpush.bf16.msra.mxu0 %v5434_v62  ;;  %v5463_v62 = vld [vmem:[%s6330_s10 + $0x78] sm:$0xff] }
 0x6d4   :  { %v3194_v27 = vpop.f32.mrf.mxu1 }
 0x6da   :  { %v3255_v29 = vpop.f32.mrf.mxu2 }
 0x6db   :  { %v3256_v30 = vadd.f32 %v3255_v29, %v3194_v27 }
 0x6dc   :  { %v3196_v32 = vpop.f32.mrf.mxu1 }
 0x6e2   :  { %v3257_v34 = vpop.f32.mrf.mxu2 }
 0x6e4   :  { %v3347_v35 = vpop.f32.mrf.mxu0 }
 0x6e5   :  { %v3351_v37 = vadd.f32 %v3347_v35, %v3256_v30 }
 0x6ea   :  { %v3454_v40 = vpop.f32.mrf.mxu2 }
 0x6eb   :  { %v3458_v41 = vpack.c.bf16 %v3454_v40, %v3454_v40 }
 0x6ec   :  { %v3349_v43 = vpop.f32.mrf.mxu0 }
 0x6ed   :  { %3532 = vmatmul.bf16.vlgmr.msra.gmra.mxu3 %v3458_v41 }
 0x6ee   :  { %3896 = vmatpush.bf16.msra.mxu3 %v5447_v44 }
 0x6f2   :  { %v3456_v45 = vpop.f32.mrf.mxu2  ;;  %3897 = vmatpush.bf16.msra.mxu3 %v5446_v56 }
 0x6f4   :  { %v3440_v46 = vpop.f32.mrf.mxu1  ;;  %v3547_v47 = vpop.f32.mrf.mxu0 }
 0x6f5   :  { %v3444_v48 = vadd.f32 %v3440_v46, %v3351_v37  ;;  %v3551_v49 = vpack.c.bf16 %v3547_v47, %v3547_v47 }
 0x6f6   :  { %3898 = vmatpush.bf16.msra.mxu3 %v5445_v58  ;;  %v3948_v58 = vld [vmem:[%s6329_s9] sm:$0x1] }
 0x6f7   :  { %3625 = vmatmul.bf16.vlgmr.msrb.gmra.mxu2 %v3551_v49 }
 0x6fa   :  { %3899 = vmatpush.bf16.msra.mxu3 %v5444_v59  ;;  %v5455_v59 = vld [vmem:[%s6330_s10 + $0x38] sm:$0xff] }
 0x6fc   :  { %v3549_v50 = vpop.f32.mrf.mxu0  ;;  %v3442_v51 = vpop.f32.mrf.mxu1 }
 0x6fd   :  { %5053 = vmatmul.msk.bf16.vlgmr.msrb.gmra.mxu3 %vm2153_vm7, %v6154_v4  ;;  %v5433_v4 = vld [vmem:[#allocation7 + $0x1c8] sm:$0xff] }
 0x6fe   :  { %3809 = vmatpush.bf16.msra.mxu0 %v5433_v4  ;;  %3900 = vmatpush.bf16.msra.mxu3 %v5443_v60  ;;  %v5471_v4 = vld [vmem:[%s6330_s10 + $0xb8] sm:$0xff]  ;;  %v5462_v60 = vld [vmem:[%s6330_s10 + $0x70] sm:$0xff] }
 0x702   :  { %3810 = vmatpush.bf16.msra.mxu0 %v5432_v61  ;;  %v5454_v61 = vld [vmem:[%s6330_s10 + $0x30] sm:$0xff] }
 0x704   :  { %v3640_v52 = vpop.f32.mrf.mxu0 }
 0x705   :  { %v3644_v53 = vpack.c.bf16 %v3640_v52, %v3640_v52 }
 0x706   :  { %4069 = vmatpush.bf16.msrb.mxu0 %v5463_v62 }
 0x707   :  { %3718 = vmatmul.bf16.vlgmr.msra.gmra.mxu1 %v3644_v53  ;;  %5086 = vmatmul.msk.bf16.vlgmr.msra.gmra.mxu2 %vm2153_vm7, %v6161_v1  ;;  %v5442_v1 = vld [vmem:[#allocation7 + $0x210] sm:$0xff] }
 0x708   :  { %3901 = vmatpush.bf16.msra.mxu3 %v5442_v1  ;;  %v5470_v1 = vld [vmem:[%s6330_s10 + $0xb0] sm:$0xff] }
 0x70a   :  { %4070 = vmatpush.bf16.msrb.mxu0 %v5462_v60 }
 0x70c   :  { %v3642_v54 = vpop.f32.mrf.mxu0  ;;  %3902 = vmatpush.bf16.msra.mxu3 %v5441_v63  ;;  %v5461_v63 = vld [vmem:[%s6330_s10 + $0x68] sm:$0xff] }
 0x70e   :  { %4071 = vmatpush.bf16.msrb.mxu0 %v5461_v63 }
 0x710   :  { %3903 = vmatpush.bf16.msra.mxu3 %v5440_v2  ;;  %v5453_v2 = vld [vmem:[%s6330_s10 + $0x28] sm:$0xff] }
 0x714   :  { %4227 = vmatpush.bf16.msrb.mxu3 %v5471_v4 }
 0x718   :  { %4228 = vmatpush.bf16.msrb.mxu3 %v5470_v1 }
 0x770   :  { %v3533_v3 = vpop.f32.mrf.mxu3 }
 0x771   :  { %v3537_v0 = vadd.f32 %v3533_v3, %v3444_v48  ;;  %v5469_v3 = vld [vmem:[%s6330_s10 + $0xa8] sm:$0xff] }
 0x772   :  { %4229 = vmatpush.bf16.msrb.mxu3 %v5469_v3 }
 0x778   :  { %v3535_v5 = vpop.f32.mrf.mxu3 }
 0x779   :  { %v5452_v5 = vld [vmem:[%s6330_s10 + $0x20] sm:$0xff] }
 0x77a   :  { %v3626_v6 = vpop.f32.mrf.mxu2 }
 0x77b   :  { %v3630_v7 = vadd.f32 %v3626_v6, %v3537_v0  ;;  %v5460_v0 = vld [vmem:[%s6330_s10 + $0x60] sm:$0xff] }
 0x77c   :  { %v5202_v6 = vld [vmem:[%s6329_s9 + $0x2] sm:$0x1]  ;;  %4072 = vmatpush.bf16.msrb.mxu0 %v5460_v0 }
 0x780   :  { %v3733_v8 = vpop.f32.mrf.mxu3 }
 0x781   :  { %v3737_v9 = vpack.c.bf16 %v3733_v8, %v3733_v8  ;;  %v5458_v8 = vld [vmem:[%s6330_s10 + $0x50] sm:$0xff] }
 0x782   :  { %v3628_v10 = vpop.f32.mrf.mxu2 }
 0x783   :  { %3811 = vmatmul.bf16.vlgmr.msra.gmra.mxu0 %v3737_v9  ;;  %v5457_v9 = vld [vmem:[%s6330_s10 + $0x48] sm:$0xff]  ;;  %v5252_v10 = vld [vmem:[%s6329_s9 + $0x3] sm:$0x1] }
 0x784   :  { %v3719_v11 = vpop.f32.mrf.mxu1 }
 0x785   :  { %v3723_v12 = vadd.f32 %v3719_v11, %v3630_v7  ;;  %v5459_v7 = vld [vmem:[%s6330_s10 + $0x58] sm:$0xff] }
 0x786   :  { %4073 = vmatpush.bf16.msrb.mxu0 %v5459_v7  ;;  %v5451_v11 = vld [vmem:[%s6330_s10 + $0x18] sm:$0xff] }
 0x788   :  { %v3735_v13 = vpop.f32.mrf.mxu3 }
 0x789   :  { %v5449_v13 = vld [vmem:[%s6330_s10 + $0x8] sm:$0xff] }
 0x78a   :  { %v3826_v14 = vpop.f32.mrf.mxu2  ;;  %4074 = vmatpush.bf16.msrb.mxu0 %v5458_v8 }
 0x78b   :  { %v3830_v15 = vpack.c.bf16 %v3826_v14, %v3826_v14  ;;  %v5468_v14 = vld [vmem:[%s6330_s10 + $0xa0] sm:$0xff] }
 0x78c   :  { %v3721_v16 = vpop.f32.mrf.mxu1  ;;  %4230 = vmatpush.bf16.msrb.mxu3 %v5468_v14 }
 0x78d   :  { %3904 = vmatmul.bf16.vlgmr.msra.gmra.mxu3 %v3830_v15  ;;  %v5456_v15 = vld [vmem:[%s6330_s10 + $0x40] sm:$0xff] }
 0x78e   :  { %4075 = vmatpush.bf16.msrb.mxu0 %v5457_v9  ;;  %v5448_v16 = vld [vmem:[%s6330_s10] sm:$0xff] }
 0x792   :  { %v3828_v17 = vpop.f32.mrf.mxu2  ;;  %4076 = vmatpush.bf16.msrb.mxu0 %v5456_v15 }
 0x793   :  { %v5467_v17 = vld [vmem:[%s6330_s10 + $0x98] sm:$0xff] }
 0x794   :  { %4231 = vmatpush.bf16.msrb.mxu3 %v5467_v17 }
 0x800   :  { %v3812_v18 = vpop.f32.mrf.mxu0 }
 0x801   :  { %v3816_v20 = vadd.f32 %v3812_v18, %v3723_v12  ;;  %v5450_v12 = vld [vmem:[%s6330_s10 + $0x10] sm:$0xff]  ;;  %v5479_v18 = vld [vmem:[%s6330_s10 + $0xf8] sm:$0xff] }
 0x802   :  { %4325 = vmatpush.bf16.msra.mxu0 %v5479_v18 }
 0x808   :  { %v3814_v19 = vpop.f32.mrf.mxu0 }
 0x809   :  { %v5466_v19 = vld [vmem:[%s6330_s10 + $0x90] sm:$0xff] }
 0x80a   :  { %4232 = vmatpush.bf16.msrb.mxu3 %v5466_v19 }
 0x810   :  { %v3905_v22 = vpop.f32.mrf.mxu3 }
 0x811   :  { %v3909_v25 = vadd.f32 %v3905_v22, %v3816_v20  ;;  %v5478_v20 = vld [vmem:[%s6330_s10 + $0xf0] sm:$0xff]  ;;  %v5477_v22 = vld [vmem:[%s6330_s10 + $0xe8] sm:$0xff] }
 0x812   :  { %4326 = vmatpush.bf16.msra.mxu0 %v5478_v20 }
 0x813   :  { %v3914_v23 = vadd.f32 %v5490_v21, %v3909_v25  ;;  %v5465_v21 = vld [vmem:[%s6330_s10 + $0x88] sm:$0xff]  ;;  %v5464_v25 = vld [vmem:[%s6330_s10 + $0x80] sm:$0xff] }
 0x814   :  { %4233 = vmatpush.bf16.msrb.mxu3 %v5465_v21 }
 0x815   :  { %v3915_v24 = vmax.f32 %v3914_v23, 0.0  ;;  %v5476_v23 = vld [vmem:[%s6330_s10 + $0xe0] sm:$0xff] }
 0x816   :  { %4327 = vmatpush.bf16.msra.mxu0 %v5477_v22 }
 0x817   :  { %v3916_v26 = vrot.slane %v3915_v24, 4  ;;  %v3923_v27 = vmul.f32 %v3915_v24, %v3915_v24 }
 0x818   :  { %v3907_v28 = vpop.f32.mrf.mxu3  ;;  %4234 = vmatpush.bf16.msrb.mxu3 %v5464_v25 }
 0x819   :  { %v3917_v29 = vadd.f32 %v3916_v26, %v3915_v24  ;;  %v3924_v30 = vrot.slane %v3923_v27, 4  ;;  %v5474_v26 = vld [vmem:[%s6330_s10 + $0xd0] sm:$0xff] }
 0x81a   :  { %4328 = vmatpush.bf16.msra.mxu0 %v5476_v23 }
 0x81b   :  { %v3918_v31 = vrot.slane %v3917_v29, 2  ;;  %v3925_v32 = vadd.f32 %v3924_v30, %v3923_v27  ;;  %v5473_v27 = vld [vmem:[%s6330_s10 + $0xc8] sm:$0xff]  ;;  %v5472_v30 = vld [vmem:[%s6330_s10 + $0xc0] sm:$0xff] }
 0x81d   :  { %v3926_v33 = vrot.slane %v3925_v32, 2  ;;  %v3919_v34 = vadd.f32 %v3918_v31, %v3917_v29 }
 0x81f   :  { %v3927_v36 = vadd.f32 %v3926_v33, %v3925_v32  ;;  %v3920_v35 = vrot.slane %v3919_v34, 1 }
 0x821   :  { %v3928_v37 = vrot.slane %v3927_v36, 1  ;;  %v3921_v38 = vadd.f32 %v3920_v35, %v3919_v34 }
 0x823   :  { %v3922_v39 = vmul.f32 0.125, %v3921_v38  ;;  %v3929_v40 = vadd.f32 %v3928_v37, %v3927_v36 }
 0x825   :  { %v3930_v44 = vmul.f32 0.125, %v3929_v40  ;;  %v3931_v41 = vmul.f32 %v3922_v39, %v3922_v39  ;;  %v3934_v52 = vsub.f32 %v3915_v24, %v3922_v39  ;;  %v5475_v24 = vld [vmem:[%s6330_s10 + $0xd8] sm:$0xff] }
 0x826   :  { %4329 = vmatpush.bf16.msra.mxu0 %v5475_v24 }
 0x827   :  { %v3932_v43 = vsub.f32 %v3930_v44, %v3931_v41 }
 0x829   :  { %v3933_v42 = vmax.f32 %v3932_v43, 0.0 }
 0x82a   :  { %4330 = vmatpush.bf16.msra.mxu0 %v5474_v26 }
 0x82b   :  { %v3935_v45 = vadd.f32 1e-05, %v3933_v42 }
 0x82d   :  { %5496 = vrsqrt.f32 %v3935_v45  ;;  %vm3942_vm12 = vweird.f32 %v3935_v45 }
 0x82e   :  { %4331 = vmatpush.bf16.msra.mxu0 %v5473_v27 }
 0x832   :  { %4332 = vmatpush.bf16.msra.mxu0 %v5472_v30 }
 0x833   :  { %v5497_v46 = vpop.eup %5496 }
 0x834   :  { %v3937_v47 = vmul.f32 %v5497_v46, %v3935_v45  ;;  %vm3943_vm11 = vweird.f32 %v5497_v46 }
 0x835   :  { %vm3944_vm13 = vmor %vm3942_vm12, %vm3943_vm11 }
 0x836   :  { %v3938_v48 = vmul.f32 %v5497_v46, %v3937_v47 }
 0x838   :  { %v3939_v49 = vmul.f32 0.5, %v3938_v48 }
 0x83a   :  { %v3940_v50 = vsub.f32 1.5, %v3939_v49  ;;  %v5491_v49 = vld [vmem:[%s6331_s11] ss:$0 sm:$0xff] }
 0x83c   :  { %v3941_v51 = vmul.f32 %v5497_v46, %v3940_v50 }
 0x83e   :  { %v3945_v53 = vsel %vm3944_vm13, %v5497_v46, %v3941_v51 }
 0x83f   :  { %v3946_v54 = vmul.f32 %v3945_v53, %v3934_v52 }
 0x841   :  { %v3947_v55 = vpack.c.bf16 %v3946_v54, %v3946_v54 }
 0x843   :  { %v3953_v56 = vsel %vm2157_vm6, %v3947_v55, 0 }
 0x844   :  { %3962 = vmatpush.bf16.msrb.mxu1 %v3953_v56  ;;  %3997 = vmatpush.bf16.msrb.mxu2 %v3953_v56 }
 0x847   :  { %5121 = vmatmul.msk.bf16.vlgmr.msrb.gmra.mxu2 %vm2153_vm7, %v5120_v57  ;;  %5119 = vmatmul.msk.bf16.vlgmr.msrb.gmra.mxu1 %vm2153_vm7, %v3948_v58 }
 0x848   :  { %4155 = vmatpush.bf16.msra.mxu2 %v3953_v56  ;;  %4130 = vmatpush.bf16.msra.mxu1 %v5455_v59 }
 0x84c   :  { %4253 = vmatpush.bf16.msrb.mxu2 %v3953_v56  ;;  %4131 = vmatpush.bf16.msra.mxu1 %v5454_v61 }
 0x850   :  { %4132 = vmatpush.bf16.msra.mxu1 %v5453_v2 }
 0x854   :  { %4133 = vmatpush.bf16.msra.mxu1 %v5452_v5 }
 0x857   :  { %5203 = vmatmul.msk.bf16.vlgmr.msra.gmra.mxu2 %vm2153_vm7, %v5202_v6 }
 0x858   :  { %4134 = vmatpush.bf16.msra.mxu1 %v5451_v11 }
 0x85c   :  { %4135 = vmatpush.bf16.msra.mxu1 %v5450_v12 }
 0x860   :  { %4136 = vmatpush.bf16.msra.mxu1 %v5449_v13 }
 0x864   :  { %4137 = vmatpush.bf16.msra.mxu1 %v5448_v16 }
 0x867   :  { %5253 = vmatmul.msk.bf16.vlgmr.msrb.gmra.mxu2 %vm2153_vm7, %v5252_v10 }
 0x8c4   :  { %v3964_v28 = vpop.f32.mrf.mxu1 }
 0x8c5   :  { %v3968_v29 = vpack.c.bf16 %v3964_v28, %v3964_v28 }
 0x8c7   :  { %4138 = vmatmul.bf16.vlgmr.msra.gmra.mxu1 %v3968_v29 }
 0x8ca   :  { %v3999_v31 = vpop.f32.mrf.mxu2 }
 0x8cb   :  { %v4003_v32 = vpack.c.bf16 %v3999_v31, %v3999_v31 }
 0x8cc   :  { %v3966_v33 = vpop.f32.mrf.mxu1 }
 0x8cd   :  { %4077 = vmatmul.bf16.vlgmr.msrb.gmra.mxu0 %v4003_v32 }
 0x8d2   :  { %v4001_v34 = vpop.f32.mrf.mxu2 }
 0x8da   :  { %v4157_v36 = vpop.f32.mrf.mxu2 }
 0x8db   :  { %v4161_v35 = vpack.c.bf16 %v4157_v36, %v4157_v36 }
 0x8dd   :  { %4235 = vmatmul.bf16.vlgmr.msrb.gmra.mxu3 %v4161_v35 }
 0x8e2   :  { %v4159_v37 = vpop.f32.mrf.mxu2 }
 0x8ea   :  { %v4255_v38 = vpop.f32.mrf.mxu2 }
 0x8eb   :  { %v4259_v39 = vpack.c.bf16 %v4255_v38, %v4255_v38 }
 0x8ed   :  { %4333 = vmatmul.bf16.vlgmr.msra.gmra.mxu0 %v4259_v39 }
 0x8f2   :  { %v4257_v40 = vpop.f32.mrf.mxu2 }
 0x944   :  { %v4139_v44 = vpop.f32.mrf.mxu1 }
 0x94a   :  { %v4078_v41 = vpop.f32.mrf.mxu0 }
 0x94b   :  { %v4140_v46 = vadd.f32 %v4139_v44, %v4078_v41 }
 0x94c   :  { %v4141_v43 = vpop.f32.mrf.mxu1 }
 0x952   :  { %v4080_v42 = vpop.f32.mrf.mxu0 }
 0x960   :  { %v4236_v45 = vpop.f32.mrf.mxu3 }
 0x961   :  { %v4240_v48 = vadd.f32 %v4236_v45, %v4140_v46 }
 0x968   :  { %v4238_v47 = vpop.f32.mrf.mxu3 }
 0x96a   :  { %v4334_v50 = vpop.f32.mrf.mxu0 }
 0x96b   :  { %v4338_v51 = vadd.f32 %v4334_v50, %v4240_v48 }
 0x96d   :  { %v4343_v52 = vadd.f32 %v5491_v49, %v4338_v51 }
 0x96f   :  { %4344 = vst [vmem:[#allocation8] sm:$0x3] %v4343_v52 }
 0x970   :  { %4355 = dma.vmem_to_hbm [thread:$0]  %s4351_s24, 32, %s4353_s26, [#allocation4]  }
 0x972   :  { %v4336_v53 = vpop.f32.mrf.mxu0 }
 0x973   :  { %5598 = dma.done.wait [#allocation4], 32  }
 0x974   :  { %5599 = vsyncadd [#allocation4], 4294967264 }
 0x975   :  { %4360 = vsyncpa [#allocation3], 1 }
 0x976   :  { %4361 = vsyncpa [#allocation6], 1 }
 0x977   :  { %4362 = vsyncpa [#allocation4], 1 }

</bundles_post_ra>
